<compile_context>
chip_gen: v6e
topology: v6e:2x2x1
jax: 0.10.0
libtpu: 0.0.40
codegen_flags: <defaults>
</compile_context>

<pallas_src>
import jax
import jax.numpy as jnp
from jax.experimental import pallas as pl
from jax.experimental.pallas import tpu as pltpu


# ----------------------------------------------------------------------------
# Pallas kernel 1: the "net" — a 1x1 conv, channels-first per batch:
#   out[b] (F, TP) = W (F, Cin) @ x[b] (Cin, TP) + bias (F, 1)
# HW lives on the lane axis -> fully lane-dense loads and unmasked stores.
# ----------------------------------------------------------------------------
def _conv1x1_kernel(x_ref, w_ref, b_ref, o_ref):
    # x_ref: (1, Cin, TP), w_ref: (F, Cin), b_ref: (F, 1), o_ref: (1, F, TP)
    o_ref[0] = (
        jnp.dot(w_ref[...], x_ref[0], preferred_element_type=jnp.float32)
        + b_ref[...]
    )


def _pick_pixel_tile(p, max_tile=2048):
    """Largest pixel tile <= max_tile that divides P (multiple of 128 if P is)."""
    if p <= max_tile:
        return p
    t = max_tile - (max_tile % 128)
    while t >= 128:
        if p % t == 0:
            return t
        t -= 128
    return p


def conv1x1_apply(x_nchw, w_fc, b_f, max_tile=2048):
    """1x1 conv net, channels-first: (B, Cin, H, W) -> (B, F, H, W)."""
    B, C, H, W = x_nchw.shape
    F = w_fc.shape[0]
    P = H * W
    TP = _pick_pixel_tile(P, max_tile)

    x2 = x_nchw.reshape(B, C, P).astype(jnp.float32)   # free reshape, NCHW is (B,C,HW)
    b2 = b_f.reshape(F, 1).astype(jnp.float32)

    cost = pl.CostEstimate(
        flops=int(2 * B * P * C * F),
        transcendentals=0,
        bytes_accessed=int(4 * (B * P * C + B * P * F + F * C + F)),
    )

    out = pl.pallas_call(
        _conv1x1_kernel,
        out_shape=jax.ShapeDtypeStruct((B, F, P), jnp.float32),
        grid=(B, P // TP),
        in_specs=[
            pl.BlockSpec((1, C, TP), lambda i, p: (i, 0, p)),
            pl.BlockSpec((F, C), lambda i, p: (0, 0)),
            pl.BlockSpec((F, 1), lambda i, p: (0, 0)),
        ],
        out_specs=pl.BlockSpec((1, F, TP), lambda i, p: (i, 0, p)),
        compiler_params=pltpu.CompilerParams(
            dimension_semantics=("parallel", "parallel"),
        ),
        cost_estimate=cost,
    )(x2, w_fc.astype(jnp.float32), b2)
    return out.reshape(B, F, H, W)


# ----------------------------------------------------------------------------
# Pallas kernel 2: per-batch correlation matrices + double-softmax loss terms.
# Features arrive channels-first (F, N) per batch (N = H*W pixel tokens).
#   M_h[i,j] = <a_h[:,i], b_h[:,j]>,  M_v[i,j] = <a_v[:,i], b_v[:,j]>
#   column-softmax of M_v, row-softmax of M_h, elementwise product,
#   sum over i, log(. + 1e-4).  Output: (1, 1, N) per batch.
# ----------------------------------------------------------------------------
def _fmap_loss_kernel(ah_ref, bh_ref, av_ref, bv_ref, o_ref):
    def corr(a_ref, b_ref):
        # a, b: (F, N) f32.  M[i, j] = sum_f a[f, i] * b[f, j].
        # Explicit in-VMEM transpose of the a-side (cheap XLU op) keeps the
        # matmul in the standard (N,F)@(F,N) form; operands go to the MXU in
        # bf16 with f32 accumulation.
        a_nf = jnp.transpose(a_ref[0]).astype(jnp.bfloat16)          # (N, F)
        return jnp.dot(a_nf, b_ref[0].astype(jnp.bfloat16),
                       preferred_element_type=jnp.float32)           # (N, N)

    M_h = corr(ah_ref, bh_ref)   # (N_i, N_j)
    M_v = corr(av_ref, bv_ref)   # (N_i, N_j)

    hm = jnp.max(M_h, axis=1, keepdims=True)   # (N, 1)  max over j
    vm = jnp.max(M_v, axis=0, keepdims=True)   # (1, N)  max over i
    Mh = jnp.exp(M_h - hm)
    Mv = jnp.exp(M_v - vm)

    # 1/x on the EUP (free slot between the exp bursts).
    hs = pl.reciprocal(jnp.sum(Mh, axis=1, keepdims=True) + 1e-4, approx=True)  # (N,1)
    vs = pl.reciprocal(jnp.sum(Mv, axis=0, keepdims=True) + 1e-4, approx=True)  # (1,N)

    # res[i,j] = Mv[i,j]*vs[j] * Mh[i,j]*hs[i];  S[j] = sum_i res[i,j]
    # Fused: fold hs into one NxN multiply, pull the rank-1 vs out of the
    # elementwise path and apply it after the i-reduction.
    prod = Mv * (Mh * hs)                                   # 2 NxN multiplies
    S = jnp.sum(prod, axis=0, keepdims=True) * vs           # (1, N)
    o_ref[0] = jnp.log(S + 1e-4)


def fmap_loss(feats_all, num_b):
    """feats_all: (4*B, F, N) f32, branches stacked [a_h, b_h, a_v, b_v]."""
    _, F, N = feats_all.shape
    B = num_b

    def branch_spec(k):
        return pl.BlockSpec((1, F, N), lambda b, k=k: (k * B + b, 0, 0))

    cost = pl.CostEstimate(
        flops=int(B * (4 * N * N * F + 8 * N * N)),
        transcendentals=int(B * (2 * N * N + 3 * N)),
        bytes_accessed=int(4 * (4 * B * F * N + B * N)),
    )

    log_s = pl.pallas_call(
        _fmap_loss_kernel,
        out_shape=jax.ShapeDtypeStruct((B, 1, N), jnp.float32),
        grid=(B,),
        in_specs=[branch_spec(0), branch_spec(1), branch_spec(2), branch_spec(3)],
        out_specs=pl.BlockSpec((1, 1, N), lambda b: (b, 0, 0)),
        compiler_params=pltpu.CompilerParams(
            dimension_semantics=("parallel",),
        ),
        cost_estimate=cost,
    )(feats_all, feats_all, feats_all, feats_all)
    return jnp.mean(log_s)   # mean over B*N values == torch .mean()


# ----------------------------------------------------------------------------
# JAX glue: affine_grid + bilinear grid_sample (align_corners=False, zeros
# padding), matching torch.nn.functional defaults; 3x3 inverse + RNG.
# ----------------------------------------------------------------------------
def affine_grid(theta, H, W):
    # theta: (B, 2, 3) -> grid (B, H, W, 2), grid[...,0]=x, grid[...,1]=y
    xs = (jnp.arange(W, dtype=jnp.float32) * 2.0 + 1.0) / W - 1.0
    ys = (jnp.arange(H, dtype=jnp.float32) * 2.0 + 1.0) / H - 1.0
    X, Y = jnp.meshgrid(xs, ys)                             # (H, W)
    base = jnp.stack([X, Y, jnp.ones_like(X)], axis=-1)     # (H, W, 3)
    return jnp.einsum("hwk,bik->bhwi", base, theta)


def grid_sample(x, grid):
    # x: (B, C, H, W), grid: (B, H, W, 2); bilinear, zeros, align_corners=False
    # TODO(synk): data-dependent bilinear gather stays in JAX (no clean Pallas
    #             TPU equivalent for the HBM gather).
    B, C, H, W = x.shape
    gx, gy = grid[..., 0], grid[..., 1]
    ix = ((gx + 1.0) * W - 1.0) / 2.0
    iy = ((gy + 1.0) * H - 1.0) / 2.0
    ix0 = jnp.floor(ix)
    iy0 = jnp.floor(iy)
    ix1 = ix0 + 1.0
    iy1 = iy0 + 1.0
    wx1 = ix - ix0
    wx0 = 1.0 - wx1
    wy1 = iy - iy0
    wy0 = 1.0 - wy1

    b_idx = jnp.arange(B)[:, None, None]

    def gather(xc, yc):
        valid = (xc >= 0) & (xc <= W - 1) & (yc >= 0) & (yc <= H - 1)
        xcc = jnp.clip(xc, 0, W - 1).astype(jnp.int32)
        ycc = jnp.clip(yc, 0, H - 1).astype(jnp.int32)
        vals = x[b_idx, :, ycc, xcc]                        # (B, H, W, C)
        vals = jnp.where(valid[..., None], vals, 0.0)
        return jnp.moveaxis(vals, -1, 1)                    # (B, C, H, W)

    out = (
        gather(ix0, iy0) * (wx0 * wy0)[:, None]
        + gather(ix1, iy0) * (wx1 * wy0)[:, None]
        + gather(ix0, iy1) * (wx0 * wy1)[:, None]
        + gather(ix1, iy1) * (wx1 * wy1)[:, None]
    )
    return out


def make_warp_grids(key, B, H, W):
    """Random affine forward/backward sampling grids for one warping() call."""
    k_noise, k_flip = jax.random.split(key)
    identity = jnp.eye(3, dtype=jnp.float32)[None]
    mask = jnp.asarray(
        [[1.0, 1.0, 1.0], [1.0, 1.0, 1.0], [0.0, 0.0, 0.0]], dtype=jnp.float32
    )[None]
    noise = jax.random.normal(k_noise, (B, 3, 3), dtype=jnp.float32)
    forward = identity + 0.05 * noise * mask
    backward = jnp.linalg.inv(forward)
    flip = jax.random.uniform(k_flip, ()) < 0.5             # random.random() < 0.5 swap
    fwd = jnp.where(flip, backward, forward)
    bwd = jnp.where(flip, forward, backward)
    return affine_grid(fwd[:, :2], H, W), affine_grid(bwd[:, :2], H, W)


# ----------------------------------------------------------------------------
# Forward pass: all four warp branches are batched (B_eff = 4B) so the conv
# kernel and both grid_samples each run exactly once.
# ----------------------------------------------------------------------------
@jax.jit
def fmap_model_warping_forward(input_a, input_b, w_fc, b_f, key):
    B, C, H, W = input_a.shape
    keys = jax.random.split(key, 4)

    fwd_grids, bwd_grids = [], []
    for k in keys:
        fg, bg = make_warp_grids(k, B, H, W)
        fwd_grids.append(fg)
        bwd_grids.append(bg)
    fwd_grids = jnp.concatenate(fwd_grids, axis=0)          # (4B, H, W, 2)
    bwd_grids = jnp.concatenate(bwd_grids, axis=0)          # (4B, H, W, 2)

    # Branch order: [a_h, b_h, a_v, b_v]
    stacked = jnp.concatenate([input_a, input_b, input_a, input_b], axis=0)

    warped_in = grid_sample(stacked, fwd_grids)             # (4B, C, H, W)
    net_out = conv1x1_apply(warped_in, w_fc, b_f)           # (4B, F, H, W)  Pallas
    unwarped = grid_sample(net_out, bwd_grids)              # (4B, F, H, W)

    F = net_out.shape[1]
    feats_all = unwarped.reshape(4 * B, F, H * W)           # channels-first (F, N)
    return fmap_loss(feats_all, B)                          # Pallas


if __name__ == "__main__":
    # Small shapes consistent with the module: B=2, C_in=4, H=W=16,
    # feature_length=32 (N = H*W = 256 pixel tokens).
    B, C_IN, H, W = 2, 4, 16, 16
    FEATURE_LENGTH = 32

    root = jax.random.PRNGKey(0)
    k_a, k_b, k_w, k_bias, k_warp = jax.random.split(root, 5)

    input_a = jax.random.normal(k_a, (B, C_IN, H, W), dtype=jnp.float32)
    input_b = jax.random.normal(k_b, (B, C_IN, H, W), dtype=jnp.float32)

    # Deterministic synthetic net params: 1x1 conv C_IN -> FEATURE_LENGTH,
    # stored channels-first (F, Cin) — the layout the kernel wants.
    w = jax.random.normal(k_w, (FEATURE_LENGTH, C_IN), dtype=jnp.float32) * (
        2.0 / C_IN
    ) ** 0.5
    bias = jax.random.normal(k_bias, (FEATURE_LENGTH,), dtype=jnp.float32) * 0.01

    loss = fmap_model_warping_forward(input_a, input_b, w, bias, k_warp)
    jax.block_until_ready(loss)
    assert loss.shape == () and bool(jnp.isfinite(loss))
    print("KERNEL_OK")
</pallas_src>

<mosaic_0001>
module attributes {stable_mosaic.version = 11 : i64} {
  func.func @_conv1x1_kernel(%arg0: i32, %arg1: i32, %arg2: memref<1x4x256xf32, #tpu.memory_space<vmem>>, %arg3: memref<32x4xf32, #tpu.memory_space<vmem>>, %arg4: memref<32x1xf32, #tpu.memory_space<vmem>>, %arg5: memref<1x32x256xf32, #tpu.memory_space<vmem>>) attributes {dimension_semantics = [#tpu.dimension_semantics<parallel>, #tpu.dimension_semantics<parallel>], iteration_bounds = array<i64: 8, 1>, scalar_prefetch = 0 : i64, scratch_operands = 0 : i64, tpu.core_type = #tpu.core_type<tc>, window_params = [{transform_indices = @transform_0, window_bounds = array<i64: 1, 4, 256>}, {pipeline_mode = #tpu.pipeline_mode<synchronous>, transform_indices = @transform_1, window_bounds = array<i64: 32, 4>}, {pipeline_mode = #tpu.pipeline_mode<synchronous>, transform_indices = @transform_2, window_bounds = array<i64: 32, 1>}, {transform_indices = @transform_3, window_bounds = array<i64: 1, 32, 256>}]} {
    %c0 = arith.constant 0 : index
    %c0_0 = arith.constant 0 : index
    %0 = vector.load %arg3[%c0, %c0_0] : memref<32x4xf32, #tpu.memory_space<vmem>>, vector<32x4xf32>
    %c0_1 = arith.constant 0 : index
    %c0_2 = arith.constant 0 : index
    %c0_3 = arith.constant 0 : index
    %1 = vector.load %arg2[%c0_1, %c0_2, %c0_3] : memref<1x4x256xf32, #tpu.memory_space<vmem>>, vector<1x4x256xf32>
    %2 = vector.shape_cast %1 : vector<1x4x256xf32> to vector<4x256xf32>
    %cst = arith.constant dense<0.000000e+00> : vector<32x256xf32>
    %3 = tpu.matmul %0, %2, %cst {dimension_numbers = #tpu.dot_dimension_numbers<[1], [0], [0], [1], [0, 0, 1, 1], [], []>} : vector<32x4xf32>, vector<4x256xf32>, vector<32x256xf32> -> vector<32x256xf32>
    %c0_4 = arith.constant 0 : index
    %c0_5 = arith.constant 0 : index
    %4 = vector.load %arg4[%c0_4, %c0_5] : memref<32x1xf32, #tpu.memory_space<vmem>>, vector<32x1xf32>
    %5 = vector.broadcast %4 : vector<32x1xf32> to vector<32x256xf32>
    %6 = arith.addf %3, %5 : vector<32x256xf32>
    %c0_6 = arith.constant 0 : index
    %c0_7 = arith.constant 0 : index
    %c0_8 = arith.constant 0 : index
    %7 = vector.load %arg5[%c0_6, %c0_7, %c0_8] : memref<1x32x256xf32, #tpu.memory_space<vmem>>, vector<1x32x256xf32>
    %8 = vector.shape_cast %7 : vector<1x32x256xf32> to vector<32x256xf32>
    %9 = vector.shape_cast %6 : vector<32x256xf32> to vector<1x32x256xf32>
    tpu.vector_store %arg5[%c0_6, %c0_7, %c0_8], %9 {strides = array<i32>} : memref<1x32x256xf32, #tpu.memory_space<vmem>>, vector<1x32x256xf32>,
    return
  }
  func.func @transform_0(%arg0: i32, %arg1: i32) -> (i32, i32, i32) {
    %c0_i32 = arith.constant 0 : i32
    %c0_i32_0 = arith.constant 0 : i32
    return %arg0, %c0_i32, %arg1 : i32, i32, i32
  }
  func.func @transform_1(%arg0: i32, %arg1: i32) -> (i32, i32) {
    %c0_i32 = arith.constant 0 : i32
    %c0_i32_0 = arith.constant 0 : i32
    %c0_i32_1 = arith.constant 0 : i32
    return %c0_i32, %c0_i32_0 : i32, i32
  }
  func.func @transform_2(%arg0: i32, %arg1: i32) -> (i32, i32) {
    %c0_i32 = arith.constant 0 : i32
    %c0_i32_0 = arith.constant 0 : i32
    %c0_i32_1 = arith.constant 0 : i32
    return %c0_i32, %c0_i32_0 : i32, i32
  }
  func.func @transform_3(%arg0: i32, %arg1: i32) -> (i32, i32, i32) {
    %c0_i32 = arith.constant 0 : i32
    %c0_i32_0 = arith.constant 0 : i32
    return %arg0, %c0_i32, %arg1 : i32, i32, i32
  }
}

module attributes {stable_mosaic.version = 11 : i64} {
  func.func @_fmap_loss_kernel(%arg0: i32, %arg1: memref<1x32x256xf32, #tpu.memory_space<vmem>>, %arg2: memref<1x32x256xf32, #tpu.memory_space<vmem>>, %arg3: memref<1x32x256xf32, #tpu.memory_space<vmem>>, %arg4: memref<1x32x256xf32, #tpu.memory_space<vmem>>, %arg5: memref<1x1x256xf32, #tpu.memory_space<vmem>>) attributes {dimension_semantics = [#tpu.dimension_semantics<parallel>], iteration_bounds = array<i64: 2>, scalar_prefetch = 0 : i64, scratch_operands = 0 : i64, tpu.core_type = #tpu.core_type<tc>, window_params = [{transform_indices = @transform_0, window_bounds = array<i64: 1, 32, 256>}, {transform_indices = @transform_1, window_bounds = array<i64: 1, 32, 256>}, {transform_indices = @transform_2, window_bounds = array<i64: 1, 32, 256>}, {transform_indices = @transform_3, window_bounds = array<i64: 1, 32, 256>}, {transform_indices = @transform_4, window_bounds = array<i64: 1, 1, 256>}]} {
    %c0 = arith.constant 0 : index
    %c0_0 = arith.constant 0 : index
    %c0_1 = arith.constant 0 : index
    %0 = vector.load %arg1[%c0, %c0_0, %c0_1] : memref<1x32x256xf32, #tpu.memory_space<vmem>>, vector<1x32x256xf32>
    %1 = vector.shape_cast %0 : vector<1x32x256xf32> to vector<32x256xf32>
    %2 = tpu.transpose %1, [1, 0] : vector<32x256xf32> -> vector<256x32xf32>
    %3 = arith.truncf %2 : vector<256x32xf32> to vector<256x32xbf16>
    %c0_2 = arith.constant 0 : index
    %c0_3 = arith.constant 0 : index
    %c0_4 = arith.constant 0 : index
    %4 = vector.load %arg2[%c0_2, %c0_3, %c0_4] : memref<1x32x256xf32, #tpu.memory_space<vmem>>, vector<1x32x256xf32>
    %5 = vector.shape_cast %4 : vector<1x32x256xf32> to vector<32x256xf32>
    %6 = arith.truncf %5 : vector<32x256xf32> to vector<32x256xbf16>
    %cst = arith.constant dense<0.000000e+00> : vector<256x256xf32>
    %7 = tpu.matmul %3, %6, %cst {dimension_numbers = #tpu.dot_dimension_numbers<[1], [0], [0], [1], [0, 0, 1, 1], [], []>} : vector<256x32xbf16>, vector<32x256xbf16>, vector<256x256xf32> -> vector<256x256xf32>
    %c0_5 = arith.constant 0 : index
    %c0_6 = arith.constant 0 : index
    %c0_7 = arith.constant 0 : index
    %8 = vector.load %arg3[%c0_5, %c0_6, %c0_7] : memref<1x32x256xf32, #tpu.memory_space<vmem>>, vector<1x32x256xf32>
    %9 = vector.shape_cast %8 : vector<1x32x256xf32> to vector<32x256xf32>
    %10 = tpu.transpose %9, [1, 0] : vector<32x256xf32> -> vector<256x32xf32>
    %11 = arith.truncf %10 : vector<256x32xf32> to vector<256x32xbf16>
    %c0_8 = arith.constant 0 : index
    %c0_9 = arith.constant 0 : index
    %c0_10 = arith.constant 0 : index
    %12 = vector.load %arg4[%c0_8, %c0_9, %c0_10] : memref<1x32x256xf32, #tpu.memory_space<vmem>>, vector<1x32x256xf32>
    %13 = vector.shape_cast %12 : vector<1x32x256xf32> to vector<32x256xf32>
    %14 = arith.truncf %13 : vector<32x256xf32> to vector<32x256xbf16>
    %cst_11 = arith.constant dense<0.000000e+00> : vector<256x256xf32>
    %15 = tpu.matmul %11, %14, %cst_11 {dimension_numbers = #tpu.dot_dimension_numbers<[1], [0], [0], [1], [0, 0, 1, 1], [], []>} : vector<256x32xbf16>, vector<32x256xbf16>, vector<256x256xf32> -> vector<256x256xf32>
    %cst_12 = arith.constant dense<0xFF800000> : vector<256xf32>
    %16 = vector.multi_reduction <maximumf>, %7, %cst_12 [1] : vector<256x256xf32> to vector<256xf32>
    %17 = vector.shape_cast %16 : vector<256xf32> to vector<256x1xf32>
    %cst_13 = arith.constant dense<0xFF800000> : vector<256xf32>
    %18 = vector.multi_reduction <maximumf>, %15, %cst_13 [0] : vector<256x256xf32> to vector<256xf32>
    %19 = vector.shape_cast %18 : vector<256xf32> to vector<1x256xf32>
    %20 = vector.broadcast %17 : vector<256x1xf32> to vector<256x256xf32>
    %21 = arith.subf %7, %20 : vector<256x256xf32>
    %22 = math.exp %21 : vector<256x256xf32>
    %23 = vector.broadcast %19 : vector<1x256xf32> to vector<256x256xf32>
    %24 = arith.subf %15, %23 : vector<256x256xf32>
    %25 = math.exp %24 : vector<256x256xf32>
    %cst_14 = arith.constant dense<0.000000e+00> : vector<256xf32>
    %26 = vector.multi_reduction <add>, %22, %cst_14 [1] : vector<256x256xf32> to vector<256xf32>
    %27 = vector.shape_cast %26 : vector<256xf32> to vector<256x1xf32>
    %cst_15 = arith.constant 9.99999974E-5 : f32
    %28 = vector.broadcast %cst_15 : f32 to vector<256x1xf32>
    %29 = arith.addf %27, %28 : vector<256x1xf32>
    %30 = tpu.reciprocal %29 {approx = true} : vector<256x1xf32> -> vector<256x1xf32>
    %cst_16 = arith.constant dense<0.000000e+00> : vector<256xf32>
    %31 = vector.multi_reduction <add>, %25, %cst_16 [0] : vector<256x256xf32> to vector<256xf32>
    %32 = vector.shape_cast %31 : vector<256xf32> to vector<1x256xf32>
    %cst_17 = arith.constant 9.99999974E-5 : f32
    %33 = vector.broadcast %cst_17 : f32 to vector<1x256xf32>
    %34 = arith.addf %32, %33 : vector<1x256xf32>
    %35 = tpu.reciprocal %34 {approx = true} : vector<1x256xf32> -> vector<1x256xf32>
    %36 = vector.broadcast %30 : vector<256x1xf32> to vector<256x256xf32>
    %37 = arith.mulf %22, %36 : vector<256x256xf32>
    %38 = arith.mulf %25, %37 : vector<256x256xf32>
    %cst_18 = arith.constant dense<0.000000e+00> : vector<256xf32>
    %39 = vector.multi_reduction <add>, %38, %cst_18 [0] : vector<256x256xf32> to vector<256xf32>
    %40 = vector.shape_cast %39 : vector<256xf32> to vector<1x256xf32>
    %41 = arith.mulf %40, %35 : vector<1x256xf32>
    %cst_19 = arith.constant 9.99999974E-5 : f32
    %42 = vector.broadcast %cst_19 : f32 to vector<1x256xf32>
    %43 = arith.addf %41, %42 : vector<1x256xf32>
    %44 = math.log %43 : vector<1x256xf32>
    %c0_20 = arith.constant 0 : index
    %c0_21 = arith.constant 0 : index
    %c0_22 = arith.constant 0 : index
    %45 = vector.load %arg5[%c0_20, %c0_21, %c0_22] : memref<1x1x256xf32, #tpu.memory_space<vmem>>, vector<1x1x256xf32>
    %46 = vector.shape_cast %45 : vector<1x1x256xf32> to vector<1x256xf32>
    %47 = vector.shape_cast %44 : vector<1x256xf32> to vector<1x1x256xf32>
    tpu.vector_store %arg5[%c0_20, %c0_21, %c0_22], %47 {strides = array<i32>} : memref<1x1x256xf32, #tpu.memory_space<vmem>>, vector<1x1x256xf32>,
    return
  }
  func.func @transform_0(%arg0: i32) -> (i32, i32, i32) {
    %c0_i32 = arith.constant 0 : i32
    %0 = arith.addi %c0_i32, %arg0 : i32
    %c0_i32_0 = arith.constant 0 : i32
    %c0_i32_1 = arith.constant 0 : i32
    %c0_i32_2 = arith.constant 0 : i32
    return %0, %c0_i32_0, %c0_i32_1 : i32, i32, i32
  }
  func.func @transform_1(%arg0: i32) -> (i32, i32, i32) {
    %c2_i32 = arith.constant 2 : i32
    %0 = arith.addi %c2_i32, %arg0 : i32
    %c0_i32 = arith.constant 0 : i32
    %c0_i32_0 = arith.constant 0 : i32
    %c0_i32_1 = arith.constant 0 : i32
    return %0, %c0_i32, %c0_i32_0 : i32, i32, i32
  }
  func.func @transform_2(%arg0: i32) -> (i32, i32, i32) {
    %c4_i32 = arith.constant 4 : i32
    %0 = arith.addi %c4_i32, %arg0 : i32
    %c0_i32 = arith.constant 0 : i32
    %c0_i32_0 = arith.constant 0 : i32
    %c0_i32_1 = arith.constant 0 : i32
    return %0, %c0_i32, %c0_i32_0 : i32, i32, i32
  }
  func.func @transform_3(%arg0: i32) -> (i32, i32, i32) {
    %c6_i32 = arith.constant 6 : i32
    %0 = arith.addi %c6_i32, %arg0 : i32
    %c0_i32 = arith.constant 0 : i32
    %c0_i32_0 = arith.constant 0 : i32
    %c0_i32_1 = arith.constant 0 : i32
    return %0, %c0_i32, %c0_i32_0 : i32, i32, i32
  }
  func.func @transform_4(%arg0: i32) -> (i32, i32, i32) {
    %c0_i32 = arith.constant 0 : i32
    %c0_i32_0 = arith.constant 0 : i32
    %c0_i32_1 = arith.constant 0 : i32
    return %arg0, %c0_i32, %c0_i32_0 : i32, i32, i32
  }
}

</mosaic_0001>

<bundles_post_ra>
// kernel: custom-call.49
= control target key start
LH: loop header
LB: loop body
LE: loop exit
PB: predicated region body
PF: predicated region fallthrough
CT: control target
= control target key end

     0   :  { %5 = vsyncpa [#allocation6], 0  ;;  %s909_s0 = inlined_call_operand.vmem [shape: f32[2,3,3], index: 0, kind: input, shape index: {}]   ;;  %s910_s1 = inlined_call_operand.vmem [shape: f32[2,3,3], index: 1, kind: output, shape index: {0}]   ;;  %s911_s2 = inlined_call_operand.hbm [shape: s32[2,3], index: 2, kind: output, shape index: {1}]   ;;  %s912_s3 = inlined_call_operand.vmem [shape: s32[2,3], index: 3, kind: output, shape index: {2}]  }
   0x1   :  { %7 = vsyncpa [#allocation6 + $0x1], 0  ;;  %s726_s12 = smov 0   ;;  %s728_s13 = smov 0  }
   0x2   :  { %s730_s14 = smov 0   ;;  %s732_s15 = smov 0  }
   0x3 LB: > { %s747_s16 = sadd.s32 4294967295, %s698_s15   ;;  %s563_s17 = sadd.s32 4294967294, %s698_s15   ;;  %s698_s15 = sphi %s732_s15, %s920_s15   ;;  %s694_s14 = sphi %s730_s14, %s919_s14   ;;  %s690_s13 = sphi %s728_s13, %s918_s13   ;;  %s686_s12 = sphi %s726_s12, %s917_s12  }
   0x4   : > { %s751_s18 = sadd.s32 1, %s698_s15   ;;  %s17_s19 = sshrl.u32 %s698_s15, 3 }
   0x5   : > { %s18_s20 = sshrl.u32 %s751_s18, 3  ;;  %s22_s21 = sadd.s32 1, %s694_s14 }
   0x6   : > { %s19_s22 = ssub.s32 %s17_s19, %s18_s20  ;;  %p32_p0 = scmp.ne.s32.totalorder %s694_s14, %s690_s13 }
   0x7   : > { %p20_p1 = scmp.eq.s32.totalorder %s19_s22, 0  ;;  %p33_p2 = scmp.eq.s32.totalorder %s747_s16, 1 }
   0x8   : > { %p38_p3 = scmp.ne.s32.totalorder %s690_s13, %s686_s12  ;;  %p39_p4 = scmp.eq.s32.totalorder %s563_s17, 1 }
   0x9   : > { %s762_s23 = scalar_select %p20_p1, %s694_s14, %s22_s21  }
   0xa   : > { %p764_p5 = por %p33_p2, %p32_p0  ;;  %p768_p6 = por %p39_p4, %p38_p3 }
   0xb   : > { %p565_p7 = scmp.ge.s32.totalorder %s698_s15, 2 }
   0xc   : > { %s85_s26 = sand.u32 (!%p565_p7), 1, %s698_s15   ;;  %s567_s27 = sshll.u32 (!%p565_p7), %s698_s15, 2 }
   0xd   : > { %83 = sbr.rel (%p565_p7) target bundleno = 20 (0x14), region = 16  ;;  %s566_s28 = sshll.u32 (!%p565_p7), %s85_s26, 2 }
   0xe   : > { %s89_s4 = scalar_lea.vmem (!%p565_p7), %s909_s0, %s567_s27  ;;  %s87_s5 = scalar_lea.vmem (!%p565_p7), [#allocation1], %s566_s28 }
  0x12   : > { %v106_v0 = vld [vmem:[%s89_s4] sm:$0xf] }
  0x13   : > { %107 = vst [vmem:[%s87_s5] sm:$0xf] %v106_v0 }
  0x14 PF: > { %p568_p8 = scmp.ge.s32.totalorder %s698_s15, 1  ;;  %p124_p9 = scmp.lt.s32.totalorder %s698_s15, 3 }
  0x16   : > { %p125_p10 = pnand %p568_p8, %p124_p9 }
  0x18   : > { %128 = sbr.rel (%p125_p10) target bundleno = 446 (0x1be), region = 50 }
  0x1d   : > { %s135_s6 = sand.u32 1, %s747_s16   ;;  %s146_s7 = sand.u32 1, %s690_s13   ;;  %v169_v1 = vlaneseq  ;;  %v704_v4 = vmov 0  }
  0x1e   : > { %s784_s8 = sshll.u32 %s135_s6, 2  ;;  %s788_s9 = sshll.u32 %s146_s7, 1 }
  0x1f   : > { %v791_v2 = vshrl.u32 %v169_v1, 7  ;;  %s137_s10 = scalar_lea.vmem [#allocation1], %s784_s8  ;;  %s164_s11 = sand.u32 7, %s747_s16  }
  0x20   : > { %v158_v3 = vld [vmem:[%s137_s10] sm:$0xf]  ;;  %s796_s17 = scalar_lea.vmem [#allocation4], %s164_s11  ;;  %s141_s19 = scalar_lea.vmem [#allocation3], %s784_s8 }
  0x21   : > { %159 = vst [vmem:[#allocation0] sm:$0xf] %v158_v3  ;;  %173 = vst [vmem:[#allocation9] sm:$0xff] %v791_v2  ;;  %s148_s20 = scalar_lea.vmem [#allocation5], %s788_s9  ;;  %s154_s21 = scalar_lea.vmem [#allocation8], %s788_s9 }
  0x22   : > { %168 = vst [vmem:[%s796_s17] sm:$0x1] %v704_v4  ;;  %s802_s22 = scalar_lea.vmem [#allocation7], %s164_s11  ;;  %s804_s26 = smov 0  }
  0x28   : > { %v162_v5 = vld [vmem:[#allocation0] sm:$0xff] }
  0x29   : > { %163 = vst [vmem:[#allocation2] sm:$0xff] %v162_v5 }
  0x2a LB: >> { %vm189_vm0 = vcmp.lt.s32.totalorder %v791_v2, 3  ;;  %v811_v8 = vstv %s702_s26  ;;  %s230_s27 = ssub.s32 128, %s702_s26  ;;  %v236_v38 = vand.u32 127, %v169_v1  ;;  %v239_v40 = vld [vmem:[%s796_s17] ss:$0 sm:$0xff]  ;;  %s242_s28 = scalar_lea.vmem [#allocation2], %s702_s26  ;;  %s702_s26 = sphi %s804_s26, %s179_s26  }
  0x2b   : >> { %vm188_vm1 = vcmp.ge.s32.totalorder %v791_v2, %v811_v8  ;;  %s248_s30 = scalar_lea.vmem [#allocation9], %s702_s26  ;;  %vm268_vm15 = vcmp.gt.s32.totalorder %v791_v2, %v811_v8  ;;  %s179_s26 = sadd.s32 1, %s702_s26  }
  0x2c   : >> { %vm190_vm3 = vmand %vm188_vm1, %vm189_vm0  ;;  %vm260_vm12 = vcmp.gt.s32.totalorder %v236_v38, %v811_v8  ;;  %vm237_vm13 = vcmp.eq.s32.totalorder %v236_v38, %v811_v8  ;;  %v250_v42 = vld [vmem:[%s248_s30] ss:$0 sm:$0xff]  ;;  %p176_p11 = scmp.ge.s32.totalorder %s179_s26, 3  }
  0x2d   : >> { %vm272_vm1 = vmand %vm268_vm15, %vm237_vm13  ;;  %s913_s6 = sshrl.u32 (%p176_p11), %s747_s16, 3  ;;  %s577_s10 = sshll.u32 (%p176_p11), %s747_s16, 2 }
  0x2e   : > { %s578_s11 = sshll.u32 (%p176_p11), %s913_s6, 5 }
  0x30   : >> { %v184_v6 = vld [vmem:[#allocation2] sm:$0xff]  ;;  %v244_v41 = vld [vmem:[%s242_s28] ss:$0 sm:$0xff] }
  0x31   : >> { %v185_v7 = vand.u32 2147483647, %v184_v6 }
  0x33   : >> { %vm573_vm2 = vcmp.gt.f32.partialorder %v185_v7, -inf }
  0x34   : >> { %vm192_vm4 = vmand %vm190_vm3, %vm573_vm2 }
  0x35   : >> { %v193_v9 = vsel %vm192_vm4, %v791_v2, %v811_v8  ;;  %v194_v10 = vsel %vm192_vm4, %v185_v7, -inf }
  0x36   : >> { %v195_v11 = vrot.slane %v194_v10, 1  ;;  %v196_v12 = vrot.slane %v193_v9, 1 }
  0x38   : >> { %vm197_vm5 = vcmp.ge.f32.partialorder %v195_v11, %v194_v10  ;;  %v200_v13 = vrot.slane %v195_v11, 1  ;;  %v201_v14 = vrot.slane %v196_v12, 1 }
  0x39   : >> { %v198_v15 = vsel %vm197_vm5, %v195_v11, %v194_v10  ;;  %v199_v16 = vsel %vm197_vm5, %v196_v12, %v193_v9 }
  0x3a   : >> { %vm202_vm6 = vcmp.ge.f32.partialorder %v200_v13, %v198_v15  ;;  %v205_v17 = vrot.slane %v200_v13, 1  ;;  %v206_v18 = vrot.slane %v201_v14, 1 }
  0x3b   : >> { %v203_v19 = vsel %vm202_vm6, %v200_v13, %v198_v15  ;;  %v204_v20 = vsel %vm202_vm6, %v201_v14, %v199_v16 }
  0x3c   : >> { %vm207_vm7 = vcmp.ge.f32.partialorder %v205_v17, %v203_v19  ;;  %v210_v21 = vrot.slane %v205_v17, 1  ;;  %v211_v22 = vrot.slane %v206_v18, 1 }
  0x3d   : >> { %v208_v23 = vsel %vm207_vm7, %v205_v17, %v203_v19  ;;  %v209_v24 = vsel %vm207_vm7, %v206_v18, %v204_v20 }
  0x3e   : >> { %vm212_vm8 = vcmp.ge.f32.partialorder %v210_v21, %v208_v23  ;;  %v215_v25 = vrot.slane %v210_v21, 1  ;;  %v216_v26 = vrot.slane %v211_v22, 1 }
  0x3f   : >> { %v213_v27 = vsel %vm212_vm8, %v210_v21, %v208_v23  ;;  %v214_v28 = vsel %vm212_vm8, %v211_v22, %v209_v24 }
  0x40   : >> { %vm217_vm9 = vcmp.ge.f32.partialorder %v215_v25, %v213_v27  ;;  %v220_v29 = vrot.slane %v215_v25, 1  ;;  %v221_v30 = vrot.slane %v216_v26, 1 }
  0x41   : >> { %v218_v31 = vsel %vm217_vm9, %v215_v25, %v213_v27  ;;  %v219_v32 = vsel %vm217_vm9, %v216_v26, %v214_v28 }
  0x42   : >> { %vm222_vm10 = vcmp.ge.f32.partialorder %v220_v29, %v218_v31  ;;  %v225_v33 = vrot.slane %v220_v29, 1  ;;  %v226_v34 = vrot.slane %v221_v30, 1 }
  0x43   : >> { %v223_v35 = vsel %vm222_vm10, %v220_v29, %v218_v31  ;;  %v224_v36 = vsel %vm222_vm10, %v221_v30, %v219_v32 }
  0x44   : >> { %vm227_vm11 = vcmp.ge.f32.partialorder %v225_v33, %v223_v35 }
  0x45   : >> { %v229_v37 = vsel %vm227_vm11, %v226_v34, %v224_v36 }
  0x46   : >> { %231 = vrot.lane.b32.xlu0 %v229_v37, %s230_s27  ;;  %s849_s27 = scalar_lea.vmem (%p176_p11), %s910_s1, %s577_s10 }
  0xb8   : >> { %v232_v39 = vpop.permute.xlu0 %231 }
  0xb9   : >> { %582 = vpush %v232_v39 }
  0xea   : >> { %s583_s29 = spop %582 }
  0xeb   : >> { %v238_v43 = vstv %s583_s29  ;;  %s243_s4 = scalar_lea.vmem [#allocation2], %s583_s29  ;;  %s249_s5 = scalar_lea.vmem [#allocation9], %s583_s29 }
  0xec   : >> { %v245_v44 = vld [vmem:[%s243_s4] ss:$0 sm:$0xff]  ;;  %v240_v46 = vsel %vm237_vm13, %v238_v43, %v239_v40 }
  0xed   : >> { %v251_v45 = vld [vmem:[%s249_s5] ss:$0 sm:$0xff]  ;;  %246 = vst [vmem:[%s243_s4] sm:$0x1] %v244_v41  ;;  %vm254_vm14 = vcmp.ne.f32.partialorder %v245_v44, 0.0  ;;  %241 = vst [vmem:[%s796_s17] sm:$0x1] %v240_v46  ;;  %v261_v53 = vsel %vm260_vm12, %v245_v44, 0.0 }
  0xee   : >> { %252 = vst [vmem:[%s249_s5] sm:$0x1] %v250_v42  ;;  %247 = vst [vmem:[%s242_s28] sm:$0x1] %v245_v44  ;;  %s410_s4 = sshll.u32 (%p176_p11), %s148_s20, 4  ;;  %s357_s5 = scalar_lea.sflag (%p176_p11), [#allocation6], %s146_s7  ;;  %s411_s4 = int_to_ptr.vmem [resolvable:$true] %s410_s4 }
  0xef   : >> { %253 = vst [vmem:[%s248_s30] sm:$0x1] %v251_v45  ;;  %vm255_vm0 = vmand %vm237_vm13, %vm254_vm14  ;;  %s854_s30 = scalar_lea.hbm (%p176_p11), %s911_s2, %s578_s11  ;;  %s634_s6 = scalar_lea.vmem (%p176_p11), %s411_s4, 32 }
  0xf0   : >> { %v256_v47 = vsel %vm255_vm0, %v245_v44, 1.0  ;;  %p635_p12 = scmp.ne.s32.totalorder (%p176_p11), %s411_s4, %s634_s6  ;;  %s705_s17 = smov (%p176_p11), [#allocation5]  }
  0xf1   : >> { %v269_v48 = vsel %vm268_vm15, %v256_v47, 1.0  ;;  %s638_s10 = sshll.u32 (%p176_p11), %s705_s17, 4  ;;  %s639_s10 = int_to_ptr.vmem [resolvable:$false] %s638_s10 }
  0xf2   : >> { %632 = vrcp.f32 %v269_v48  ;;  %p636_p13 = pnand (%p176_p11), %p635_p12, %p764_p5  ;;  %s640_s26 = scalar_lea.vmem (%p176_p11), %s639_s10, 64 }
  0xf3   : > { %p641_p1 = scmp.lt.s32.totalorder (%p176_p11), %s411_s4, %s639_s10  ;;  %p642_p2 = scmp.lt.s32.totalorder (%p176_p11), %s640_s26, %s634_s6 }
  0xf4   : > { %v340_v59 = vld [vmem:[#allocation4] sm:$0x3] (%p176_p11)  ;;  %p637_p0 = pneg (%p176_p11), %p636_p13 }
  0xf5   : >> { %v265_v50 = vld [vmem:[#allocation2] sm:$0xff]  ;;  %343 = vst [vmem:[%s148_s20] sm:$0x3] (%p176_p11), %v340_v59  ;;  %p643_p3 = por (%p176_p11), %p642_p2, %p641_p1 }
  0xf6   : > { %v279_v57 = vld [vmem:[#allocation9] sm:$0xff] (%p176_p11) }
  0xf7   : > { %p644_p4 = pnand (%p176_p11), %p643_p3, %p637_p0 }
  0xff   : >> { %v633_v49 = vpop.eup %632 }
 0x100   : >> { %v271_v51 = vmul.f32 %v633_v49, %v265_v50 }
 0x102   : >> { %v273_v52 = vsel %vm272_vm1, %v271_v51, 0.0 }
 0x103   : >> { %274 = vadd.xlane.f32.xlu0 %v273_v52 }
 0x130   : > { %295 = vxpose.xlu0.b32.start.end [1/1] (short) (narrow) (%p176_p11), %v279_v57, 8 }
 0x18c   : >> { %v275_v54 = vpop.xlane.xlu0 %274 }
 0x18d   : >> { %v276_v55 = vmul.f32 %v275_v54, %v261_v53  ;;  %178 = sbr.rel (!%p176_p11) target bundleno = 42 (0x2a), region = 202 }
 0x18f   : >> { %v277_v56 = vsub.f32 %v271_v51, %v276_v55 }
 0x191   : >> { %278 = vst [vmem:[#allocation2] sm:$0xff] %v277_v56 }
 0x198   : > { %v332_v58 = vld [vmem:[#allocation2] sm:$0xf] }
 0x199   : > { %335 = vst [vmem:[%s141_s19] sm:$0xf] %v332_v58 }
 0x1a0   : > { %v383_v60 = vld [vmem:[%s141_s19] sm:$0xf] }
 0x1a1   : > { %647 = shalt.err (!%p644_p4)
}
 0x1a2   : > { %s648_s8 = scalar_lea.hbm %s854_s30, 32  ;;  %s652_s20 = scalar_lea.hbm %s911_s2, 32 }
 0x1a3   : > { %p649_p8 = scmp.ne.s32.totalorder %s854_s30, %s648_s8  ;;  %p653_p11 = scmp.lt.s32.totalorder %s854_s30, %s911_s2 }
 0x1a4   : > { %p654_p12 = scmp.lt.s32.totalorder %s652_s20, %s648_s8 }
 0x1a5   : > { %p650_p9 = pnand %p649_p8, %p764_p5 }
 0x1a6   : > { %p655_p13 = por %p654_p12, %p653_p11 }
 0x1a7   : > { %p651_p10 = pneg %p650_p9 }
 0x1a9   : > { %p656_p0 = pnand %p655_p13, %p651_p10 }
 0x1ab   : > { %659 = shalt.err (!%p656_p0)
}
 0x1ac   : > { %584 = dma.vmem_to_hbm [thread:$0]  (%p764_p5), %s411_s4, 32, %s854_s30, %s357_s5   ;;  %384 = vst [vmem:[%s849_s27] sm:$0xf] %v383_v60  ;;  %v311_v61 = vpop.trf.xlu0 }
 0x1ad   : > { %327 = vst [vmem:[%s802_s22] sm:$0x1] %v311_v61  ;;  %s916_s6 = sshrl.u32 (%p764_p5), %s747_s16, 3 }
 0x1ae   : > { %s579_s29 = sshll.u32 (%p764_p5), %s916_s6, 1 }
 0x1af   : > { %s419_s26 = scalar_lea.vmem (%p764_p5), %s912_s3, %s579_s29 }
 0x1b1   : > { %416 = sbr.rel (!%p764_p5) target bundleno = 446 (0x1be), region = 96 }
 0x1b4   : > { %v348_v62 = vld [vmem:[#allocation7] sm:$0x3] }
 0x1b5   : > { %351 = vst [vmem:[%s154_s21] sm:$0x3] %v348_v62 }
 0x1bc   : > { %v436_v63 = vld [vmem:[%s154_s21] sm:$0x3] }
 0x1bd   : > { %437 = vst [vmem:[%s419_s26] sm:$0x3] %v436_v63 }
 0x1be PF: > { %s465_s22 = sand.u32 1, %s686_s12   ;;  %p587_p5 = pnand %p565_p7, %p768_p6 }
 0x1bf   : > { %s466_s16 = scalar_lea.sflag [#allocation6], %s465_s22 }
 0x1c0   : > { %p588_p1 = pneg %p587_p5 }
 0x1c2   : > { %681 = dma.done.wait (%p588_p1), %s466_s16, 32  }
 0x1c3   : > { %683 = vsyncadd (%p588_p1), %s466_s16, 4294967264  ;;  %p10_p2 = scmp.ge.s32.totalorder %s751_s18, 4   ;;  %s917_s12 = smov %s690_s13 }
 0x1c4   : > { %s918_s13 = smov %s694_s14  ;;  %s919_s14 = smov %s762_s23 }
 0x1c5   : > { %s920_s15 = smov %s751_s18  ;;  %12 = sbr.rel (!%p10_p2) target bundleno = 3 (0x3), region = 213 }
 0x1ca   :  { %478 = vsyncpa [#allocation6], 1 }
 0x1cb   :  { %480 = vsyncpa [#allocation6 + $0x1], 1 }

// kernel: custom-call.46
= control target key start
LH: loop header
LB: loop body
LE: loop exit
PB: predicated region body
PF: predicated region fallthrough
CT: control target
= control target key end

     0   :  { %s350_s6 = smov 0   ;;  %s352_s7 = smov 0   ;;  %s397_s0 = inlined_call_operand.vmem [shape: f32[2,1,3,3], index: 0, kind: input, shape index: {}]   ;;  %s398_s1 = inlined_call_operand.vmem [shape: f32[2,1,3,3], index: 1, kind: output, shape index: {}]  }
   0x1   :  { %s354_s8 = smov 0  }
   0x2 LB: > { %s276_s9 = sadd.s32 4294967295, %s337_s8   ;;  %s33_s10 = sadd.s32 1, %s333_s7  ;;  %s337_s8 = sphi %s354_s8, %s7_s8   ;;  %s333_s7 = sphi %s352_s7, %s400_s7   ;;  %s329_s6 = sphi %s350_s6, %s399_s6  }
   0x3   : > { %p35_p0 = scmp.ge.s32.totalorder %s33_s10, 2  ;;  %p278_p1 = scmp.ge.s32.totalorder %s337_s8, 2 }
   0x4   : > { %s49_s11 = sand.u32 (!%p278_p1), 1, %s337_s8   ;;  %s280_s12 = sshll.u32 (!%p278_p1), %s333_s7, 2 }
   0x5   : > { %s402_s10 = smov (%p35_p0, %s33_s10), 0  ;;  %47 = sbr.rel (%p278_p1) target bundleno = 12 (0xc), region = 16 }
   0x6   : > { %s279_s13 = sshll.u32 (!%p278_p1), %s49_s11, 2  ;;  %s56_s16 = scalar_lea.vmem (!%p278_p1), %s397_s0, %s280_s12 }
   0x7   : > { %s51_s17 = scalar_lea.vmem (!%p278_p1), [#allocation1], %s279_s13 }
   0xa   : > { %v73_v0 = vld [vmem:[%s56_s16] sm:$0xf] }
   0xb   : > { %74 = vst [vmem:[%s51_s17] sm:$0xf] %v73_v0 }
   0xc PF: > { %p281_p2 = scmp.ge.s32.totalorder %s337_s8, 1  ;;  %p91_p3 = scmp.lt.s32.totalorder %s337_s8, 3 }
   0xe   : > { %p92_p4 = pnand %p281_p2, %p91_p3 }
  0x10   : > { %95 = sbr.rel (%p92_p4) target bundleno = 500 (0x1f4), region = 50 }
  0x15   : > { %s377_s18 = sand.u32 1, %s276_s9   ;;  %v114_v1 = vlaneseq  ;;  %v339_v11 = vmov -1.0   ;;  %s285_s22 = sshll.u32 %s329_s6, 2 }
  0x16   : > { %s282_s19 = sshll.u32 %s377_s18, 2  ;;  %s183_s25 = scalar_lea.vmem %s398_s1, %s285_s22 }
  0x17   : > { %s104_s20 = scalar_lea.vmem [#allocation1], %s282_s19  ;;  %v115_v3 = vand.u32 127, %v114_v1  ;;  %v118_v4 = vshrl.u32 %v114_v1, 7  ;;  %s108_s21 = scalar_lea.vmem [#allocation3], %s282_s19 }
  0x18   : > { %v112_v2 = vld [vmem:[%s104_s20] sm:$0xf] }
  0x19   : > { %113 = vst [vmem:[#allocation0] sm:$0xf] %v112_v2  ;;  %vm116_vm0 = vcmp.lt.s32.totalorder %v115_v3, 3  ;;  %vm125_vm1 = vcmp.ge.s32.totalorder %v118_v4, %v115_v3  ;;  %vm120_vm2 = vcmp.eq.s32.totalorder %v118_v4, %v115_v3  ;;  %vm139_vm4 = vcmp.eq.s32.totalorder %v115_v3, 0 }
  0x1a   : > { %vm126_vm3 = vmand %vm125_vm1, %vm116_vm0  ;;  %vm136_vm5 = vcmp.eq.s32.totalorder %v115_v3, %v118_v4  ;;  %v140_v12 = vsel %vm139_vm4, 1.0, %v339_v11  ;;  %vm147_vm6 = vcmp.eq.s32.totalorder %v115_v3, 1  ;;  %vm157_vm7 = vcmp.eq.s32.totalorder %v115_v3, 2 }
  0x1b   : > { %v141_v13 = vsel %vm136_vm5, %v140_v12, 0.0 }
  0x20   : > { %v121_v5 = vld [vmem:[#allocation0] sm:$0xff] }
  0x21   : > { %v122_v6 = vsel %vm120_vm2, %v121_v5, 0.0  ;;  %v127_v7 = vsel %vm126_vm3, %v121_v5, 0.0 }
  0x22   : > { %123 = vadd.xlane.f32.xlu0 %v122_v6 }
  0xab   : > { %v124_v8 = vpop.xlane.xlu0 %123 }
  0xac   : > { %313 = vrcp.f32 %v124_v8  ;;  %vm164_vm8 = vweird.f32 %v124_v8 }
  0xb9   : > { %v314_v9 = vpop.eup %313 }
  0xba   : > { %v129_v10 = vmul.f32 %v314_v9, %v127_v7 }
  0xbc   : > { %130 = vst [vmem:[#allocation4] sm:$0xff] %v129_v10 }
  0xc3   : > { %v143_v14 = vld [vmem:[#allocation4 + $0x1] ss:$0 sm:$0xff]  ;;  %v153_v17 = vld [vmem:[#allocation4 + $0x2] ss:$0 sm:$0xff] }
  0xc4   : > { %v144_v15 = vxor.u32 2147483648, %v143_v14  ;;  %v154_v19 = vxor.u32 2147483648, %v153_v17 }
  0xc6   : > { %v148_v16 = vmul.f32 %v144_v15, %v141_v13 }
  0xc8   : > { %149 = vadd.xlane.f32.xlu0 %v148_v16 }
 0x151   : > { %v150_v18 = vpop.xlane.xlu0 %149 }
 0x152   : > { %v151_v20 = vsel %vm147_vm6, %v150_v18, %v141_v13 }
 0x153   : > { %v158_v21 = vmul.f32 %v154_v19, %v151_v20 }
 0x155   : > { %159 = vadd.xlane.f32.xlu1 %v158_v21 }
 0x1de   : > { %v160_v22 = vpop.xlane.xlu1 %159 }
 0x1df   : > { %v161_v23 = vsel %vm157_vm7, %v160_v22, %v151_v20 }
 0x1e0   : > { %v163_v24 = vmul.f32 %v314_v9, %v161_v23 }
 0x1e2   : > { %v165_v25 = vsel %vm164_vm8, %v161_v23, %v163_v24 }
 0x1e3   : > { %166 = vst [vmem:[#allocation2] sm:$0xff] %v165_v25 }
 0x1ea   : > { %v171_v26 = vld [vmem:[#allocation2] sm:$0xf] }
 0x1eb   : > { %174 = vst [vmem:[%s108_s21] sm:$0xf] %v171_v26 }
 0x1f2   : > { %v200_v27 = vld [vmem:[%s108_s21] sm:$0xf] }
 0x1f3   : > { %201 = vst [vmem:[%s183_s25] sm:$0xf] %v200_v27 }
 0x1f4 PF: > { %s7_s8 = sadd.s32 1, %s337_s8   ;;  %s399_s6 = smov %s333_s7 }
 0x1f5   : > { %p4_p5 = scmp.ge.s32.totalorder %s7_s8, 4   ;;  %s400_s7 = smov %s402_s10 }
 0x1f7   :  { %6 = sbr.rel (!%p4_p5) target bundleno = 2 (0x2), region = 112 }

// kernel: custom-call.45
= control target key start
LH: loop header
LB: loop body
LE: loop exit
PB: predicated region body
PF: predicated region fallthrough
CT: control target
= control target key end

     0   :  { %s349_s6 = smov 0   ;;  %s351_s7 = smov 0   ;;  %s396_s0 = inlined_call_operand.vmem [shape: f32[2,1,3,3], index: 0, kind: input, shape index: {}]   ;;  %s397_s1 = inlined_call_operand.vmem [shape: f32[2,1,3,3], index: 1, kind: output, shape index: {}]  }
   0x1   :  { %s353_s8 = smov 0  }
   0x2 LB: > { %s275_s9 = sadd.s32 4294967295, %s336_s8   ;;  %s33_s10 = sadd.s32 1, %s332_s7  ;;  %s336_s8 = sphi %s353_s8, %s7_s8   ;;  %s332_s7 = sphi %s351_s7, %s399_s7   ;;  %s328_s6 = sphi %s349_s6, %s398_s6  }
   0x3   : > { %p35_p0 = scmp.ge.s32.totalorder %s33_s10, 2  ;;  %p277_p1 = scmp.ge.s32.totalorder %s336_s8, 2 }
   0x4   : > { %s49_s11 = sand.u32 (!%p277_p1), 1, %s336_s8   ;;  %s279_s12 = sshll.u32 (!%p277_p1), %s332_s7, 2 }
   0x5   : > { %s401_s10 = smov (%p35_p0, %s33_s10), 0  ;;  %47 = sbr.rel (%p277_p1) target bundleno = 12 (0xc), region = 16 }
   0x6   : > { %s278_s13 = sshll.u32 (!%p277_p1), %s49_s11, 2  ;;  %s56_s16 = scalar_lea.vmem (!%p277_p1), %s396_s0, %s279_s12 }
   0x7   : > { %s51_s17 = scalar_lea.vmem (!%p277_p1), [#allocation1], %s278_s13 }
   0xa   : > { %v73_v0 = vld [vmem:[%s56_s16] sm:$0xf] }
   0xb   : > { %74 = vst [vmem:[%s51_s17] sm:$0xf] %v73_v0 }
   0xc PF: > { %p280_p2 = scmp.ge.s32.totalorder %s336_s8, 1  ;;  %p91_p3 = scmp.lt.s32.totalorder %s336_s8, 3 }
   0xe   : > { %p92_p4 = pnand %p280_p2, %p91_p3 }
  0x10   : > { %95 = sbr.rel (%p92_p4) target bundleno = 500 (0x1f4), region = 50 }
  0x15   : > { %s376_s18 = sand.u32 1, %s275_s9   ;;  %v114_v1 = vlaneseq  ;;  %v338_v11 = vmov -1.0   ;;  %s284_s22 = sshll.u32 %s328_s6, 2 }
  0x16   : > { %s281_s19 = sshll.u32 %s376_s18, 2  ;;  %s182_s25 = scalar_lea.vmem %s397_s1, %s284_s22 }
  0x17   : > { %s104_s20 = scalar_lea.vmem [#allocation1], %s281_s19  ;;  %v115_v3 = vand.u32 127, %v114_v1  ;;  %v118_v4 = vshrl.u32 %v114_v1, 7  ;;  %s108_s21 = scalar_lea.vmem [#allocation3], %s281_s19 }
  0x18   : > { %v112_v2 = vld [vmem:[%s104_s20] sm:$0xf] }
  0x19   : > { %113 = vst [vmem:[#allocation0] sm:$0xf] %v112_v2  ;;  %vm116_vm0 = vcmp.lt.s32.totalorder %v115_v3, 3  ;;  %vm125_vm1 = vcmp.le.s32.totalorder %v118_v4, %v115_v3  ;;  %vm120_vm2 = vcmp.eq.s32.totalorder %v118_v4, %v115_v3  ;;  %vm139_vm4 = vcmp.eq.s32.totalorder %v115_v3, 2 }
  0x1a   : > { %vm126_vm3 = vmand %vm125_vm1, %vm116_vm0  ;;  %vm136_vm5 = vcmp.eq.s32.totalorder %v115_v3, %v118_v4  ;;  %v140_v12 = vsel %vm139_vm4, 1.0, %v338_v11  ;;  %vm147_vm6 = vcmp.eq.s32.totalorder %v115_v3, 1  ;;  %vm156_vm7 = vcmp.eq.s32.totalorder %v115_v3, 0 }
  0x1b   : > { %v141_v13 = vsel %vm136_vm5, %v140_v12, 0.0 }
  0x20   : > { %v121_v5 = vld [vmem:[#allocation0] sm:$0xff] }
  0x21   : > { %v122_v6 = vsel %vm120_vm2, %v121_v5, 0.0  ;;  %v127_v7 = vsel %vm126_vm3, %v121_v5, 0.0 }
  0x22   : > { %123 = vadd.xlane.f32.xlu0 %v122_v6 }
  0xab   : > { %v124_v8 = vpop.xlane.xlu0 %123 }
  0xac   : > { %312 = vrcp.f32 %v124_v8  ;;  %vm163_vm8 = vweird.f32 %v124_v8 }
  0xb9   : > { %v313_v9 = vpop.eup %312 }
  0xba   : > { %v129_v10 = vmul.f32 %v313_v9, %v127_v7 }
  0xbc   : > { %130 = vst [vmem:[#allocation4] sm:$0xff] %v129_v10 }
  0xc3   : > { %v143_v14 = vld [vmem:[#allocation4 + $0x1] ss:$0 sm:$0xff]  ;;  %v152_v17 = vld [vmem:[#allocation4] ss:$0 sm:$0xff] }
  0xc4   : > { %v144_v15 = vxor.u32 2147483648, %v143_v14  ;;  %v153_v19 = vxor.u32 2147483648, %v152_v17 }
  0xc6   : > { %v148_v16 = vmul.f32 %v144_v15, %v141_v13 }
  0xc8   : > { %149 = vadd.xlane.f32.xlu0 %v148_v16 }
 0x151   : > { %v150_v18 = vpop.xlane.xlu0 %149 }
 0x152   : > { %v151_v20 = vsel %vm147_vm6, %v150_v18, %v141_v13 }
 0x153   : > { %v157_v21 = vmul.f32 %v153_v19, %v151_v20 }
 0x155   : > { %158 = vadd.xlane.f32.xlu1 %v157_v21 }
 0x1de   : > { %v159_v22 = vpop.xlane.xlu1 %158 }
 0x1df   : > { %v160_v23 = vsel %vm156_vm7, %v159_v22, %v151_v20 }
 0x1e0   : > { %v162_v24 = vmul.f32 %v313_v9, %v160_v23 }
 0x1e2   : > { %v164_v25 = vsel %vm163_vm8, %v160_v23, %v162_v24 }
 0x1e3   : > { %165 = vst [vmem:[#allocation2] sm:$0xff] %v164_v25 }
 0x1ea   : > { %v170_v26 = vld [vmem:[#allocation2] sm:$0xf] }
 0x1eb   : > { %173 = vst [vmem:[%s108_s21] sm:$0xf] %v170_v26 }
 0x1f2   : > { %v199_v27 = vld [vmem:[%s108_s21] sm:$0xf] }
 0x1f3   : > { %200 = vst [vmem:[%s182_s25] sm:$0xf] %v199_v27 }
 0x1f4 PF: > { %s7_s8 = sadd.s32 1, %s336_s8   ;;  %s398_s6 = smov %s332_s7 }
 0x1f5   : > { %p4_p5 = scmp.ge.s32.totalorder %s7_s8, 4   ;;  %s399_s7 = smov %s401_s10 }
 0x1f7   :  { %6 = sbr.rel (!%p4_p5) target bundleno = 2 (0x2), region = 111 }

// kernel: fmap_model_warping_forward.4
= control target key start
LH: loop header
LB: loop body
LE: loop exit
PB: predicated region body
PF: predicated region fallthrough
CT: control target
= control target key end

     0   :  { %s539_s12 = smov 0   ;;  %s541_s13 = smov 0   ;;  %s600_s0 = inlined_call_operand.vmem [shape: f32[8,4,256], index: 0, kind: input, shape index: {}]   ;;  %s601_s1 = inlined_call_operand.vmem [shape: f32[32,4], index: 1, kind: input, shape index: {}]   ;;  %s602_s2 = inlined_call_operand.vmem [shape: f32[32,1], index: 2, kind: input, shape index: {}]   ;;  %s603_s3 = inlined_call_operand.vmem [shape: f32[8,32,256], index: 3, kind: output, shape index: {}]  }
   0x1   :  { %s543_s14 = smov 0  }
   0x2 LB: > { %s25_s15 = sadd.s32 1, %s511_s13  ;;  %p447_p0 = scmp.ge.s32.totalorder %s515_s14, 1  ;;  %s515_s14 = sphi %s543_s14, %s13_s14   ;;  %s511_s13 = sphi %s541_s13, %s605_s13   ;;  %s507_s12 = sphi %s539_s12, %s604_s12  }
   0x3   : > { %p27_p1 = scmp.ge.s32.totalorder %s25_s15, 8  ;;  %p158_p2 = scmp.lt.s32.totalorder %s515_s14, 9 }
   0x5   : > { %s607_s15 = smov (%p27_p1, %s25_s15), 0  ;;  %p159_p3 = pnand %p447_p0, %p158_p2 }
   0x6   : > { %p191_p4 = scmp.lt.s32.totalorder (!%p159_p3), %s507_s12, 7 }
   0x7   : > { %162 = sbr.rel (%p159_p3) target bundleno = 223 (0xdf), region = 32 }
   0xc   : > { %v517_v0 = vmov 0.0   ;;  %v217_v1 = vld [vmem:[%s602_s2 + $0x10] sm:$0xff]  ;;  %s609_s12 = smov (!%p191_p4, %s507_s12), 7  ;;  %v518_v2 = vmov 0   ;;  %v215_v3 = vld [vmem:[%s602_s2] sm:$0xff]  ;;  %v218_v4 = vld [vmem:[%s602_s2 + $0x18] sm:$0xff] }
   0xd   : > { %323 = vmatprep.mubr.f32.mxu0 %v517_v0  ;;  %335 = vmatprep.mubr.f32.mxu1 %v517_v0  ;;  %s460_s20 = sshll.u32 %s609_s12, 3  ;;  %v216_v5 = vld [vmem:[%s602_s2 + $0x8] sm:$0xff]  ;;  %vm254_vm0 = vcmask 1043456   ;;  %v210_v8 = vld [vmem:[%s601_s1] sm:$0xff]  ;;  %vm241_vm1 = vcmask 31744   ;;  %v212_v9 = vld [vmem:[%s601_s1 + $0x10] sm:$0xff] }
   0xe   : > { %491 = vset.pattern.permute.xlu1 %v518_v2  ;;  %490 = vset.pattern.permute.xlu0 %v518_v2  ;;  %s198_s27 = scalar_lea.vmem %s600_s0, %s460_s20  ;;  %v211_v10 = vld [vmem:[%s601_s1 + $0x8] sm:$0xff]  ;;  %v213_v11 = vld [vmem:[%s601_s1 + $0x18] sm:$0xff]  ;;  %s461_s9 = sshll.u32 %s609_s12, 6 }
   0xf   : > { %231 = vperm.xlu1 %491, %v217_v1   ;;  %221 = vperm.xlu0 %490, %v215_v3   ;;  %v214_v6 = vld [vmem:[%s198_s27] sm:$0xff]  ;;  %s208_s16 = scalar_lea.vmem %s603_s3, %s461_s9 }
  0x10   : > { %v240_v7 = vcombine.high %v214_v6, %v214_v6 }
  0x12   : > { %452 = vmatprep.subr.msk.mxu0 %vm254_vm0, %v240_v7  ;;  %462 = vmatprep.subr.msk.mxu1 %vm254_vm0, %v240_v7 }
  0x13   : > { %236 = vperm.xlu1 %491, %v218_v4   ;;  %226 = vperm.xlu0 %490, %v216_v5  }
  0x14   : > { %453 = vmatpush1.msk.msra.mxu0 %vm254_vm0, %v214_v6  ;;  %463 = vmatpush1.msk.msra.mxu1 %vm254_vm0, %v214_v6 }
  0x15   : > { %454 = vmatmul.mubr.msk.f32.vlgmr.msra.gmra.mxu0 %vm241_vm1, %v210_v8  ;;  %456 = vmatmul.mubr.msk.f32.vlgmr.msra.gmra.mxu1 %vm241_vm1, %v212_v9 }
  0x16   : > { %329 = vmatprep.mubr.f32.mxu0 %v517_v0  ;;  %341 = vmatprep.mubr.f32.mxu1 %v517_v0 }
  0x19   : > { %455 = vmatmul.mubr.msk.f32.gmra.mxu0 %vm241_vm1, %v211_v10  ;;  %457 = vmatmul.mubr.msk.f32.gmra.mxu1 %vm241_vm1, %v213_v11 }
  0x8a   : > { %v232_v12 = vpop.permute.xlu1 %231  ;;  %v222_v13 = vpop.permute.xlu0 %221 }
  0x8e   : > { %v237_v20 = vpop.permute.xlu1 %236  ;;  %v227_v21 = vpop.permute.xlu0 %226 }
  0xd5   : > { %v325_v14 = vpop.f32.mrf.mxu0  ;;  %v337_v15 = vpop.f32.mrf.mxu1 }
  0xd6   : > { %v326_v16 = vadd.f32 %v325_v14, %v222_v13  ;;  %v338_v17 = vadd.f32 %v337_v15, %v232_v12 }
  0xd7   : > { %v327_v18 = vpop.f32.mrf.mxu0  ;;  %v339_v19 = vpop.f32.mrf.mxu1 }
  0xd8   : > { %348 = vst [vmem:[%s208_s16] sm:$0xff] %v326_v16  ;;  %352 = vst [vmem:[%s208_s16 + $0x20] sm:$0xff] %v338_v17  ;;  %v328_v22 = vadd.f32 %v327_v18, %v222_v13  ;;  %v340_v23 = vadd.f32 %v339_v19, %v232_v12 }
  0xd9   : > { %v331_v24 = vpop.f32.mrf.mxu0  ;;  %v343_v25 = vpop.f32.mrf.mxu1 }
  0xda   : > { %349 = vst [vmem:[%s208_s16 + $0x8] sm:$0xff] %v328_v22  ;;  %353 = vst [vmem:[%s208_s16 + $0x28] sm:$0xff] %v340_v23  ;;  %v332_v26 = vadd.f32 %v331_v24, %v227_v21  ;;  %v344_v27 = vadd.f32 %v343_v25, %v237_v20 }
  0xdb   : > { %v333_v28 = vpop.f32.mrf.mxu0  ;;  %v345_v29 = vpop.f32.mrf.mxu1 }
  0xdc   : > { %350 = vst [vmem:[%s208_s16 + $0x10] sm:$0xff] %v332_v26  ;;  %354 = vst [vmem:[%s208_s16 + $0x30] sm:$0xff] %v344_v27  ;;  %v334_v30 = vadd.f32 %v333_v28, %v227_v21  ;;  %v346_v31 = vadd.f32 %v345_v29, %v237_v20 }
  0xde   : > { %351 = vst [vmem:[%s208_s16 + $0x18] sm:$0xff] %v334_v30  ;;  %355 = vst [vmem:[%s208_s16 + $0x38] sm:$0xff] %v346_v31 }
  0xdf PF: > { %s13_s14 = sadd.s32 1, %s515_s14   ;;  %s604_s12 = smov %s511_s13 }
  0xe0   : > { %p10_p5 = scmp.ge.s32.totalorder %s13_s14, 10   ;;  %s605_s13 = smov %s607_s15 }
  0xe2   :  { %12 = sbr.rel (!%p10_p5) target bundleno = 2 (0x2), region = 62 }

// kernel: fmap_model_warping_forward.5
= control target key start
LH: loop header
LB: loop body
LE: loop exit
PB: predicated region body
PF: predicated region fallthrough
CT: control target
= control target key end

     0   :  { %s2589_s15 = smov 0   ;;  %s3949_s0 = inlined_call_operand.vmem [shape: f32[8,32,256], index: 0, kind: input, shape index: {}, may-alias: {0,1,2,3}]   ;;  %s3950_s1 = inlined_call_operand.vmem [shape: f32[8,32,256], index: 1, kind: input, shape index: {}, may-alias: {0,1,2,3}]   ;;  %s3951_s2 = inlined_call_operand.vmem [shape: f32[8,32,256], index: 2, kind: input, shape index: {}, may-alias: {0,1,2,3}]   ;;  %s3952_s3 = inlined_call_operand.vmem [shape: f32[8,32,256], index: 3, kind: input, shape index: {}, may-alias: {0,1,2,3}]   ;;  %s3953_s4 = inlined_call_operand.vmem [shape: f32[2,1,256], index: 4, kind: output, shape index: {}]  }
   0x1 LB: > { %s2595_s16 = sadd.s32 4294967295, %s2560_s15   ;;  %p2079_p0 = scmp.ge.s32.totalorder %s2560_s15, 1  ;;  %s2560_s15 = sphi %s2589_s15, %s14_s15  }
   0x2   : > { %p204_p1 = scmp.lt.s32.totalorder %s2560_s15, 3 }
   0x4   : > { %p205_p2 = pnand %p2079_p0, %p204_p1 }
   0x6   : > { %208 = sbr.rel (%p205_p2) target bundleno = 838 (0x346), region = 36 }
   0xb   : > { %p247_p3 = scmp.lt.s32.totalorder %s2595_s16, 7  ;;  %s259_s17 = sadd.s32 4, %s2595_s16  ;;  %v2562_v7 = vmov 0   ;;  %vm378_vm0 = vcmask 261120  }
   0xc   : > { %p260_p4 = scmp.lt.s32.totalorder %s259_s17, 7  ;;  %s252_s18 = sadd.s32 2, %s2595_s16  ;;  %459 = vmatprep.mubr.bf16.mxu0 %v2562_v7  ;;  %800 = vmatprep.mubr.bf16.mxu1 %v2562_v7 }
   0xd   : > { %s248_s19 = scalar_select %p247_p3, %s2595_s16, 7 }
   0xe   : > { %s4444_s17 = smov (!%p260_p4, %s259_s17), 7  ;;  %p253_p5 = scmp.lt.s32.totalorder %s252_s18, 7 }
   0xf   : > { %s2123_s20 = sshll.u32 %s248_s19, 6  ;;  %s2125_s24 = sshll.u32 %s4444_s17, 6 }
  0x10   : > { %s2606_s23 = scalar_lea.vmem %s3949_s0, %s2123_s20  ;;  %s2612_s27 = scalar_lea.vmem %s3951_s2, %s2125_s24 }
  0x11   : > { %v278_v0 = vld [vmem:[%s2606_s23] sm:$0xff]  ;;  %v279_v1 = vld [vmem:[%s2606_s23 + $0x8] sm:$0xff]  ;;  %s266_s28 = sadd.s32 6, %s2595_s16  ;;  %v281_v3 = vld [vmem:[%s2606_s23 + $0x18] sm:$0xff]  ;;  %s4446_s18 = smov (!%p253_p5, %s252_s18), 7 }
  0x12   : > { %286 = vxpose.xlu0.b32.start [1/4] (short) %v278_v0, 128  ;;  %v620_v2 = vld [vmem:[%s2612_s27] sm:$0xff]  ;;  %v622_v4 = vld [vmem:[%s2612_s27 + $0x10] sm:$0xff]  ;;  %p2620_p6 = scmp.lt.s32.totalorder %s266_s28, 7  ;;  %s2124_s30 = sshll.u32 %s4446_s18, 6  ;;  %v283_v10 = vld [vmem:[%s2606_s23 + $0x28] sm:$0xff] }
  0x13   : > { %v2138_v5 = vpack.i.bf16 %v620_v2, %v279_v1  ;;  %v280_v6 = vld [vmem:[%s2606_s23 + $0x10] sm:$0xff]  ;;  %v2140_v8 = vpack.i.bf16 %v622_v4, %v281_v3  ;;  %v282_v9 = vld [vmem:[%s2606_s23 + $0x20] sm:$0xff]  ;;  %s257_s7 = scalar_lea.vmem %s3950_s1, %s2124_s30  ;;  %v285_v24 = vld [vmem:[%s2606_s23 + $0x38] sm:$0xff]  ;;  %p273_p7 = scmp.lt.s32.totalorder %s2595_s16, 1 }
  0x14   : > { %v624_v11 = vld [vmem:[%s2612_s27 + $0x20] sm:$0xff]  ;;  %v371_v12 = vld [vmem:[%s257_s7 + $0x28] sm:$0xff]  ;;  %v373_v13 = vld [vmem:[%s257_s7 + $0x38] sm:$0xff]  ;;  %s4448_s28 = smov (!%p2620_p6, %s266_s28), 7 }
  0x15   : > { %2139 = vxpose.xlu1.b32.start [1/4] (short) %v2138_v5, 128  ;;  %v377_v14 = vpack.c.bf16 %v373_v13, %v371_v12  ;;  %v370_v15 = vld [vmem:[%s257_s7 + $0x20] sm:$0xff]  ;;  %v372_v16 = vld [vmem:[%s257_s7 + $0x30] sm:$0xff]  ;;  %v367_v17 = vld [vmem:[%s257_s7 + $0x8] sm:$0xff]  ;;  %s2126_s8 = sshll.u32 %s4448_s28, 6  ;;  %v2142_v22 = vpack.i.bf16 %v624_v11, %v283_v10  ;;  %s4450_s16 = smov (!%p273_p7, %s2595_s16), 1 }
  0x16   : > { %287 = vxpose.xlu0.b32.cont [2/4] (short) %v280_v6, 128  ;;  %v376_v18 = vpack.c.bf16 %v372_v16, %v370_v15  ;;  %v369_v19 = vld [vmem:[%s257_s7 + $0x18] sm:$0xff]  ;;  %v366_v20 = vld [vmem:[%s257_s7] sm:$0xff]  ;;  %v368_v21 = vld [vmem:[%s257_s7 + $0x10] sm:$0xff]  ;;  %s271_s11 = scalar_lea.vmem %s3952_s3, %s2126_s8  ;;  %s2088_s12 = sshll.u32 %s4450_s16, 1 }
  0x17   : > { %v284_v23 = vld [vmem:[%s2606_s23 + $0x30] sm:$0xff]  ;;  %439 = vmatprep.subr.bf16.mxu0 %v377_v14  ;;  %v375_v26 = vpack.c.bf16 %v369_v19, %v367_v17  ;;  %v374_v27 = vpack.c.bf16 %v368_v21, %v366_v20  ;;  %v713_v28 = vld [vmem:[%s271_s11 + $0x28] sm:$0xff]  ;;  %v715_v29 = vld [vmem:[%s271_s11 + $0x38] sm:$0xff]  ;;  %s276_s17 = scalar_lea.vmem %s3953_s4, %s2088_s12 }
  0x18   : > { %v626_v25 = vld [vmem:[%s2612_s27 + $0x30] sm:$0xff]  ;;  %440 = vmatpush1.bf16.msra.mxu0 %v376_v18  ;;  %v712_v30 = vld [vmem:[%s271_s11 + $0x20] sm:$0xff]  ;;  %v719_v31 = vpack.c.bf16 %v715_v29, %v713_v28  ;;  %v709_v33 = vld [vmem:[%s271_s11 + $0x8] sm:$0xff] }
  0x19   : > { %2141 = vxpose.xlu1.b32.cont [2/4] (short) %v2140_v8, 128  ;;  %441 = vmatprep.subr.bf16.mxu0 %v375_v26  ;;  %v714_v32 = vld [vmem:[%s271_s11 + $0x30] sm:$0xff]  ;;  %v711_v34 = vld [vmem:[%s271_s11 + $0x18] sm:$0xff]  ;;  %v708_v37 = vld [vmem:[%s271_s11] sm:$0xff]  ;;  %v2144_v39 = vpack.i.bf16 %v626_v25, %v285_v24 }
  0x1a   : > { %288 = vxpose.xlu0.b32.cont [3/4] (short) %v282_v9, 128  ;;  %v718_v35 = vpack.c.bf16 %v714_v32, %v712_v30  ;;  %v717_v36 = vpack.c.bf16 %v711_v34, %v709_v33  ;;  %v710_v38 = vld [vmem:[%s271_s11 + $0x10] sm:$0xff]  ;;  %780 = vmatprep.subr.bf16.mxu1 %v719_v31  ;;  %v621_v41 = vld [vmem:[%s2612_s27 + $0x8] sm:$0xff]  ;;  %v623_v42 = vld [vmem:[%s2612_s27 + $0x18] sm:$0xff] }
  0x1b   : > { %v716_v40 = vpack.c.bf16 %v710_v38, %v708_v37  ;;  %v625_v43 = vld [vmem:[%s2612_s27 + $0x28] sm:$0xff]  ;;  %v627_v44 = vld [vmem:[%s2612_s27 + $0x38] sm:$0xff] }
  0x1c   : > { %442 = vmatpush1.bf16.msra.mxu0 %v374_v27  ;;  %781 = vmatpush1.bf16.msra.mxu1 %v718_v35 }
  0x1d   : > { %2143 = vxpose.xlu1.b32.cont [3/4] (short) %v2142_v22, 128  ;;  %782 = vmatprep.subr.bf16.mxu1 %v717_v36 }
  0x1e   : > { %289 = vxpose.xlu0.b32.end [4/4] (short) %v284_v23, 128 }
  0x20   : > { %783 = vmatpush1.bf16.msra.mxu1 %v716_v40 }
  0x21   : > { %2145 = vxpose.xlu1.b32.end [4/4] (short) %v2144_v39, 128 }
  0x4f   : > { %660 = vxpose.xlu0.b32.start [1/4] (short) %v621_v41, 128 }
  0x53   : > { %661 = vxpose.xlu0.b32.cont [2/4] (short) %v623_v42, 128 }
  0x57   : > { %662 = vxpose.xlu0.b32.cont [3/4] (short) %v625_v43, 128 }
  0x5b   : > { %663 = vxpose.xlu0.b32.end [4/4] (short) %v627_v44, 128 }
  0x8e   : > { %v302_v45 = vpop.trf.xlu0 }
  0x91   : > { %v2644_v46 = vpop.trf.xlu1 }
  0x92   : > { %v303_v47 = vpop.trf.xlu0  ;;  %v2150_v49 = vunpack.i.h.bf16 %v2644_v46 }
  0x93   : > { %v350_v48 = vpack.c.bf16 %v303_v47, %v302_v45  ;;  %v2147_v47 = vunpack.i.l.bf16 %v2644_v46 }
  0x95   : > { %v2647_v50 = vpop.trf.xlu1  ;;  %2089 = vmatmul.mubr.msk.bf16.vlgmr.msra.gmra.mxu0 %vm378_vm0, %v350_v48 }
  0x96   : > { %v2155_v51 = vunpack.i.h.bf16 %v2647_v50  ;;  %v304_v52 = vpop.trf.xlu0  ;;  %469 = vmatprep.mubr.bf16.mxu0 %v2562_v7  ;;  %v2152_v48 = vunpack.i.l.bf16 %v2647_v50 }
  0x98   : > { %v692_v53 = vpack.c.bf16 %v2155_v51, %v2150_v49 }
  0x99   : > { %v2652_v54 = vpop.trf.xlu1 }
  0x9a   : > { %2105 = vmatmul.mubr.msk.bf16.vlgmr.msra.gmra.mxu1 %vm378_vm0, %v692_v53  ;;  %v305_v55 = vpop.trf.xlu0  ;;  %v2160_v57 = vunpack.i.h.bf16 %v2652_v54 }
  0x9b   : > { %v351_v56 = vpack.c.bf16 %v305_v55, %v304_v52  ;;  %810 = vmatprep.mubr.bf16.mxu1 %v2562_v7  ;;  %v358_v52 = vpack.c.bf16 %v2152_v48, %v2147_v47 }
  0x9d   : > { %v2657_v58 = vpop.trf.xlu1  ;;  %2090 = vmatmul.mubr.msk.bf16.gmra.mxu0 %vm378_vm0, %v351_v56  ;;  %v2157_v56 = vunpack.i.l.bf16 %v2652_v54 }
  0x9e   : > { %v2165_v59 = vunpack.i.h.bf16 %v2657_v58  ;;  %v306_v60 = vpop.trf.xlu0  ;;  %479 = vmatprep.mubr.bf16.mxu0 %v2562_v7 }
  0xa0   : > { %v693_v61 = vpack.c.bf16 %v2165_v59, %v2160_v57  ;;  %v2162_v57 = vunpack.i.l.bf16 %v2657_v58 }
  0xa1   : > { %v2662_v62 = vpop.trf.xlu1 }
  0xa2   : > { %2106 = vmatmul.mubr.msk.bf16.gmra.mxu1 %vm378_vm0, %v693_v61  ;;  %v307_v63 = vpop.trf.xlu0  ;;  %v2170_v1 = vunpack.i.h.bf16 %v2662_v62  ;;  %v359_v50 = vpack.c.bf16 %v2162_v57, %v2157_v56  ;;  %v2167_v61 = vunpack.i.l.bf16 %v2662_v62 }
  0xa3   : > { %v352_v0 = vpack.c.bf16 %v307_v63, %v306_v60  ;;  %820 = vmatprep.mubr.bf16.mxu1 %v2562_v7 }
  0xa5   : > { %v2667_v2 = vpop.trf.xlu1  ;;  %2091 = vmatmul.mubr.msk.bf16.gmra.mxu0 %vm378_vm0, %v352_v0 }
  0xa6   : > { %v2175_v3 = vunpack.i.h.bf16 %v2667_v2  ;;  %v308_v4 = vpop.trf.xlu0  ;;  %489 = vmatprep.mubr.bf16.mxu0 %v2562_v7  ;;  %v2172_v63 = vunpack.i.l.bf16 %v2667_v2 }
  0xa8   : > { %v694_v5 = vpack.c.bf16 %v2175_v3, %v2170_v1  ;;  %v360_v58 = vpack.c.bf16 %v2172_v63, %v2167_v61 }
  0xa9   : > { %v2672_v6 = vpop.trf.xlu1 }
  0xaa   : > { %2107 = vmatmul.mubr.msk.bf16.gmra.mxu1 %vm378_vm0, %v694_v5  ;;  %v309_v8 = vpop.trf.xlu0  ;;  %v2180_v10 = vunpack.i.h.bf16 %v2672_v6  ;;  %v2177_v3 = vunpack.i.l.bf16 %v2672_v6 }
  0xab   : > { %v353_v9 = vpack.c.bf16 %v309_v8, %v308_v4  ;;  %830 = vmatprep.mubr.bf16.mxu1 %v2562_v7 }
  0xad   : > { %v2677_v11 = vpop.trf.xlu1  ;;  %2092 = vmatmul.mubr.msk.bf16.gmra.mxu0 %vm378_vm0, %v353_v9 }
  0xae   : > { %v2185_v12 = vunpack.i.h.bf16 %v2677_v11  ;;  %v310_v13 = vpop.trf.xlu0  ;;  %499 = vmatprep.mubr.bf16.mxu0 %v2562_v7  ;;  %v2182_v4 = vunpack.i.l.bf16 %v2677_v11 }
  0xb0   : > { %v695_v14 = vpack.c.bf16 %v2185_v12, %v2180_v10  ;;  %v361_v2 = vpack.c.bf16 %v2182_v4, %v2177_v3 }
  0xb1   : > { %v2682_v15 = vpop.trf.xlu1 }
  0xb2   : > { %2108 = vmatmul.mubr.msk.bf16.gmra.mxu1 %vm378_vm0, %v695_v14  ;;  %v311_v16 = vpop.trf.xlu0  ;;  %v2190_v18 = vunpack.i.h.bf16 %v2682_v15  ;;  %v2187_v9 = vunpack.i.l.bf16 %v2682_v15 }
  0xb3   : > { %v354_v17 = vpack.c.bf16 %v311_v16, %v310_v13  ;;  %840 = vmatprep.mubr.bf16.mxu1 %v2562_v7 }
  0xb5   : > { %v2687_v19 = vpop.trf.xlu1  ;;  %2093 = vmatmul.mubr.msk.bf16.gmra.mxu0 %vm378_vm0, %v354_v17 }
  0xb6   : > { %v2195_v20 = vunpack.i.h.bf16 %v2687_v19  ;;  %v312_v21 = vpop.trf.xlu0  ;;  %509 = vmatprep.mubr.bf16.mxu0 %v2562_v7  ;;  %v2192_v10 = vunpack.i.l.bf16 %v2687_v19 }
  0xb8   : > { %v696_v22 = vpack.c.bf16 %v2195_v20, %v2190_v18  ;;  %v362_v11 = vpack.c.bf16 %v2192_v10, %v2187_v9 }
  0xb9   : > { %v2692_v23 = vpop.trf.xlu1 }
  0xba   : > { %2109 = vmatmul.mubr.msk.bf16.gmra.mxu1 %vm378_vm0, %v696_v22  ;;  %v313_v24 = vpop.trf.xlu0  ;;  %v2200_v26 = vunpack.i.h.bf16 %v2692_v23  ;;  %v2197_v14 = vunpack.i.l.bf16 %v2692_v23 }
  0xbb   : > { %v355_v25 = vpack.c.bf16 %v313_v24, %v312_v21  ;;  %850 = vmatprep.mubr.bf16.mxu1 %v2562_v7 }
  0xbd   : > { %v2697_v27 = vpop.trf.xlu1  ;;  %2094 = vmatmul.mubr.msk.bf16.gmra.mxu0 %vm378_vm0, %v355_v25 }
  0xbe   : > { %v2205_v28 = vunpack.i.h.bf16 %v2697_v27  ;;  %v314_v29 = vpop.trf.xlu0  ;;  %519 = vmatprep.mubr.bf16.mxu0 %v2562_v7  ;;  %v2202_v16 = vunpack.i.l.bf16 %v2697_v27 }
  0xc0   : > { %v697_v30 = vpack.c.bf16 %v2205_v28, %v2200_v26  ;;  %v363_v17 = vpack.c.bf16 %v2202_v16, %v2197_v14 }
  0xc1   : > { %v2702_v31 = vpop.trf.xlu1 }
  0xc2   : > { %2110 = vmatmul.mubr.msk.bf16.gmra.mxu1 %vm378_vm0, %v697_v30  ;;  %v315_v32 = vpop.trf.xlu0  ;;  %v2210_v34 = vunpack.i.h.bf16 %v2702_v31  ;;  %v2207_v20 = vunpack.i.l.bf16 %v2702_v31 }
  0xc3   : > { %v356_v33 = vpack.c.bf16 %v315_v32, %v314_v29  ;;  %860 = vmatprep.mubr.bf16.mxu1 %v2562_v7 }
  0xc5   : > { %v2707_v35 = vpop.trf.xlu1  ;;  %2095 = vmatmul.mubr.msk.bf16.gmra.mxu0 %vm378_vm0, %v356_v33 }
  0xc6   : > { %v2215_v36 = vunpack.i.h.bf16 %v2707_v35  ;;  %v316_v37 = vpop.trf.xlu0  ;;  %529 = vmatprep.mubr.bf16.mxu0 %v2562_v7  ;;  %v2212_v21 = vunpack.i.l.bf16 %v2707_v35 }
  0xc8   : > { %v698_v38 = vpack.c.bf16 %v2215_v36, %v2210_v34  ;;  %v364_v23 = vpack.c.bf16 %v2212_v21, %v2207_v20 }
  0xc9   : > { %v2712_v39 = vpop.trf.xlu1 }
  0xca   : > { %2111 = vmatmul.mubr.msk.bf16.gmra.mxu1 %vm378_vm0, %v698_v38  ;;  %v317_v40 = vpop.trf.xlu0  ;;  %v2220_v42 = vunpack.i.h.bf16 %v2712_v39  ;;  %v2217_v26 = vunpack.i.l.bf16 %v2712_v39 }
  0xcb   : > { %v357_v41 = vpack.c.bf16 %v317_v40, %v316_v37  ;;  %870 = vmatprep.mubr.bf16.mxu1 %v2562_v7 }
  0xcd   : > { %v2717_v43 = vpop.trf.xlu1  ;;  %2096 = vmatmul.mubr.msk.bf16.gmra.mxu0 %vm378_vm0, %v357_v41 }
  0xce   : > { %v2225_v44 = vunpack.i.h.bf16 %v2717_v43  ;;  %v676_v45 = vpop.trf.xlu0  ;;  %539 = vmatprep.mubr.bf16.mxu0 %v2562_v7  ;;  %v2222_v27 = vunpack.i.l.bf16 %v2717_v43 }
  0xd0   : > { %v699_v49 = vpack.c.bf16 %v2225_v44, %v2220_v42  ;;  %v365_v28 = vpack.c.bf16 %v2222_v27, %v2217_v26 }
  0xd2   : > { %2112 = vmatmul.mubr.msk.bf16.gmra.mxu1 %vm378_vm0, %v699_v49  ;;  %v677_v51 = vpop.trf.xlu0 }
  0xd3   : > { %880 = vmatprep.mubr.bf16.mxu1 %v2562_v7  ;;  %v700_v53 = vpack.c.bf16 %v677_v51, %v676_v45 }
  0xd5   : > { %2097 = vmatmul.mubr.msk.bf16.gmra.mxu0 %vm378_vm0, %v358_v52 }
  0xd6   : > { %v678_v55 = vpop.trf.xlu0  ;;  %549 = vmatprep.mubr.bf16.mxu0 %v2562_v7 }
  0xda   : > { %2113 = vmatmul.mubr.msk.bf16.gmra.mxu1 %vm378_vm0, %v700_v53  ;;  %v679_v46 = vpop.trf.xlu0 }
  0xdb   : > { %890 = vmatprep.mubr.bf16.mxu1 %v2562_v7  ;;  %v701_v59 = vpack.c.bf16 %v679_v46, %v678_v55 }
  0xdd   : > { %2098 = vmatmul.mubr.msk.bf16.gmra.mxu0 %vm378_vm0, %v359_v50 }
  0xde   : > { %v680_v60 = vpop.trf.xlu0  ;;  %559 = vmatprep.mubr.bf16.mxu0 %v2562_v7 }
  0xe2   : > { %2114 = vmatmul.mubr.msk.bf16.gmra.mxu1 %vm378_vm0, %v701_v59  ;;  %v681_v54 = vpop.trf.xlu0 }
  0xe3   : > { %900 = vmatprep.mubr.bf16.mxu1 %v2562_v7  ;;  %v702_v0 = vpack.c.bf16 %v681_v54, %v680_v60 }
  0xe5   : > { %2099 = vmatmul.mubr.msk.bf16.gmra.mxu0 %vm378_vm0, %v360_v58 }
  0xe6   : > { %v682_v1 = vpop.trf.xlu0  ;;  %569 = vmatprep.mubr.bf16.mxu0 %v2562_v7 }
  0xea   : > { %2115 = vmatmul.mubr.msk.bf16.gmra.mxu1 %vm378_vm0, %v702_v0  ;;  %v683_v62 = vpop.trf.xlu0 }
  0xeb   : > { %910 = vmatprep.mubr.bf16.mxu1 %v2562_v7  ;;  %v703_v5 = vpack.c.bf16 %v683_v62, %v682_v1 }
  0xed   : > { %2100 = vmatmul.mubr.msk.bf16.gmra.mxu0 %vm378_vm0, %v361_v2 }
  0xee   : > { %v684_v8 = vpop.trf.xlu0  ;;  %579 = vmatprep.mubr.bf16.mxu0 %v2562_v7 }
  0xf2   : > { %2116 = vmatmul.mubr.msk.bf16.gmra.mxu1 %vm378_vm0, %v703_v5  ;;  %v685_v6 = vpop.trf.xlu0 }
  0xf3   : > { %920 = vmatprep.mubr.bf16.mxu1 %v2562_v7  ;;  %v704_v12 = vpack.c.bf16 %v685_v6, %v684_v8 }
  0xf5   : > { %2101 = vmatmul.mubr.msk.bf16.gmra.mxu0 %vm378_vm0, %v362_v11 }
  0xf6   : > { %v686_v13 = vpop.trf.xlu0  ;;  %589 = vmatprep.mubr.bf16.mxu0 %v2562_v7 }
  0xfa   : > { %2117 = vmatmul.mubr.msk.bf16.gmra.mxu1 %vm378_vm0, %v704_v12  ;;  %v687_v15 = vpop.trf.xlu0 }
  0xfb   : > { %930 = vmatprep.mubr.bf16.mxu1 %v2562_v7  ;;  %v705_v18 = vpack.c.bf16 %v687_v15, %v686_v13 }
  0xfd   : > { %2102 = vmatmul.mubr.msk.bf16.gmra.mxu0 %vm378_vm0, %v363_v17 }
  0xfe   : > { %v688_v19 = vpop.trf.xlu0  ;;  %599 = vmatprep.mubr.bf16.mxu0 %v2562_v7 }
 0x102   : > { %2118 = vmatmul.mubr.msk.bf16.gmra.mxu1 %vm378_vm0, %v705_v18  ;;  %v689_v22 = vpop.trf.xlu0 }
 0x103   : > { %940 = vmatprep.mubr.bf16.mxu1 %v2562_v7  ;;  %v706_v24 = vpack.c.bf16 %v689_v22, %v688_v19 }
 0x105   : > { %2103 = vmatmul.mubr.msk.bf16.gmra.mxu0 %vm378_vm0, %v364_v23 }
 0x106   : > { %v690_v25 = vpop.trf.xlu0  ;;  %609 = vmatprep.mubr.bf16.mxu0 %v2562_v7 }
 0x10a   : > { %2119 = vmatmul.mubr.msk.bf16.gmra.mxu1 %vm378_vm0, %v706_v24  ;;  %v691_v29 = vpop.trf.xlu0 }
 0x10b   : > { %950 = vmatprep.mubr.bf16.mxu1 %v2562_v7  ;;  %v707_v30 = vpack.c.bf16 %v691_v29, %v690_v25 }
 0x10d   : > { %2104 = vmatmul.mubr.msk.bf16.gmra.mxu0 %vm378_vm0, %v365_v28 }
 0x112   : > { %2120 = vmatmul.mubr.msk.bf16.gmra.mxu1 %vm378_vm0, %v707_v30 }
 0x155   : > { %v2770_v31 = vpop.f32.mrf.mxu0 }
 0x157   : > { %v2772_v32 = vpop.f32.mrf.mxu0 }
 0x158   : > { %4118 = vst [vmem:[#allocation2_spill] sm:$0xff] %v2772_v32  ;;  %v961_v33 = vmax.f32 %v2770_v31, %v2772_v32 }
 0x159   : > { %v2776_v34 = vpop.f32.mrf.mxu0 }
 0x15a   : > { %4119 = vst [vmem:[#allocation3_spill] sm:$0xff] %v2776_v34  ;;  %v2778_v35 = vpop.f32.mrf.mxu1  ;;  %962 = vmax.xlane.f32.xlu1 %v961_v33 }
 0x15b   : > { %v2780_v36 = vpop.f32.mrf.mxu0 }
 0x15c   : > { %4120 = vst [vmem:[#allocation4_spill] sm:$0xff] %v2780_v36  ;;  %v2782_v7 = vpop.f32.mrf.mxu1  ;;  %v964_v37 = vmax.f32 %v2776_v34, %v2780_v36 }
 0x15d   : > { %4121 = vst [vmem:[#allocation5_spill] sm:$0xff] %v2782_v7  ;;  %v2786_v38 = vpop.f32.mrf.mxu0 }
 0x15e   : > { %4122 = vst [vmem:[#allocation6_spill] sm:$0xff] %v2786_v38  ;;  %v2788_v39 = vpop.f32.mrf.mxu1  ;;  %965 = vmax.xlane.f32.xlu0 %v964_v37 }
 0x15f   : > { %v2790_v40 = vpop.f32.mrf.mxu0 }
 0x160   : > { %4123 = vst [vmem:[#allocation7_spill] sm:$0xff] %v2790_v40  ;;  %v2792_v41 = vpop.f32.mrf.mxu1  ;;  %v967_v42 = vmax.f32 %v2786_v38, %v2790_v40 }
 0x161   : > { %4124 = vst [vmem:[#allocation8_spill] sm:$0xff] %v2792_v41  ;;  %v2796_v43 = vpop.f32.mrf.mxu0 }
 0x162   : > { %4125 = vst [vmem:[#allocation9_spill] sm:$0xff] %v2796_v43  ;;  %v2798_v44 = vpop.f32.mrf.mxu1  ;;  %968 = vmax.xlane.f32.xlu1 %v967_v42 }
 0x163   : > { %v2800_v45 = vpop.f32.mrf.mxu0 }
 0x164   : > { %4126 = vst [vmem:[#allocation10_spill] sm:$0xff] %v2800_v45  ;;  %v2802_v47 = vpop.f32.mrf.mxu1  ;;  %v970_v48 = vmax.f32 %v2796_v43, %v2800_v45 }
 0x165   : > { %4127 = vst [vmem:[#allocation11_spill] sm:$0xff] %v2802_v47  ;;  %v2806_v49 = vpop.f32.mrf.mxu0 }
 0x166   : > { %4128 = vst [vmem:[#allocation12_spill] sm:$0xff] %v2806_v49  ;;  %v2808_v51 = vpop.f32.mrf.mxu1  ;;  %971 = vmax.xlane.f32.xlu1 %v970_v48 }
 0x167   : > { %v2810_v52 = vpop.f32.mrf.mxu0 }
 0x168   : > { %4129 = vst [vmem:[#allocation13_spill] sm:$0xff] %v2810_v52  ;;  %v2812_v53 = vpop.f32.mrf.mxu1  ;;  %v973_v55 = vmax.f32 %v2806_v49, %v2810_v52 }
 0x169   : > { %4130 = vst [vmem:[#allocation14_spill] sm:$0xff] %v2812_v53  ;;  %v2816_v56 = vpop.f32.mrf.mxu0 }
 0x16a   : > { %4131 = vst [vmem:[#allocation15_spill] sm:$0xff] %v2816_v56  ;;  %v2818_v57 = vpop.f32.mrf.mxu1  ;;  %974 = vmax.xlane.f32.xlu1 %v973_v55 }
 0x16b   : > { %v2820_v46 = vpop.f32.mrf.mxu0 }
 0x16c   : > { %4132 = vst [vmem:[#allocation16_spill] sm:$0xff] %v2820_v46  ;;  %v2822_v50 = vpop.f32.mrf.mxu1  ;;  %v976_v59 = vmax.f32 %v2816_v56, %v2820_v46 }
 0x16d   : > { %4133 = vst [vmem:[#allocation17_spill] sm:$0xff] %v2822_v50  ;;  %v2826_v60 = vpop.f32.mrf.mxu0 }
 0x16e   : > { %4134 = vst [vmem:[#allocation18_spill] sm:$0xff] %v2826_v60  ;;  %v2828_v61 = vpop.f32.mrf.mxu1  ;;  %977 = vmax.xlane.f32.xlu1 %v976_v59 }
 0x16f   : > { %v2830_v63 = vpop.f32.mrf.mxu0 }
 0x170   : > { %4135 = vst [vmem:[#allocation19_spill] sm:$0xff] %v2830_v63  ;;  %v2832_v54 = vpop.f32.mrf.mxu1  ;;  %v979_v58 = vmax.f32 %v2826_v60, %v2830_v63 }
 0x171   : > { %4136 = vst [vmem:[#allocation20_spill] sm:$0xff] %v2832_v54  ;;  %v2836_v0 = vpop.f32.mrf.mxu0 }
 0x172   : > { %4137 = vst [vmem:[#allocation21_spill] sm:$0xff] %v2836_v0  ;;  %v2838_v1 = vpop.f32.mrf.mxu1  ;;  %980 = vmax.xlane.f32.xlu1 %v979_v58 }
 0x173   : > { %v2840_v3 = vpop.f32.mrf.mxu0 }
 0x174   : > { %4138 = vst [vmem:[#allocation22_spill] sm:$0xff] %v2840_v3  ;;  %v2842_v4 = vpop.f32.mrf.mxu1  ;;  %v982_v62 = vmax.f32 %v2836_v0, %v2840_v3  ;;  %v1058_v0 = vmax.f32 %v2788_v39, %v2808_v51 }
 0x175   : > { %4139 = vst [vmem:[#allocation23_spill] sm:$0xff] %v2842_v4  ;;  %v2846_v2 = vpop.f32.mrf.mxu0 }
 0x176   : > { %4140 = vst [vmem:[#allocation24_spill] sm:$0xff] %v2846_v2  ;;  %v2848_v5 = vpop.f32.mrf.mxu1  ;;  %983 = vmax.xlane.f32.xlu1 %v982_v62  ;;  %v1060_v56 = vmax.f32 %v1058_v0, %v2828_v61 }
 0x177   : > { %v2850_v8 = vpop.f32.mrf.mxu0 }
 0x178   : > { %4141 = vst [vmem:[#allocation25_spill] sm:$0xff] %v2850_v8  ;;  %v2852_v9 = vpop.f32.mrf.mxu1  ;;  %v985_v10 = vmax.f32 %v2846_v2, %v2850_v8  ;;  %v1062_v45 = vmax.f32 %v1060_v56, %v2848_v5 }
 0x179   : > { %4142 = vst [vmem:[#allocation26_spill] sm:$0xff] %v2852_v9  ;;  %v2856_v6 = vpop.f32.mrf.mxu0 }
 0x17a   : > { %4143 = vst [vmem:[#allocation27_spill] sm:$0xff] %v2856_v6  ;;  %v2858_v11 = vpop.f32.mrf.mxu1  ;;  %986 = vmax.xlane.f32.xlu1 %v985_v10 }
 0x17b   : > { %v2860_v12 = vpop.f32.mrf.mxu0 }
 0x17c   : > { %4144 = vst [vmem:[#allocation28_spill] sm:$0xff] %v2860_v12  ;;  %v2862_v13 = vpop.f32.mrf.mxu1  ;;  %v988_v14 = vmax.f32 %v2856_v6, %v2860_v12 }
 0x17d   : > { %4145 = vst [vmem:[#allocation29_spill] sm:$0xff] %v2862_v13  ;;  %v2866_v16 = vpop.f32.mrf.mxu0 }
 0x17e   : > { %4146 = vst [vmem:[#allocation30_spill] sm:$0xff] %v2866_v16  ;;  %v2868_v15 = vpop.f32.mrf.mxu1  ;;  %989 = vmax.xlane.f32.xlu1 %v988_v14 }
 0x17f   : > { %v2870_v17 = vpop.f32.mrf.mxu0  ;;  %v1064_v40 = vmax.f32 %v1062_v45, %v2868_v15 }
 0x180   : > { %4147 = vst [vmem:[#allocation31_spill] sm:$0xff] %v2870_v17  ;;  %v2872_v18 = vpop.f32.mrf.mxu1  ;;  %v991_v19 = vmax.f32 %v2866_v16, %v2870_v17 }
 0x181   : > { %4148 = vst [vmem:[#allocation32_spill] sm:$0xff] %v2872_v18  ;;  %v2876_v20 = vpop.f32.mrf.mxu0 }
 0x182   : > { %4149 = vst [vmem:[#allocation33_spill] sm:$0xff] %v2876_v20  ;;  %v2878_v21 = vpop.f32.mrf.mxu1  ;;  %992 = vmax.xlane.f32.xlu1 %v991_v19 }
 0x183   : > { %v2880_v22 = vpop.f32.mrf.mxu0 }
 0x184   : > { %4150 = vst [vmem:[#allocation34_spill] sm:$0xff] %v2880_v22  ;;  %v2882_v23 = vpop.f32.mrf.mxu1  ;;  %v994_v24 = vmax.f32 %v2876_v20, %v2880_v22 }
 0x185   : > { %4151 = vst [vmem:[#allocation35_spill] sm:$0xff] %v2882_v23  ;;  %v2886_v25 = vpop.f32.mrf.mxu0 }
 0x186   : > { %4152 = vst [vmem:[#allocation36_spill] sm:$0xff] %v2886_v25  ;;  %v2888_v26 = vpop.f32.mrf.mxu1  ;;  %995 = vmax.xlane.f32.xlu1 %v994_v24 }
 0x187   : > { %v2890_v27 = vpop.f32.mrf.mxu0  ;;  %v1066_v36 = vmax.f32 %v1064_v40, %v2888_v26  ;;  %v1094_v40 = vmax.f32 %v2782_v7, %v2802_v47 }
 0x188   : > { %4153 = vst [vmem:[#allocation37_spill] sm:$0xff] %v2890_v27  ;;  %v2892_v28 = vpop.f32.mrf.mxu1  ;;  %v997_v29 = vmax.f32 %v2886_v25, %v2890_v27 }
 0x189   : > { %4154 = vst [vmem:[#allocation38_spill] sm:$0xff] %v2892_v28  ;;  %v2896_v30 = vpop.f32.mrf.mxu0 }
 0x18a   : > { %4155 = vst [vmem:[#allocation39_spill] sm:$0xff] %v2896_v30  ;;  %v2898_v33 = vpop.f32.mrf.mxu1  ;;  %998 = vmax.xlane.f32.xlu1 %v997_v29 }
 0x18b   : > { %4156 = vst [vmem:[#allocation40_spill] sm:$0xff] %v2898_v33  ;;  %v2900_v37 = vpop.f32.mrf.mxu0 }
 0x18c   : > { %4157 = vst [vmem:[#allocation41_spill] sm:$0xff] %v2900_v37  ;;  %v2902_v42 = vpop.f32.mrf.mxu1  ;;  %v1000_v48 = vmax.f32 %v2896_v30, %v2900_v37 }
 0x18d   : > { %4158 = vst [vmem:[#allocation42_spill] sm:$0xff] %v2902_v42  ;;  %v2906_v55 = vpop.f32.mrf.mxu0 }
 0x18e   : > { %4159 = vst [vmem:[#allocation43_spill] sm:$0xff] %v2906_v55  ;;  %v2908_v59 = vpop.f32.mrf.mxu1  ;;  %1001 = vmax.xlane.f32.xlu1 %v1000_v48 }
 0x18f   : > { %v2910_v58 = vpop.f32.mrf.mxu0 }
 0x190   : > { %4160 = vst [vmem:[#allocation44_spill] sm:$0xff] %v2910_v58  ;;  %v2912_v62 = vpop.f32.mrf.mxu1  ;;  %v1003_v10 = vmax.f32 %v2906_v55, %v2910_v58 }
 0x191   : > { %4161 = vst [vmem:[#allocation45_spill] sm:$0xff] %v2912_v62  ;;  %v2916_v14 = vpop.f32.mrf.mxu0 }
 0x192   : > { %4162 = vst [vmem:[#allocation46_spill] sm:$0xff] %v2916_v14  ;;  %v2918_v19 = vpop.f32.mrf.mxu1  ;;  %1004 = vmax.xlane.f32.xlu1 %v1003_v10 }
 0x193   : > { %v2920_v24 = vpop.f32.mrf.mxu0 }
 0x194   : > { %4163 = vst [vmem:[#allocation47_spill] sm:$0xff] %v2920_v24  ;;  %v2922_v29 = vpop.f32.mrf.mxu1  ;;  %v1006_v37 = vmax.f32 %v2916_v14, %v2920_v24 }
 0x195   : > { %v2926_v48 = vpop.f32.mrf.mxu0 }
 0x196   : > { %4164 = vst [vmem:[#allocation48_spill] sm:$0xff] %v2926_v48  ;;  %v2928_v30 = vpop.f32.mrf.mxu1  ;;  %1007 = vmax.xlane.f32.xlu1 %v1006_v37 }
 0x197   : > { %v2930_v27 = vpop.f32.mrf.mxu0 }
 0x198   : > { %4165 = vst [vmem:[#allocation49_spill] sm:$0xff] %v2930_v27  ;;  %v2932_v58 = vpop.f32.mrf.mxu1  ;;  %v1009_v55 = vmax.f32 %v2926_v48, %v2930_v27 }
 0x199   : > { %4166 = vst [vmem:[#allocation50_spill] sm:$0xff] %v2932_v58  ;;  %v2936_v10 = vpop.f32.mrf.mxu0 }
 0x19a   : > { %4167 = vst [vmem:[#allocation51_spill] sm:$0xff] %v2936_v10  ;;  %1010 = vmax.xlane.f32.xlu1 %v1009_v55  ;;  %v2938_v25 = vpop.f32.mrf.mxu1 }
 0x19b   : > { %4168 = vst [vmem:[#allocation52_spill] sm:$0xff] %v2938_v25  ;;  %v2940_v22 = vpop.f32.mrf.mxu0 }
 0x19c   : > { %4169 = vst [vmem:[#allocation53_spill] sm:$0xff] %v2940_v22  ;;  %v2942_v24 = vpop.f32.mrf.mxu1  ;;  %v1012_v14 = vmax.f32 %v2936_v10, %v2940_v22 }
 0x19d   : > { %v2946_v37 = vpop.f32.mrf.mxu0 }
 0x19e   : > { %4170 = vst [vmem:[#allocation54_spill] sm:$0xff] %v2946_v37  ;;  %1013 = vmax.xlane.f32.xlu1 %v1012_v14  ;;  %v2948_v20 = vpop.f32.mrf.mxu1 }
 0x19f   : > { %v2950_v17 = vpop.f32.mrf.mxu0 }
 0x1a0   : > { %4171 = vst [vmem:[#allocation55_spill] sm:$0xff] %v2950_v17  ;;  %v2952_v27 = vpop.f32.mrf.mxu1  ;;  %v1015_v55 = vmax.f32 %v2946_v37, %v2950_v17 }
 0x1a1   : > { %v2956_v48 = vpop.f32.mrf.mxu0 }
 0x1a2   : > { %4172 = vst [vmem:[#allocation56_spill] sm:$0xff] %v2956_v48  ;;  %1016 = vmax.xlane.f32.xlu1 %v1015_v55  ;;  %v2958_v16 = vpop.f32.mrf.mxu1 }
 0x1a3   : > { %v2960_v12 = vpop.f32.mrf.mxu0 }
 0x1a4   : > { %4173 = vst [vmem:[#allocation57_spill] sm:$0xff] %v2960_v12  ;;  %v2962_v22 = vpop.f32.mrf.mxu1  ;;  %v1018_v14 = vmax.f32 %v2956_v48, %v2960_v12  ;;  %v1057_v12 = vmax.f32 %v2778_v35, %v2798_v44 }
 0x1a5   : > { %v2966_v10 = vpop.f32.mrf.mxu0 }
 0x1a6   : > { %4174 = vst [vmem:[#allocation58_spill] sm:$0xff] %v2966_v10  ;;  %1019 = vmax.xlane.f32.xlu0 %v1018_v14  ;;  %v2968_v6 = vpop.f32.mrf.mxu1 }
 0x1a7   : > { %v2970_v8 = vpop.f32.mrf.mxu0 }
 0x1a8   : > { %4175 = vst [vmem:[#allocation59_spill] sm:$0xff] %v2970_v8  ;;  %v2972_v17 = vpop.f32.mrf.mxu1  ;;  %v1021_v55 = vmax.f32 %v2966_v10, %v2970_v8 }
 0x1a9   : > { %v2976_v37 = vpop.f32.mrf.mxu0 }
 0x1aa   : > { %4176 = vst [vmem:[#allocation60_spill] sm:$0xff] %v2976_v37  ;;  %1022 = vmax.xlane.f32.xlu1 %v1021_v55  ;;  %v2978_v2 = vpop.f32.mrf.mxu1  ;;  %v1059_v55 = vmax.f32 %v1057_v12, %v2818_v57 }
 0x1ab   : > { %v2982_v48 = vpop.f32.mrf.mxu0 }
 0x1ac   : > { %4177 = vst [vmem:[#allocation61_spill] sm:$0xff] %v2982_v48  ;;  %v2984_v14 = vpop.f32.mrf.mxu1  ;;  %v1024_v3 = vmax.f32 %v2976_v37, %v2982_v48 }
 0x1ad   : > { %v2990_v63 = vpop.f32.mrf.mxu0 }
 0x1ae   : > { %4178 = vst [vmem:[#allocation62_spill] sm:$0xff] %v2990_v63  ;;  %1025 = vmax.xlane.f32.xlu0 %v1024_v3  ;;  %v2992_v8 = vpop.f32.mrf.mxu1  ;;  %v1061_v3 = vmax.f32 %v1059_v55, %v2838_v1 }
 0x1af   : > { %v2995_v10 = vpop.f32.mrf.mxu0 }
 0x1b0   : > { %4179 = vst [vmem:[#allocation63_spill] sm:$0xff] %v2995_v10  ;;  %v2997_v60 = vpop.f32.mrf.mxu1  ;;  %v1027_v46 = vmax.f32 %v2990_v63, %v2995_v10 }
 0x1b1   : > { %v3002_v48 = vpop.f32.mrf.mxu0 }
 0x1b2   : > { %4180 = vst [vmem:[#allocation64_spill] sm:$0xff] %v3002_v48  ;;  %1028 = vmax.xlane.f32.xlu1 %v1027_v46  ;;  %v3004_v37 = vpop.f32.mrf.mxu1  ;;  %v1063_v46 = vmax.f32 %v1061_v3, %v2858_v11 }
 0x1b3   : > { %v3007_v52 = vpop.f32.mrf.mxu0 }
 0x1b4   : > { %4181 = vst [vmem:[#allocation65_spill] sm:$0xff] %v3007_v52  ;;  %v3009_v49 = vpop.f32.mrf.mxu1  ;;  %v1030_v12 = vmax.f32 %v3002_v48, %v3007_v52 }
 0x1b5   : > { %v3014_v43 = vpop.f32.mrf.mxu0 }
 0x1b6   : > { %4182 = vst [vmem:[#allocation66_spill] sm:$0xff] %v3014_v43  ;;  %1031 = vmax.xlane.f32.xlu0 %v1030_v12  ;;  %v3016_v0 = vpop.f32.mrf.mxu1  ;;  %v1065_v12 = vmax.f32 %v1063_v46, %v2878_v21 }
 0x1b7   : > { %v3019_v10 = vpop.f32.mrf.mxu0 }
 0x1b8   : > { %4183 = vst [vmem:[#allocation67_spill] sm:$0xff] %v3019_v10  ;;  %v3021_v63 = vpop.f32.mrf.mxu1  ;;  %v1033_v55 = vmax.f32 %v3014_v43, %v3019_v10  ;;  %v1067_v10 = vmax.f32 %v1065_v12, %v2898_v33 }
 0x1b9   : > { %v3026_v38 = vpop.f32.mrf.mxu0 }
 0x1ba   : > { %4184 = vst [vmem:[#allocation68_spill] sm:$0xff] %v3026_v38  ;;  %1034 = vmax.xlane.f32.xlu1 %v1033_v55  ;;  %v3028_v56 = vpop.f32.mrf.mxu1  ;;  %v1095_v55 = vmax.f32 %v2792_v41, %v2812_v53  ;;  %v1069_v12 = vmax.f32 %v1067_v10, %v2918_v19 }
 0x1bb   : > { %v3031_v52 = vpop.f32.mrf.mxu0 }
 0x1bc   : > { %4185 = vst [vmem:[#allocation69_spill] sm:$0xff] %v3031_v52  ;;  %v3033_v48 = vpop.f32.mrf.mxu1  ;;  %v1036_v3 = vmax.f32 %v3026_v38, %v3031_v52  ;;  %v1068_v52 = vmax.f32 %v1066_v36, %v2908_v59  ;;  %v1097_v53 = vmax.f32 %v1095_v55, %v2832_v54  ;;  %v1071_v10 = vmax.f32 %v1069_v12, %v2938_v25 }
 0x1bd   : > { %v3038_v34 = vpop.f32.mrf.mxu0 }
 0x1be   : > { %4186 = vst [vmem:[#allocation70_spill] sm:$0xff] %v3038_v34  ;;  %1037 = vmax.xlane.f32.xlu0 %v1036_v3  ;;  %v3040_v45 = vpop.f32.mrf.mxu1  ;;  %v1070_v36 = vmax.f32 %v1068_v52, %v2928_v30  ;;  %v1099_v55 = vmax.f32 %v1097_v53, %v2852_v9  ;;  %v1073_v12 = vmax.f32 %v1071_v10, %v2958_v16 }
 0x1bf   : > { %v3045_v46 = vpop.f32.mrf.mxu0 }
 0x1c0   : > { %4187 = vst [vmem:[#allocation71_spill] sm:$0xff] %v3045_v46  ;;  %v3047_v43 = vpop.f32.mrf.mxu1  ;;  %v1039_v32 = vmax.f32 %v3038_v34, %v3045_v46  ;;  %v1096_v34 = vmax.f32 %v1094_v40, %v2822_v50  ;;  %v1072_v52 = vmax.f32 %v1070_v36, %v2948_v20  ;;  %v1101_v53 = vmax.f32 %v1099_v55, %v2872_v18 }
 0x1c1   : > { %v3054_v3 = vpop.f32.mrf.mxu0 }
 0x1c2   : > { %4188 = vst [vmem:[#allocation72_spill] sm:$0xff] %v3054_v3  ;;  %1040 = vmax.xlane.f32.xlu1 %v1039_v32  ;;  %v3056_v38 = vpop.f32.mrf.mxu1  ;;  %v1098_v40 = vmax.f32 %v1096_v34, %v2842_v4  ;;  %v1074_v9 = vmax.f32 %v1072_v52, %v2968_v6  ;;  %v1103_v10 = vmax.f32 %v1101_v53, %v2892_v28 }
 0x1c3   : > { %v3060_v41 = vpop.f32.mrf.mxu0 }
 0x1c4   : > { %4189 = vst [vmem:[#allocation73_spill] sm:$0xff] %v3060_v41  ;;  %v3062_v33 = vpop.f32.mrf.mxu1  ;;  %v1042_v46 = vmax.f32 %v3054_v3, %v3060_v41  ;;  %v1100_v36 = vmax.f32 %v1098_v40, %v2862_v13 }
 0x1c5   : > { %v3068_v47 = vpop.f32.mrf.mxu0 }
 0x1c6   : > { %4190 = vst [vmem:[#allocation74_spill] sm:$0xff] %v3068_v47  ;;  %1043 = vmax.xlane.f32.xlu0 %v1042_v46  ;;  %v3070_v32 = vpop.f32.mrf.mxu1 }
 0x1c7   : > { %v3074_v54 = vpop.f32.mrf.mxu0 }
 0x1c8   : > { %4191 = vst [vmem:[#allocation75_spill] sm:$0xff] %v3074_v54  ;;  %v3076_v7 = vpop.f32.mrf.mxu1  ;;  %v1045_v41 = vmax.f32 %v3068_v47, %v3074_v54  ;;  %v1075_v54 = vmax.f32 %v1073_v12, %v2978_v2 }
 0x1c9   : > { %v3082_v3 = vpop.f32.mrf.mxu0 }
 0x1ca   : > { %4192 = vst [vmem:[#allocation76_spill] sm:$0xff] %v3082_v3  ;;  %1046 = vmax.xlane.f32.xlu1 %v1045_v41  ;;  %v3084_v46 = vpop.f32.mrf.mxu1  ;;  %v1076_v41 = vmax.f32 %v1074_v9, %v2992_v8  ;;  %v1077_v52 = vmax.f32 %v1075_v54, %v3004_v37  ;;  %v1102_v9 = vmax.f32 %v1100_v36, %v2882_v23 }
 0x1cb   : > { %v3089_v50 = vpop.f32.mrf.mxu0  ;;  %v1105_v54 = vmax.f32 %v1103_v10, %v2912_v62 }
 0x1cc   : > { %4193 = vst [vmem:[#allocation77_spill] sm:$0xff] %v3089_v50  ;;  %v3091_v25 = vpop.f32.mrf.mxu1  ;;  %v1048_v34 = vmax.f32 %v3082_v3, %v3089_v50  ;;  %v1078_v18 = vmax.f32 %v1076_v41, %v3016_v0  ;;  %v1079_v12 = vmax.f32 %v1077_v52, %v3028_v56 }
 0x1cd   : > { %v3098_v47 = vpop.f32.mrf.mxu0  ;;  %v1107_v10 = vmax.f32 %v1105_v54, %v2932_v58 }
 0x1ce   : > { %4194 = vst [vmem:[#allocation78_spill] sm:$0xff] %v3098_v47  ;;  %1049 = vmax.xlane.f32.xlu0 %v1048_v34  ;;  %v3100_v55 = vpop.f32.mrf.mxu1  ;;  %v1080_v34 = vmax.f32 %v1078_v18, %v3040_v45  ;;  %v1081_v41 = vmax.f32 %v1079_v12, %v3056_v38  ;;  %v1104_v18 = vmax.f32 %v1102_v9, %v2902_v42 }
 0x1cf   : > { %v3105_v4 = vpop.f32.mrf.mxu0 }
 0x1d0   : > { %4195 = vst [vmem:[#allocation79_spill] sm:$0xff] %v3105_v4  ;;  %v3107_v50 = vpop.f32.mrf.mxu1  ;;  %v1051_v40 = vmax.f32 %v3098_v47, %v3105_v4  ;;  %v1082_v28 = vmax.f32 %v1080_v34, %v3070_v32  ;;  %v1083_v52 = vmax.f32 %v1081_v41, %v3084_v46  ;;  %v1106_v62 = vmax.f32 %v1104_v18, %v2922_v29 }
 0x1d1   : > { %v3114_v3 = vpop.f32.mrf.mxu0 }
 0x1d2   : > { %4196 = vst [vmem:[#allocation80_spill] sm:$0xff] %v3114_v3  ;;  %1052 = vmax.xlane.f32.xlu1 %v1051_v40  ;;  %v3116_v53 = vpop.f32.mrf.mxu1  ;;  %v1084_v40 = vmax.f32 %v1082_v28, %v3100_v55  ;;  %v1108_v9 = vmax.f32 %v1106_v62, %v2942_v24 }
 0x1d3   : > { %v3121_v13 = vpop.f32.mrf.mxu0  ;;  %v1085_v12 = vmax.f32 %v1083_v52, %v3116_v53 }
 0x1d4   : > { %4197 = vst [vmem:[#allocation81_spill] sm:$0xff] %v3121_v13  ;;  %v1054_v36 = vmax.f32 %v3114_v3, %v3121_v13  ;;  %v3125_v4 = vpop.f32.mrf.mxu1  ;;  %v1109_v3 = vmax.f32 %v1107_v10, %v2952_v27 }
 0x1d6   : > { %1055 = vmax.xlane.f32.xlu0 %v1054_v36  ;;  %v3130_v47 = vpop.f32.mrf.mxu1  ;;  %v1111_v41 = vmax.f32 %v1109_v3, %v2972_v17  ;;  %v1110_v36 = vmax.f32 %v1108_v9, %v2962_v22 }
 0x1d7   : > { %v1086_v34 = vmax.f32 %v1084_v40, %v3130_v47 }
 0x1d8   : > { %v1113_v42 = vmax.f32 %v1111_v41, %v2997_v60  ;;  %v1112_v52 = vmax.f32 %v1110_v36, %v2984_v14 }
 0x1d9   : > { %v1087_v13 = vmax.f32 %v1085_v12, %v1086_v34 }
 0x1da   : > { %v1115_v40 = vmax.f32 %v1113_v42, %v3021_v63  ;;  %v1114_v18 = vmax.f32 %v1112_v52, %v3009_v49 }
 0x1db   : > { %v1088_v23 = vrot.slane %v1087_v13, 4 }
 0x1dc   : > { %v1117_v10 = vmax.f32 %v1115_v40, %v3047_v43  ;;  %v1116_v62 = vmax.f32 %v1114_v18, %v3033_v48 }
 0x1dd   : > { %v1089_v28 = vmax.f32 %v1087_v13, %v1088_v23  ;;  %v3147_v13 = vpop.f32.mrf.mxu1 }
 0x1de   : > { %v1119_v3 = vmax.f32 %v1117_v10, %v3076_v7  ;;  %v1118_v23 = vmax.f32 %v1116_v62, %v3062_v33 }
 0x1df   : > { %v1090_v54 = vrot.slane %v1089_v28, 2 }
 0x1e0   : > { %v1121_v34 = vmax.f32 %v1119_v3, %v3107_v50  ;;  %v1120_v42 = vmax.f32 %v1118_v23, %v3091_v25 }
 0x1e1   : > { %v1091_v58 = vmax.f32 %v1089_v28, %v1090_v54 }
 0x1e2   : > { %v1123_v28 = vmax.f32 %v1121_v34, %v3147_v13  ;;  %v1122_v36 = vmax.f32 %v1120_v42, %v3125_v4 }
 0x1e3   : > { %v1092_v12 = vrot.slane %v1091_v58, 1  ;;  %v3153_v41 = vpop.xlane.xlu1 %962 }
 0x1e4   : > { %v1131_v40 = vsub.f32 %v2770_v31, %v3153_v41 }
 0x1e5   : > { %v3151_v9 = vmax.f32 %v1091_v58, %v1092_v12  ;;  %v1124_v12 = vmax.f32 %v1122_v36, %v1123_v28 }
 0x1e6   : > { %v1195_v23 = vmul.f32 1.442695, %v1131_v40 }
 0x1e7   : > { %v1323_v54 = vsub.f32 %v2778_v35, %v3151_v9  ;;  %v1325_v52 = vsub.f32 %v2788_v39, %v3151_v9  ;;  %v1327_v58 = vsub.f32 %v2798_v44, %v3151_v9  ;;  %v1329_v10 = vsub.f32 %v2808_v51, %v3151_v9 }
 0x1e8   : > { %v1331_v62 = vsub.f32 %v2818_v57, %v3151_v9  ;;  %v1333_v35 = vsub.f32 %v2828_v61, %v3151_v9  ;;  %v1335_v31 = vsub.f32 %v2838_v1, %v3151_v9  ;;  %v1337_v44 = vsub.f32 %v2848_v5, %v3151_v9 }
 0x1e9   : > { %v1387_v3 = vmul.f32 1.442695, %v1323_v54  ;;  %v1391_v39 = vmul.f32 1.442695, %v1325_v52  ;;  %v1395_v42 = vmul.f32 1.442695, %v1327_v58  ;;  %v1339_v57 = vsub.f32 %v2858_v11, %v3151_v9 }
 0x1ea   : > { %v1399_v51 = vmul.f32 1.442695, %v1329_v10  ;;  %v1125_v28 = vrot.slane %v1124_v12, 4  ;;  %v1403_v61 = vmul.f32 1.442695, %v1331_v62  ;;  %v1341_v36 = vsub.f32 %v2868_v15, %v3151_v9  ;;  %v4198_v11 = vld [vmem:[#allocation40_spill] sm:$0xff] }
 0x1eb   : > { %v3164_v18 = vpop.xlane.xlu1 %968  ;;  %2226 = vpow2.f32 %v1387_v3  ;;  %v1407_v54 = vmul.f32 1.442695, %v1333_v35  ;;  %v1343_v1 = vsub.f32 %v2878_v21, %v3151_v9  ;;  %v1411_v52 = vmul.f32 1.442695, %v1335_v31  ;;  %v4199_v31 = vld [vmem:[#allocation52_spill] sm:$0xff] }
 0x1ec   : > { %2228 = vpow2.f32 %v1391_v39  ;;  %v1345_v5 = vsub.f32 %v2888_v26, %v3151_v9  ;;  %v1415_v40 = vmul.f32 1.442695, %v1337_v44  ;;  %v1126_v58 = vmax.f32 %v1124_v12, %v1125_v28 }
 0x1ed   : > { %2230 = vpow2.f32 %v1195_v23  ;;  %v1347_v62 = vsub.f32 %v4198_v11, %v3151_v9  ;;  %v1419_v15 = vmul.f32 1.442695, %v1339_v57  ;;  %v1349_v35 = vsub.f32 %v2908_v59, %v3151_v9 }
 0x1ee   : > { %2232 = vpow2.f32 %v1395_v42  ;;  %v1423_v21 = vmul.f32 1.442695, %v1341_v36  ;;  %v1351_v3 = vsub.f32 %v2918_v19, %v3151_v9  ;;  %v1427_v26 = vmul.f32 1.442695, %v1343_v1 }
 0x1ef   : > { %v3174_v34 = vpop.xlane.xlu1 %971  ;;  %2234 = vpow2.f32 %v1399_v51  ;;  %v1353_v12 = vsub.f32 %v2928_v30, %v3151_v9  ;;  %v1431_v39 = vmul.f32 1.442695, %v1345_v5  ;;  %v1127_v23 = vrot.slane %v1126_v58, 2 }
 0x1f0   : > { %2236 = vpow2.f32 %v1403_v61  ;;  %v1355_v42 = vsub.f32 %v4199_v31, %v3151_v9  ;;  %v1435_v44 = vmul.f32 1.442695, %v1347_v62  ;;  %v1357_v59 = vsub.f32 %v2948_v20, %v3151_v9 }
 0x1f1   : > { %2238 = vpow2.f32 %v1407_v54  ;;  %v1439_v51 = vmul.f32 1.442695, %v1349_v35  ;;  %v1359_v19 = vsub.f32 %v2958_v16, %v3151_v9  ;;  %v1443_v30 = vmul.f32 1.442695, %v1351_v3 }
 0x1f2   : > { %2240 = vpow2.f32 %v1411_v52  ;;  %v1361_v57 = vsub.f32 %v2968_v6, %v3151_v9  ;;  %v1447_v61 = vmul.f32 1.442695, %v1353_v12  ;;  %v1128_v36 = vmax.f32 %v1126_v58, %v1127_v23 }
 0x1f3   : > { %v3188_v10 = vpop.xlane.xlu1 %974  ;;  %2242 = vpow2.f32 %v1415_v40  ;;  %v1363_v20 = vsub.f32 %v2978_v2, %v3151_v9  ;;  %v1451_v1 = vmul.f32 1.442695, %v1355_v42  ;;  %v1365_v16 = vsub.f32 %v2992_v8, %v3151_v9 }
 0x1f4   : > { %2244 = vpow2.f32 %v1419_v15  ;;  %v1455_v5 = vmul.f32 1.442695, %v1357_v59  ;;  %v1367_v6 = vsub.f32 %v3004_v37, %v3151_v9  ;;  %v1459_v58 = vmul.f32 1.442695, %v1359_v19 }
 0x1f5   : > { %2246 = vpow2.f32 %v1423_v21  ;;  %v1369_v62 = vsub.f32 %v3016_v0, %v3151_v9  ;;  %v1463_v15 = vmul.f32 1.442695, %v1361_v57  ;;  %v1129_v8 = vrot.slane %v1128_v36, 1 }
 0x1f6   : > { %2248 = vpow2.f32 %v1427_v26  ;;  %v1371_v37 = vsub.f32 %v3028_v56, %v3151_v9  ;;  %v1467_v3 = vmul.f32 1.442695, %v1363_v20  ;;  %v1471_v0 = vmul.f32 1.442695, %v1365_v16 }
 0x1f7   : > { %v3202_v28 = vpop.xlane.xlu1 %977  ;;  %2250 = vpow2.f32 %v1431_v39  ;;  %v1373_v39 = vsub.f32 %v3040_v45, %v3151_v9  ;;  %v1375_v31 = vsub.f32 %v3056_v38, %v3151_v9  ;;  %v1475_v42 = vmul.f32 1.442695, %v1367_v6 }
 0x1f8   : > { %v3208_v54 = vpop.eup %2226  ;;  %2252 = vpow2.f32 %v1435_v44  ;;  %v1377_v59 = vsub.f32 %v3070_v32, %v3151_v9  ;;  %v3246_v19 = vmax.f32 %v1128_v36, %v1129_v8  ;;  %v1483_v38 = vmul.f32 1.442695, %v1371_v37  ;;  %v4210_v37 = vld [vmem:[#allocation8_spill] sm:$0xff] }
 0x1f9   : > { %v3212_v52 = vpop.eup %2228  ;;  %2254 = vpow2.f32 %v1439_v51  ;;  %v1479_v51 = vmul.f32 1.442695, %v1369_v62  ;;  %v1381_v20 = vsub.f32 %v3100_v55, %v3151_v9  ;;  %v1487_v32 = vmul.f32 1.442695, %v1373_v39 }
 0x1fa   : > { %v3216_v40 = vpop.eup %2230  ;;  %2256 = vpow2.f32 %v1443_v30  ;;  %v1675_v11 = vadd.f32 %v3212_v52, %v3208_v54  ;;  %v1379_v30 = vsub.f32 %v3084_v46, %v3151_v9  ;;  %v1383_v16 = vsub.f32 %v3116_v53, %v3151_v9 }
 0x1fb   : > { %v3222_v2 = vpop.eup %2232  ;;  %2258 = vpow2.f32 %v1447_v61  ;;  %v3226_v35 = vpop.xlane.xlu1 %980  ;;  %v1491_v46 = vmul.f32 1.442695, %v1375_v31  ;;  %v1326_v53 = vsub.f32 %v4210_v37, %v3246_v19  ;;  %v1503_v39 = vmul.f32 1.442695, %v1381_v20  ;;  %v4217_v20 = vld [vmem:[#allocation17_spill] sm:$0xff] }
 0x1fc   : > { %v3228_v21 = vpop.eup %2234  ;;  %2260 = vpow2.f32 %v1451_v1  ;;  %v1676_v26 = vadd.f32 %v3222_v2, %v1675_v11  ;;  %v4208_v11 = vld [vmem:[#allocation5_spill] sm:$0xff]  ;;  %v1507_v31 = vmul.f32 1.442695, %v1383_v16 }
 0x1fd   : > { %4200 = vst [vmem:[#allocation40_spill] sm:$0xff] %v3228_v21  ;;  %v3233_v12 = vpop.eup %2236  ;;  %2262 = vpow2.f32 %v1455_v5  ;;  %v1324_v55 = vsub.f32 %v4208_v11, %v3246_v19  ;;  %v1393_v16 = vmul.f32 1.442695, %v1326_v53  ;;  %v4223_v53 = vld [vmem:[#allocation26_spill] sm:$0xff] }
 0x1fe   : > { %4201 = vst [vmem:[#allocation52_spill] sm:$0xff] %v3233_v12  ;;  %v3237_v23 = vpop.eup %2238  ;;  %2264 = vpow2.f32 %v1459_v58  ;;  %v1677_v56 = vadd.f32 %v3228_v21, %v1676_v26  ;;  %v1495_v58 = vmul.f32 1.442695, %v1377_v59  ;;  %v1385_v26 = vsub.f32 %v3130_v47, %v3151_v9 }
 0x1ff   : > { %4202 = vst [vmem:[#allocation82_spill] sm:$0xff] %v3237_v23  ;;  %v3242_v44 = vpop.eup %2240  ;;  %2266 = vpow2.f32 %v1463_v15  ;;  %v3257_v1 = vpop.xlane.xlu1 %983  ;;  %v1499_v15 = vmul.f32 1.442695, %v1379_v30  ;;  %v4215_v30 = vld [vmem:[#allocation14_spill] sm:$0xff] }
 0x200   : > { %4203 = vst [vmem:[#allocation83_spill] sm:$0xff] %v3242_v44  ;;  %v3248_v45 = vpop.eup %2242  ;;  %2268 = vpow2.f32 %v1467_v3  ;;  %v1678_v57 = vadd.f32 %v3233_v12, %v1677_v56  ;;  %v4213_v56 = vld [vmem:[#allocation11_spill] sm:$0xff]  ;;  %v1511_v11 = vmul.f32 1.442695, %v1385_v26 }
 0x201   : > { %4204 = vst [vmem:[#allocation84_spill] sm:$0xff] %v3248_v45  ;;  %v3253_v61 = vpop.eup %2244  ;;  %2270 = vpow2.f32 %v1471_v0  ;;  %v1328_v59 = vsub.f32 %v4213_v56, %v3246_v19 }
 0x202   : > { %4205 = vst [vmem:[#allocation85_spill] sm:$0xff] %v3253_v61  ;;  %v3259_v36 = vpop.eup %2246  ;;  %2272 = vpow2.f32 %v1475_v42  ;;  %v1679_v5 = vadd.f32 %v3237_v23, %v1678_v57  ;;  %v1389_v57 = vmul.f32 1.442695, %v1324_v55  ;;  %v4233_v23 = vld [vmem:[#allocation42_spill] sm:$0xff] }
 0x203   : > { %4206 = vst [vmem:[#allocation86_spill] sm:$0xff] %v3259_v36  ;;  %v3264_v6 = vpop.eup %2248  ;;  %2274 = vpow2.f32 %v1479_v51  ;;  %v1348_v12 = vsub.f32 %v4233_v23, %v3246_v19  ;;  %v4238_v23 = vld [vmem:[#allocation50_spill] sm:$0xff] }
 0x204   : > { %4207 = vst [vmem:[#allocation87_spill] sm:$0xff] %v3264_v6  ;;  %v3268_v62 = vpop.eup %2250  ;;  %2276 = vpow2.f32 %v1483_v38  ;;  %v1680_v8 = vadd.f32 %v3242_v44, %v1679_v5  ;;  %v1330_v38 = vsub.f32 %v4215_v30, %v3246_v19  ;;  %v3286_v5 = vpop.xlane.xlu1 %986 }
 0x205   : > { %4209 = vst [vmem:[#allocation5_spill] sm:$0xff] %v3268_v62  ;;  %v3273_v3 = vpop.eup %2252  ;;  %2278 = vpow2.f32 %v1487_v32  ;;  %v1332_v32 = vsub.f32 %v4217_v20, %v3246_v19  ;;  %v1338_v20 = vsub.f32 %v4223_v53, %v3246_v19 }
 0x206   : > { %4211 = vst [vmem:[#allocation8_spill] sm:$0xff] %v3273_v3  ;;  %v3277_v0 = vpop.eup %2254  ;;  %2280 = vpow2.f32 %v1491_v46  ;;  %v1681_v42 = vadd.f32 %v3248_v45, %v1680_v8 }
 0x207   : > { %4212 = vst [vmem:[#allocation88_spill] sm:$0xff] %v3277_v0  ;;  %v3282_v51 = vpop.eup %2256  ;;  %2282 = vpow2.f32 %v1495_v58  ;;  %v4219_v58 = vld [vmem:[#allocation20_spill] sm:$0xff] }
 0x208   : > { %4214 = vst [vmem:[#allocation11_spill] sm:$0xff] %v3282_v51  ;;  %v3288_v47 = vpop.eup %2258  ;;  %2284 = vpow2.f32 %v1499_v15  ;;  %v1682_v9 = vadd.f32 %v3253_v61, %v1681_v42  ;;  %v1334_v8 = vsub.f32 %v4219_v58, %v3246_v19  ;;  %v4221_v15 = vld [vmem:[#allocation23_spill] sm:$0xff]  ;;  %v1397_v42 = vmul.f32 1.442695, %v1328_v59  ;;  %v4225_v61 = vld [vmem:[#allocation29_spill] sm:$0xff]  ;;  %v4227_v59 = vld [vmem:[#allocation32_spill] sm:$0xff]  ;;  %v3315_v44 = vpop.xlane.xlu1 %989 }
 0x209   : > { %4216 = vst [vmem:[#allocation14_spill] sm:$0xff] %v3288_v47  ;;  %v3293_v46 = vpop.eup %2260  ;;  %2286 = vpow2.f32 %v1503_v39  ;;  %v1336_v56 = vsub.f32 %v4221_v15, %v3246_v19  ;;  %v1401_v39 = vmul.f32 1.442695, %v1330_v38  ;;  %v1342_v15 = vsub.f32 %v4227_v59, %v3246_v19 }
 0x20a   : > { %4218 = vst [vmem:[#allocation17_spill] sm:$0xff] %v3293_v46  ;;  %v3297_v37 = vpop.eup %2262  ;;  %2288 = vpow2.f32 %v1507_v31  ;;  %v1683_v55 = vadd.f32 %v3259_v36, %v1682_v9  ;;  %v1340_v31 = vsub.f32 %v4225_v61, %v3246_v19  ;;  %v1405_v9 = vmul.f32 1.442695, %v1332_v32  ;;  %v4231_v32 = vld [vmem:[#allocation38_spill] sm:$0xff] }
 0x20b   : > { %4220 = vst [vmem:[#allocation20_spill] sm:$0xff] %v3297_v37  ;;  %v3302_v30 = vpop.eup %2264  ;;  %2290 = vpow2.f32 %v1389_v57  ;;  %v1409_v45 = vmul.f32 1.442695, %v1334_v8  ;;  %v1413_v61 = vmul.f32 1.442695, %v1336_v56  ;;  %v4235_v56 = vld [vmem:[#allocation45_spill] sm:$0xff] }
 0x20c   : > { %4222 = vst [vmem:[#allocation23_spill] sm:$0xff] %v3302_v30  ;;  %v3306_v26 = vpop.eup %2266  ;;  %v1684_v58 = vadd.f32 %v3264_v6, %v1683_v55  ;;  %2292 = vpow2.f32 %v1393_v16  ;;  %v4229_v55 = vld [vmem:[#allocation35_spill] sm:$0xff]  ;;  %v1417_v6 = vmul.f32 1.442695, %v1338_v20 }
 0x20d   : > { %4224 = vst [vmem:[#allocation26_spill] sm:$0xff] %v3306_v26  ;;  %v3311_v36 = vpop.eup %2268  ;;  %2294 = vpow2.f32 %v1511_v11  ;;  %v1344_v53 = vsub.f32 %v4229_v55, %v3246_v19  ;;  %v1346_v11 = vsub.f32 %v4231_v32, %v3246_v19  ;;  %v1425_v55 = vmul.f32 1.442695, %v1342_v15 }
 0x20e   : > { %4226 = vst [vmem:[#allocation29_spill] sm:$0xff] %v3311_v36  ;;  %v3317_v57 = vpop.eup %2270  ;;  %v1685_v38 = vadd.f32 %v3268_v62, %v1684_v58  ;;  %2296 = vpow2.f32 %v1397_v42  ;;  %v1421_v58 = vmul.f32 1.442695, %v1340_v31  ;;  %v1350_v42 = vsub.f32 %v4235_v56, %v3246_v19 }
 0x20f   : > { %4228 = vst [vmem:[#allocation32_spill] sm:$0xff] %v3317_v57  ;;  %v3322_v16 = vpop.eup %2272  ;;  %2298 = vpow2.f32 %v1401_v39  ;;  %v1352_v39 = vsub.f32 %v2922_v29, %v3246_v19  ;;  %v1354_v31 = vsub.f32 %v4238_v23, %v3246_v19  ;;  %v1437_v29 = vmul.f32 1.442695, %v1348_v12 }
 0x210   : > { %4230 = vst [vmem:[#allocation35_spill] sm:$0xff] %v3322_v16  ;;  %v3326_v59 = vpop.eup %2274  ;;  %v1686_v8 = vadd.f32 %v3273_v3, %v1685_v38  ;;  %2300 = vpow2.f32 %v1405_v9  ;;  %v1429_v38 = vmul.f32 1.442695, %v1344_v53  ;;  %v1433_v9 = vmul.f32 1.442695, %v1346_v11  ;;  %v3344_v3 = vpop.xlane.xlu1 %992 }
 0x211   : > { %4232 = vst [vmem:[#allocation38_spill] sm:$0xff] %v3326_v59  ;;  %v3331_v62 = vpop.eup %2276  ;;  %2302 = vpow2.f32 %v1409_v45  ;;  %v1358_v53 = vsub.f32 %v2952_v27, %v3246_v19  ;;  %v1441_v56 = vmul.f32 1.442695, %v1350_v42  ;;  %v1360_v23 = vsub.f32 %v2962_v22, %v3246_v19  ;;  %v4243_v27 = vld [vmem:[#allocation2_spill] sm:$0xff] }
 0x212   : > { %4234 = vst [vmem:[#allocation42_spill] sm:$0xff] %v3331_v62  ;;  %v3335_v21 = vpop.eup %2278  ;;  %v1687_v20 = vadd.f32 %v3277_v0, %v1686_v8  ;;  %2304 = vpow2.f32 %v1413_v61  ;;  %v1356_v8 = vsub.f32 %v2942_v24, %v3246_v19  ;;  %v1362_v24 = vsub.f32 %v2972_v17, %v3246_v19 }
 0x213   : > { %4236 = vst [vmem:[#allocation45_spill] sm:$0xff] %v3335_v21  ;;  %v3340_v32 = vpop.eup %2280  ;;  %2306 = vpow2.f32 %v1417_v6  ;;  %v1449_v12 = vmul.f32 1.442695, %v1354_v31  ;;  %v1368_v17 = vsub.f32 %v3009_v49, %v3246_v19  ;;  %v1457_v31 = vmul.f32 1.442695, %v1358_v53 }
 0x214   : > { %4237 = vst [vmem:[#allocation89_spill] sm:$0xff] %v3340_v32  ;;  %v3346_v45 = vpop.eup %2282  ;;  %v1688_v15 = vadd.f32 %v3282_v51, %v1687_v20  ;;  %2308 = vpow2.f32 %v1421_v58  ;;  %v1445_v20 = vmul.f32 1.442695, %v1352_v39  ;;  %v1453_v22 = vmul.f32 1.442695, %v1356_v8 }
 0x215   : > { %4239 = vst [vmem:[#allocation50_spill] sm:$0xff] %v3346_v45  ;;  %v3351_v61 = vpop.eup %2284  ;;  %2310 = vpow2.f32 %v1425_v55  ;;  %v1372_v49 = vsub.f32 %v3033_v48, %v3246_v19  ;;  %v1465_v53 = vmul.f32 1.442695, %v1362_v24 }
 0x216   : > { %4240 = vst [vmem:[#allocation90_spill] sm:$0xff] %v3351_v61  ;;  %v3355_v6 = vpop.eup %2286  ;;  %v1689_v11 = vadd.f32 %v3288_v47, %v1688_v15  ;;  %2312 = vpow2.f32 %v1429_v38  ;;  %v1364_v15 = vsub.f32 %v2984_v14, %v3246_v19  ;;  %v1366_v38 = vsub.f32 %v2997_v60, %v3246_v19  ;;  %v4247_v47 = vld [vmem:[#allocation3_spill] sm:$0xff] }
 0x217   : > { %4241 = vst [vmem:[#allocation91_spill] sm:$0xff] %v3355_v6  ;;  %v3360_v51 = vpop.eup %2288  ;;  %2314 = vpow2.f32 %v1433_v9  ;;  %v3377_v9 = vpop.xlane.xlu1 %995  ;;  %v1461_v14 = vmul.f32 1.442695, %v1360_v23  ;;  %v1370_v60 = vsub.f32 %v3021_v63, %v3246_v19  ;;  %v1376_v63 = vsub.f32 %v3062_v33, %v3246_v19 }
 0x218   : > { %4242 = vst [vmem:[#allocation92_spill] sm:$0xff] %v3360_v51  ;;  %v3366_v42 = vpop.eup %2290  ;;  %v1690_v55 = vadd.f32 %v3293_v46, %v1689_v11  ;;  %2316 = vpow2.f32 %v1437_v29  ;;  %v1473_v48 = vmul.f32 1.442695, %v1366_v38 }
 0x219   : > { %v3371_v39 = vpop.eup %2292  ;;  %2318 = vpow2.f32 %v1441_v56  ;;  %v1481_v33 = vmul.f32 1.442695, %v1370_v60 }
 0x21a   : > { %v3379_v58 = vpop.eup %2294  ;;  %v1691_v11 = vadd.f32 %v3297_v37, %v1690_v55  ;;  %2320 = vpow2.f32 %v1445_v20  ;;  %v1712_v8 = vadd.f32 %v3371_v39, %v3366_v42  ;;  %v1469_v20 = vmul.f32 1.442695, %v1364_v15 }
 0x21b   : > { %4244 = vst [vmem:[#allocation2_spill] sm:$0xff] %v3379_v58  ;;  %v3384_v29 = vpop.eup %2296  ;;  %2322 = vpow2.f32 %v1449_v12  ;;  %v1374_v37 = vsub.f32 %v3047_v43, %v3246_v19  ;;  %v1380_v43 = vsub.f32 %v3091_v25, %v3246_v19  ;;  %v1384_v25 = vsub.f32 %v3125_v4, %v3246_v19 }
 0x21c   : > { %v3390_v56 = vpop.eup %2298  ;;  %v1692_v46 = vadd.f32 %v3302_v30, %v1691_v11  ;;  %2324 = vpow2.f32 %v1453_v22  ;;  %v1713_v23 = vadd.f32 %v3384_v29, %v1712_v8  ;;  %v1477_v11 = vmul.f32 1.442695, %v1368_v17 }
 0x21d   : > { %v3394_v55 = vpop.eup %2300  ;;  %2326 = vpow2.f32 %v1457_v31  ;;  %v1378_v8 = vsub.f32 %v3076_v7, %v3246_v19  ;;  %v3410_v31 = vpop.xlane.xlu1 %998  ;;  %v1485_v17 = vmul.f32 1.442695, %v1372_v49  ;;  %v1382_v7 = vsub.f32 %v3107_v50, %v3246_v19 }
 0x21e   : > { %v3400_v12 = vpop.eup %2302  ;;  %v1693_v24 = vadd.f32 %v3306_v26, %v1692_v46  ;;  %2328 = vpow2.f32 %v1461_v14  ;;  %v1714_v15 = vadd.f32 %v3390_v56, %v1713_v23  ;;  %v966_v23 = vpop.xlane.xlu0 %965  ;;  %v1489_v60 = vmul.f32 1.442695, %v1374_v37 }
 0x21f   : > { %v3404_v22 = vpop.eup %2304  ;;  %2330 = vpow2.f32 %v1465_v53  ;;  %v1133_v50 = vsub.f32 %v4247_v47, %v966_v23 }
 0x220   : > { %v3412_v38 = vpop.eup %2306  ;;  %v1694_v46 = vadd.f32 %v3311_v36, %v1693_v24  ;;  %2332 = vpow2.f32 %v1469_v20  ;;  %v1715_v14 = vadd.f32 %v3394_v55, %v1714_v15  ;;  %v1493_v20 = vmul.f32 1.442695, %v1376_v63 }
 0x221   : > { %v3416_v26 = vpop.eup %2308  ;;  %2334 = vpow2.f32 %v1473_v48  ;;  %v1497_v15 = vmul.f32 1.442695, %v1378_v8  ;;  %v1501_v36 = vmul.f32 1.442695, %v1380_v43  ;;  %v4249_v48 = vld [vmem:[#allocation4_spill] sm:$0xff]  ;;  %v4252_v8 = vld [vmem:[#allocation7_spill] sm:$0xff]  ;;  %v3440_v47 = vpop.xlane.xlu1 %1001 }
 0x222   : > { %v3422_v53 = vpop.eup %2310  ;;  %v1695_v30 = vadd.f32 %v3317_v57, %v1694_v46  ;;  %2336 = vpow2.f32 %v1477_v11  ;;  %v1716_v49 = vadd.f32 %v3400_v12, %v1715_v14  ;;  %v1134_v46 = vsub.f32 %v4249_v48, %v966_v23  ;;  %v4251_v14 = vld [vmem:[#allocation6_spill] sm:$0xff] }
 0x223   : > { %4245 = vst [vmem:[#allocation93_spill] sm:$0xff] %v3422_v53  ;;  %v3426_v24 = vpop.eup %2312  ;;  %2338 = vpow2.f32 %v1481_v33  ;;  %v1505_v63 = vmul.f32 1.442695, %v1382_v7  ;;  %v1135_v33 = vsub.f32 %v4251_v14, %v3164_v18  ;;  %v1136_v43 = vsub.f32 %v4252_v8, %v3164_v18  ;;  %v4256_v18 = vld [vmem:[#allocation9_spill] sm:$0xff] }
 0x224   : > { %4246 = vst [vmem:[#allocation94_spill] sm:$0xff] %v3426_v24  ;;  %v3429_v0 = vpop.eup %2314  ;;  %v1696_v4 = vadd.f32 %v3322_v16, %v1695_v30  ;;  %2340 = vpow2.f32 %v1485_v17  ;;  %v1717_v37 = vadd.f32 %v3404_v22, %v1716_v49  ;;  %v1509_v17 = vmul.f32 1.442695, %v1384_v25 }
 0x225   : > { %4248 = vst [vmem:[#allocation3_spill] sm:$0xff] %v3429_v0  ;;  %v3434_v11 = vpop.eup %2316  ;;  %2342 = vpow2.f32 %v1489_v60  ;;  %v4255_v7 = vsub.f32 %v4243_v27, %v3153_v41  ;;  %v1199_v48 = vmul.f32 1.442695, %v1133_v50  ;;  %v1137_v14 = vsub.f32 %v4256_v18, %v3174_v34  ;;  %v4259_v41 = vld [vmem:[#allocation10_spill] sm:$0xff] }
 0x226   : > { %4250 = vst [vmem:[#allocation4_spill] sm:$0xff] %v3434_v11  ;;  %v3442_v57 = vpop.eup %2318  ;;  %v1697_v30 = vadd.f32 %v3326_v59, %v1696_v4  ;;  %2344 = vpow2.f32 %v1493_v20  ;;  %v1718_v23 = vadd.f32 %v3412_v38, %v1717_v37  ;;  %v1201_v20 = vmul.f32 1.442695, %v1134_v46 }
 0x227   : > { %4253 = vst [vmem:[#allocation6_spill] sm:$0xff] %v3442_v57  ;;  %v3446_v49 = vpop.eup %2320  ;;  %2346 = vpow2.f32 %v1497_v15  ;;  %v1197_v60 = vmul.f32 1.442695, %v4255_v7  ;;  %v1203_v15 = vmul.f32 1.442695, %v1135_v33  ;;  %v1138_v27 = vsub.f32 %v4259_v41, %v3174_v34  ;;  %v3473_v41 = vpop.xlane.xlu1 %1004 }
 0x228   : > { %4254 = vst [vmem:[#allocation7_spill] sm:$0xff] %v3446_v49  ;;  %v3453_v8 = vpop.eup %2322  ;;  %v1698_v16 = vadd.f32 %v3331_v62, %v1697_v30  ;;  %2348 = vpow2.f32 %v1501_v36  ;;  %v1719_v25 = vadd.f32 %v3416_v26, %v1718_v23  ;;  %v1205_v37 = vmul.f32 1.442695, %v1136_v43  ;;  %v4261_v36 = vld [vmem:[#allocation12_spill] sm:$0xff]  ;;  %v4264_v43 = vld [vmem:[#allocation15_spill] sm:$0xff] }
 0x229   : > { %4257 = vst [vmem:[#allocation9_spill] sm:$0xff] %v3453_v8  ;;  %v3457_v4 = vpop.eup %2324  ;;  %2350 = vpow2.f32 %v1505_v63  ;;  %v1139_v30 = vsub.f32 %v4261_v36, %v3188_v10  ;;  %v1207_v46 = vmul.f32 1.442695, %v1137_v14  ;;  %v4263_v63 = vld [vmem:[#allocation13_spill] sm:$0xff]  ;;  %v1141_v34 = vsub.f32 %v4264_v43, %v3202_v28  ;;  %v4269_v43 = vld [vmem:[#allocation19_spill] sm:$0xff] }
 0x22a   : > { %4258 = vst [vmem:[#allocation95_spill] sm:$0xff] %v3457_v4  ;;  %v3461_v50 = vpop.eup %2326  ;;  %v1699_v7 = vadd.f32 %v3335_v21, %v1698_v16  ;;  %2352 = vpow2.f32 %v1509_v17  ;;  %v1720_v18 = vadd.f32 %v3422_v53, %v1719_v25  ;;  %v1140_v33 = vsub.f32 %v4263_v63, %v3188_v10  ;;  %v4266_v25 = vld [vmem:[#allocation16_spill] sm:$0xff]  ;;  %v4268_v10 = vld [vmem:[#allocation18_spill] sm:$0xff] }
 0x22b   : > { %4260 = vst [vmem:[#allocation10_spill] sm:$0xff] %v3461_v50  ;;  %v3467_v23 = vpop.eup %2328  ;;  %2354 = vpow2.f32 %v1197_v60  ;;  %v1142_v36 = vsub.f32 %v4266_v25, %v3202_v28  ;;  %v1209_v14 = vmul.f32 1.442695, %v1138_v27  ;;  %v1143_v63 = vsub.f32 %v4268_v10, %v3226_v35  ;;  %v4272_v27 = vld [vmem:[#allocation21_spill] sm:$0xff] }
 0x22c   : > { %4262 = vst [vmem:[#allocation12_spill] sm:$0xff] %v3467_v23  ;;  %v3475_v62 = vpop.eup %2330  ;;  %v1700_v16 = vadd.f32 %v3340_v32, %v1699_v7  ;;  %v1721_v17 = vadd.f32 %v3426_v24, %v1720_v18  ;;  %2356 = vpow2.f32 %v1199_v48  ;;  %v1144_v21 = vsub.f32 %v4269_v43, %v3226_v35 }
 0x22d   : > { %4265 = vst [vmem:[#allocation13_spill] sm:$0xff] %v3475_v62  ;;  %v3481_v60 = vpop.eup %2332  ;;  %2358 = vpow2.f32 %v1201_v20  ;;  %v1211_v48 = vmul.f32 1.442695, %v1139_v30  ;;  %v1213_v28 = vmul.f32 1.442695, %v1140_v33  ;;  %v1145_v25 = vsub.f32 %v4272_v27, %v3257_v1 }
 0x22e   : > { %4267 = vst [vmem:[#allocation15_spill] sm:$0xff] %v3481_v60  ;;  %v3487_v59 = vpop.eup %2334  ;;  %v1701_v7 = vadd.f32 %v3346_v45, %v1700_v16  ;;  %v1722_v18 = vadd.f32 %v3429_v0, %v1721_v17  ;;  %2360 = vpow2.f32 %v1203_v15  ;;  %v1215_v20 = vmul.f32 1.442695, %v1141_v34  ;;  %v3503_v34 = vpop.xlane.xlu1 %1007 }
 0x22f   : > { %4270 = vst [vmem:[#allocation16_spill] sm:$0xff] %v3487_v59  ;;  %v3491_v32 = vpop.eup %2336  ;;  %2362 = vpow2.f32 %v1205_v37  ;;  %v1217_v16 = vmul.f32 1.442695, %v1142_v36  ;;  %v1219_v15 = vmul.f32 1.442695, %v1143_v63  ;;  %v4275_v37 = vld [vmem:[#allocation22_spill] sm:$0xff] }
 0x230   : > { %4271 = vst [vmem:[#allocation18_spill] sm:$0xff] %v3491_v32  ;;  %v3495_v10 = vpop.eup %2338  ;;  %v1702_v35 = vadd.f32 %v3351_v61, %v1701_v7  ;;  %v1723_v43 = vadd.f32 %v3434_v11, %v1722_v18  ;;  %2364 = vpow2.f32 %v1207_v46  ;;  %v1221_v30 = vmul.f32 1.442695, %v1144_v21  ;;  %v4277_v46 = vld [vmem:[#allocation24_spill] sm:$0xff]  ;;  %v4279_v21 = vld [vmem:[#allocation25_spill] sm:$0xff] }
 0x231   : > { %4273 = vst [vmem:[#allocation19_spill] sm:$0xff] %v3495_v10  ;;  %v3499_v45 = vpop.eup %2340  ;;  %2366 = vpow2.f32 %v1209_v14  ;;  %v1146_v33 = vsub.f32 %v4275_v37, %v3257_v1  ;;  %v1147_v36 = vsub.f32 %v4277_v46, %v3286_v5  ;;  %v1223_v14 = vmul.f32 1.442695, %v1145_v25  ;;  %v4280_v1 = vld [vmem:[#allocation27_spill] sm:$0xff]  ;;  %v4284_v25 = vld [vmem:[#allocation30_spill] sm:$0xff] }
 0x232   : > { %4274 = vst [vmem:[#allocation21_spill] sm:$0xff] %v3499_v45  ;;  %v3505_v17 = vpop.eup %2342  ;;  %v1703_v27 = vadd.f32 %v3355_v6, %v1702_v35  ;;  %v1724_v7 = vadd.f32 %v3442_v57, %v1723_v43  ;;  %2368 = vpow2.f32 %v1211_v48  ;;  %v1148_v63 = vsub.f32 %v4279_v21, %v3286_v5  ;;  %v4282_v48 = vld [vmem:[#allocation28_spill] sm:$0xff] }
 0x233   : > { %4276 = vst [vmem:[#allocation22_spill] sm:$0xff] %v3505_v17  ;;  %v3511_v18 = vpop.eup %2344  ;;  %2370 = vpow2.f32 %v1213_v28  ;;  %v1149_v37 = vsub.f32 %v4280_v1, %v3315_v44  ;;  %v1150_v46 = vsub.f32 %v4282_v48, %v3315_v44  ;;  %v1225_v28 = vmul.f32 1.442695, %v1146_v33 }
 0x234   : > { %4278 = vst [vmem:[#allocation24_spill] sm:$0xff] %v3511_v18  ;;  %v3517_v61 = vpop.eup %2346  ;;  %v1704_v35 = vadd.f32 %v3360_v51, %v1703_v27  ;;  %v1725_v43 = vadd.f32 %v3446_v49, %v1724_v7  ;;  %2372 = vpow2.f32 %v1215_v20  ;;  %v1151_v5 = vsub.f32 %v4284_v25, %v3344_v3  ;;  %v3537_v51 = vpop.xlane.xlu1 %1010 }
 0x235   : > { %4281 = vst [vmem:[#allocation25_spill] sm:$0xff] %v3517_v61  ;;  %v3523_v6 = vpop.eup %2348  ;;  %2374 = vpow2.f32 %v1217_v16  ;;  %v1227_v7 = vmul.f32 1.442695, %v1147_v36  ;;  %v1229_v44 = vmul.f32 1.442695, %v1148_v63  ;;  %v4288_v16 = vld [vmem:[#allocation31_spill] sm:$0xff] }
 0x236   : > { %4283 = vst [vmem:[#allocation27_spill] sm:$0xff] %v3523_v6  ;;  %v3527_v21 = vpop.eup %2350  ;;  %v3530_v1 = vadd.f32 %v3379_v58, %v1704_v35  ;;  %v1726_v27 = vadd.f32 %v3453_v8, %v1725_v43  ;;  %2376 = vpow2.f32 %v1219_v15  ;;  %v1231_v48 = vmul.f32 1.442695, %v1149_v37  ;;  %v4289_v43 = vld [vmem:[#allocation33_spill] sm:$0xff] }
 0x237   : > { %4285 = vst [vmem:[#allocation28_spill] sm:$0xff] %v3527_v21  ;;  %v3533_v20 = vpop.eup %2352  ;;  %2378 = vpow2.f32 %v1221_v30  ;;  %v1152_v33 = vsub.f32 %v4288_v16, %v3344_v3  ;;  %v1233_v35 = vmul.f32 1.442695, %v1150_v46  ;;  %v1153_v15 = vsub.f32 %v4289_v43, %v3377_v9  ;;  %v4290_v3 = vld [vmem:[#allocation34_spill] sm:$0xff] }
 0x238   : > { %4286 = vst [vmem:[#allocation30_spill] sm:$0xff] %v3530_v1  ;;  %4287 = vst [vmem:[#allocation96_spill] sm:$0xff] %v3533_v20  ;;  %v3539_v25 = vpop.eup %2354  ;;  %v1727_v49 = vadd.f32 %v3457_v4, %v1726_v27  ;;  %2380 = vpow2.f32 %v1223_v14  ;;  %v1235_v63 = vmul.f32 1.442695, %v1151_v5  ;;  %v1154_v37 = vsub.f32 %v4290_v3, %v3377_v9  ;;  %v4291_v14 = vld [vmem:[#allocation36_spill] sm:$0xff]  ;;  %v4292_v27 = vld [vmem:[#allocation37_spill] sm:$0xff] }
 0x239   : > { %v3544_v36 = vpop.eup %2356  ;;  %v1515_v30 = vadd.f32 %v3539_v25, %v3216_v40  ;;  %2382 = vpow2.f32 %v1225_v28  ;;  %v1155_v46 = vsub.f32 %v4291_v14, %v3410_v31  ;;  %v1156_v43 = vsub.f32 %v4292_v27, %v3410_v31  ;;  %v4293_v9 = vld [vmem:[#allocation39_spill] sm:$0xff]  ;;  %v4294_v14 = vld [vmem:[#allocation41_spill] sm:$0xff] }
 0x23a   : > { %v3550_v16 = vpop.eup %2358  ;;  %v1728_v58 = vadd.f32 %v3461_v50, %v1727_v49  ;;  %2384 = vpow2.f32 %v1227_v7  ;;  %v1237_v5 = vmul.f32 1.442695, %v1152_v33  ;;  %v1157_v3 = vsub.f32 %v4293_v9, %v3440_v47  ;;  %v3574_v9 = vpop.xlane.xlu1 %1013 }
 0x23b   : > { %v3557_v4 = vpop.eup %2360  ;;  %1516 = vadd.xlane.f32.xlu1 %v1515_v30  ;;  %v1518_v28 = vadd.f32 %v3550_v16, %v3544_v36  ;;  %2386 = vpow2.f32 %v1229_v44  ;;  %v1239_v7 = vmul.f32 1.442695, %v1153_v15  ;;  %v1158_v31 = vsub.f32 %v4294_v14, %v3440_v47 }
 0x23c   : > { %v3563_v8 = vpop.eup %2362  ;;  %v1729_v49 = vadd.f32 %v3467_v23, %v1728_v58  ;;  %2388 = vpow2.f32 %v1231_v48  ;;  %v1386_v30 = vsub.f32 %v3147_v13, %v3246_v19  ;;  %v1241_v33 = vmul.f32 1.442695, %v1154_v37 }
 0x23d   : > { %v3568_v27 = vpop.eup %2364  ;;  %1519 = vadd.xlane.f32.xlu0 %v1518_v28  ;;  %v1521_v44 = vadd.f32 %v3563_v8, %v3557_v4  ;;  %2390 = vpow2.f32 %v1233_v35  ;;  %v1243_v48 = vmul.f32 1.442695, %v1155_v46  ;;  %v1245_v47 = vmul.f32 1.442695, %v1156_v43  ;;  %v4295_v35 = vld [vmem:[#allocation43_spill] sm:$0xff] }
 0x23e   : > { %v3576_v50 = vpop.eup %2366  ;;  %v1730_v58 = vadd.f32 %v3475_v62, %v1729_v49  ;;  %2392 = vpow2.f32 %v1235_v63  ;;  %v1247_v19 = vmul.f32 1.442695, %v1157_v3  ;;  %v1159_v37 = vsub.f32 %v4295_v35, %v3473_v41  ;;  %v4296_v63 = vld [vmem:[#allocation44_spill] sm:$0xff]  ;;  %v4298_v35 = vld [vmem:[#allocation47_spill] sm:$0xff] }
 0x23f   : > { %v3579_v15 = vpop.eup %2368  ;;  %1522 = vadd.xlane.f32.xlu1 %v1521_v44  ;;  %v1524_v13 = vadd.f32 %v3576_v50, %v3568_v27  ;;  %2394 = vpow2.f32 %v1237_v5  ;;  %v1249_v49 = vmul.f32 1.442695, %v1158_v31  ;;  %v1160_v46 = vsub.f32 %v4296_v63, %v3473_v41  ;;  %v4297_v5 = vld [vmem:[#allocation46_spill] sm:$0xff]  ;;  %v4299_v41 = vld [vmem:[#allocation48_spill] sm:$0xff] }
 0x240   : > { %v3585_v28 = vpop.eup %2370  ;;  %v1731_v14 = vadd.f32 %v3481_v60, %v1730_v58  ;;  %2396 = vpow2.f32 %v1239_v7  ;;  %v1161_v3 = vsub.f32 %v4297_v5, %v3503_v34  ;;  %v1162_v62 = vsub.f32 %v4298_v35, %v3503_v34  ;;  %v4300_v5 = vld [vmem:[#allocation49_spill] sm:$0xff]  ;;  %v1017_v35 = vpop.xlane.xlu1 %1016 }
 0x241   : > { %v3590_v43 = vpop.eup %2372  ;;  %1525 = vadd.xlane.f32.xlu0 %v1524_v13  ;;  %v1527_v44 = vadd.f32 %v3585_v28, %v3579_v15  ;;  %2398 = vpow2.f32 %v1241_v33  ;;  %v1513_v7 = vmul.f32 1.442695, %v1386_v30  ;;  %v1163_v58 = vsub.f32 %v4299_v41, %v3537_v51 }
 0x242   : > { %v3598_v23 = vpop.eup %2374  ;;  %v1732_v31 = vadd.f32 %v3487_v59, %v1731_v14  ;;  %2400 = vpow2.f32 %v1243_v48  ;;  %v1251_v63 = vmul.f32 1.442695, %v1159_v37  ;;  %v1164_v34 = vsub.f32 %v4300_v5, %v3537_v51  ;;  %v4301_v14 = vld [vmem:[#allocation51_spill] sm:$0xff]  ;;  %v1020_v51 = vpop.xlane.xlu0 %1019 }
 0x243   : > { %v3603_v13 = vpop.eup %2376  ;;  %1528 = vadd.xlane.f32.xlu1 %v1527_v44  ;;  %v1530_v33 = vadd.f32 %v3598_v23, %v3590_v43  ;;  %2402 = vpow2.f32 %v1245_v47  ;;  %v1253_v48 = vmul.f32 1.442695, %v1160_v46  ;;  %v1165_v41 = vsub.f32 %v4301_v14, %v3574_v9  ;;  %v4302_v46 = vld [vmem:[#allocation53_spill] sm:$0xff] }
 0x244   : > { %v3609_v60 = vpop.eup %2378  ;;  %v1733_v30 = vadd.f32 %v3491_v32, %v1732_v31  ;;  %2404 = vpow2.f32 %v1247_v19  ;;  %v1255_v37 = vmul.f32 1.442695, %v1161_v3  ;;  %v1257_v44 = vmul.f32 1.442695, %v1162_v62  ;;  %v4303_v3 = vld [vmem:[#allocation54_spill] sm:$0xff]  ;;  %v1023_v1 = vpop.xlane.xlu1 %1022 }
 0x245   : > { %v3614_v59 = vpop.eup %2380  ;;  %1531 = vadd.xlane.f32.xlu0 %v1530_v33  ;;  %v1533_v47 = vadd.f32 %v3609_v60, %v3603_v13  ;;  %2406 = vpow2.f32 %v1249_v49  ;;  %v1259_v19 = vmul.f32 1.442695, %v1163_v58  ;;  %v1166_v32 = vsub.f32 %v4302_v46, %v3574_v9  ;;  %v4306_v46 = vld [vmem:[#allocation57_spill] sm:$0xff] }
 0x246   : > { %v3618_v5 = vpop.eup %2382  ;;  %2408 = vpow2.f32 %v1513_v7  ;;  %v1734_v31 = vadd.f32 %v3495_v10, %v1733_v30  ;;  %v1261_v49 = vmul.f32 1.442695, %v1164_v34  ;;  %v1167_v62 = vsub.f32 %v4303_v3, %v1017_v35  ;;  %v4304_v30 = vld [vmem:[#allocation55_spill] sm:$0xff]  ;;  %v1026_v11 = vpop.xlane.xlu0 %1025 }
 0x247   : > { %v3623_v14 = vpop.eup %2384  ;;  %1534 = vadd.xlane.f32.xlu1 %v1533_v47  ;;  %v1536_v33 = vadd.f32 %v3618_v5, %v3614_v59  ;;  %2410 = vpow2.f32 %v1251_v63  ;;  %v1263_v58 = vmul.f32 1.442695, %v1165_v41  ;;  %v1168_v10 = vsub.f32 %v4304_v30, %v1017_v35  ;;  %v4305_v63 = vld [vmem:[#allocation56_spill] sm:$0xff]  ;;  %v4307_v41 = vld [vmem:[#allocation58_spill] sm:$0xff] }
 0x248   : > { %v3628_v57 = vpop.eup %2386  ;;  %v1735_v7 = vadd.f32 %v3499_v45, %v1734_v31  ;;  %2412 = vpow2.f32 %v1253_v48  ;;  %v1169_v34 = vsub.f32 %v4305_v63, %v1020_v51  ;;  %v1170_v3 = vsub.f32 %v4306_v46, %v1020_v51  ;;  %v4308_v63 = vld [vmem:[#allocation59_spill] sm:$0xff] }
 0x249   : > { %v3632_v9 = vpop.eup %2388  ;;  %1537 = vadd.xlane.f32.xlu0 %v1536_v33  ;;  %v1539_v47 = vadd.f32 %v3628_v57, %v3623_v14  ;;  %2414 = vpow2.f32 %v1255_v37  ;;  %v1265_v48 = vmul.f32 1.442695, %v1166_v32  ;;  %v1171_v35 = vsub.f32 %v4307_v41, %v1023_v1 }
 0x24a   : > { %v3638_v0 = vpop.eup %2390  ;;  %v1736_v31 = vadd.f32 %v3505_v17, %v1735_v7  ;;  %2416 = vpow2.f32 %v1257_v44  ;;  %v1267_v37 = vmul.f32 1.442695, %v1167_v62  ;;  %v1172_v45 = vsub.f32 %v4308_v63, %v1023_v1  ;;  %v4309_v44 = vld [vmem:[#allocation60_spill] sm:$0xff]  ;;  %v1029_v17 = vpop.xlane.xlu1 %1028 }
 0x24b   : > { %v3642_v30 = vpop.eup %2392  ;;  %1540 = vadd.xlane.f32.xlu1 %v1539_v47  ;;  %v1542_v33 = vadd.f32 %v3638_v0, %v3632_v9  ;;  %2418 = vpow2.f32 %v1259_v19  ;;  %v1269_v7 = vmul.f32 1.442695, %v1168_v10  ;;  %v1173_v32 = vsub.f32 %v4309_v44, %v1026_v11  ;;  %v1032_v63 = vpop.xlane.xlu0 %1031 }
 0x24c   : > { %v3647_v51 = vpop.eup %2394  ;;  %v1737_v46 = vadd.f32 %v3511_v18, %v1736_v31  ;;  %2420 = vpow2.f32 %v1261_v49  ;;  %v1271_v19 = vmul.f32 1.442695, %v1169_v34  ;;  %v1273_v62 = vmul.f32 1.442695, %v1170_v3  ;;  %v4311_v49 = vld [vmem:[#allocation61_spill] sm:$0xff] }
 0x24d   : > { %v3651_v41 = vpop.eup %2396  ;;  %1543 = vadd.xlane.f32.xlu0 %v1542_v33  ;;  %v1545_v47 = vadd.f32 %v3647_v51, %v3642_v30  ;;  %2422 = vpow2.f32 %v1263_v58  ;;  %v1275_v31 = vmul.f32 1.442695, %v1171_v35  ;;  %v1174_v10 = vsub.f32 %v4311_v49, %v1026_v11  ;;  %v4312_v58 = vld [vmem:[#allocation62_spill] sm:$0xff]  ;;  %v4314_v35 = vld [vmem:[#allocation63_spill] sm:$0xff] }
 0x24e   : > { %v3655_v24 = vpop.eup %2398  ;;  %v1738_v1 = vadd.f32 %v3517_v61, %v1737_v46  ;;  %2424 = vpow2.f32 %v1265_v48  ;;  %v1277_v18 = vmul.f32 1.442695, %v1172_v45  ;;  %v1175_v34 = vsub.f32 %v4312_v58, %v1029_v17  ;;  %v1035_v11 = vpop.xlane.xlu1 %1034  ;;  %v4316_v61 = vld [vmem:[#allocation65_spill] sm:$0xff] }
 0x24f   : > { %4310 = vst [vmem:[#allocation31_spill] sm:$0xff] %v3655_v24  ;;  %v3659_v44 = vpop.eup %2400  ;;  %1546 = vadd.xlane.f32.xlu1 %v1545_v47  ;;  %v1548_v33 = vadd.f32 %v3655_v24, %v3651_v41  ;;  %2426 = vpow2.f32 %v1267_v37  ;;  %v1279_v48 = vmul.f32 1.442695, %v1173_v32  ;;  %v1176_v46 = vsub.f32 %v4314_v35, %v1029_v17  ;;  %v4315_v37 = vld [vmem:[#allocation64_spill] sm:$0xff]  ;;  %v1038_v32 = vpop.xlane.xlu0 %1037 }
 0x250   : > { %v3664_v3 = vpop.eup %2402  ;;  %v1739_v53 = vadd.f32 %v3523_v6, %v1738_v1  ;;  %2428 = vpow2.f32 %v1269_v7  ;;  %v1177_v45 = vsub.f32 %v4315_v37, %v1032_v63  ;;  %v1178_v58 = vsub.f32 %v4316_v61, %v1032_v63 }
 0x251   : > { %4313 = vst [vmem:[#allocation33_spill] sm:$0xff] %v3664_v3  ;;  %v3668_v49 = vpop.eup %2404  ;;  %1549 = vadd.xlane.f32.xlu0 %v1548_v33  ;;  %v1551_v47 = vadd.f32 %v3664_v3, %v3659_v44  ;;  %2430 = vpow2.f32 %v1271_v19  ;;  %v1281_v7 = vmul.f32 1.442695, %v1174_v10  ;;  %v1283_v35 = vmul.f32 1.442695, %v1175_v34  ;;  %v4319_v19 = vld [vmem:[#allocation66_spill] sm:$0xff] }
 0x252   : > { %v3674_v24 = vpop.eup %2406  ;;  %v1740_v1 = vadd.f32 %v3527_v21, %v1739_v53  ;;  %2432 = vpow2.f32 %v1273_v62  ;;  %v1179_v6 = vsub.f32 %v4319_v19, %v1035_v11  ;;  %v1285_v63 = vmul.f32 1.442695, %v1176_v46  ;;  %v4320_v53 = vld [vmem:[#allocation67_spill] sm:$0xff]  ;;  %v1041_v10 = vpop.xlane.xlu1 %1040  ;;  %v4324_v46 = vld [vmem:[#allocation69_spill] sm:$0xff] }
 0x253   : > { %4317 = vst [vmem:[#allocation34_spill] sm:$0xff] %v3674_v24  ;;  %v3677_v17 = vpop.eup %2408  ;;  %1552 = vadd.xlane.f32.xlu1 %v1551_v47  ;;  %v1554_v33 = vadd.f32 %v3674_v24, %v3668_v49  ;;  %2434 = vpow2.f32 %v1275_v31  ;;  %v1180_v62 = vsub.f32 %v4320_v53, %v1035_v11  ;;  %v1287_v47 = vmul.f32 1.442695, %v1177_v45  ;;  %v4321_v24 = vld [vmem:[#allocation68_spill] sm:$0xff]  ;;  %v4326_v45 = vld [vmem:[#allocation70_spill] sm:$0xff] }
 0x254   : > { %4318 = vst [vmem:[#allocation36_spill] sm:$0xff] %v3677_v17  ;;  %v3682_v37 = vpop.eup %2410  ;;  %v1741_v61 = vadd.f32 %v3533_v20, %v1740_v1  ;;  %2436 = vpow2.f32 %v1277_v18  ;;  %v1289_v3 = vmul.f32 1.442695, %v1178_v58  ;;  %v1181_v31 = vsub.f32 %v4321_v24, %v1038_v32  ;;  %v1044_v1 = vpop.xlane.xlu0 %1043 }
 0x255   : > { %v3686_v21 = vpop.eup %2412  ;;  %1555 = vadd.xlane.f32.xlu0 %v1554_v33  ;;  %2438 = vpow2.f32 %v1279_v48  ;;  %v1182_v11 = vsub.f32 %v4324_v46, %v1038_v32  ;;  %v1291_v48 = vmul.f32 1.442695, %v1179_v6  ;;  %v1183_v58 = vsub.f32 %v4326_v45, %v1041_v10  ;;  %v4330_v46 = vld [vmem:[#allocation72_spill] sm:$0xff] }
 0x256   : > { %v3689_v34 = vpop.eup %2414  ;;  %v3692_v19 = vadd.f32 %v3677_v17, %v1741_v61  ;;  %v1557_v18 = vadd.f32 %v3686_v21, %v3682_v37  ;;  %2440 = vpow2.f32 %v1281_v7  ;;  %v1293_v61 = vmul.f32 1.442695, %v1180_v62  ;;  %v4328_v17 = vld [vmem:[#allocation71_spill] sm:$0xff]  ;;  %v1047_v7 = vpop.xlane.xlu1 %1046 }
 0x257   : > { %4322 = vst [vmem:[#allocation37_spill] sm:$0xff] %v3689_v34  ;;  %v3697_v53 = vpop.eup %2416  ;;  %2442 = vpow2.f32 %v1283_v35  ;;  %v1184_v20 = vsub.f32 %v4328_v17, %v1041_v10  ;;  %v1295_v32 = vmul.f32 1.442695, %v1181_v31  ;;  %v1185_v35 = vsub.f32 %v4330_v46, %v1044_v1  ;;  %v4334_v10 = vld [vmem:[#allocation74_spill] sm:$0xff] }
 0x258   : > { %4323 = vst [vmem:[#allocation39_spill] sm:$0xff] %v3692_v19  ;;  %4325 = vst [vmem:[#allocation41_spill] sm:$0xff] %v3697_v53  ;;  %v3700_v33 = vpop.eup %2418  ;;  %1558 = vadd.xlane.f32.xlu1 %v1557_v18  ;;  %v1560_v24 = vadd.f32 %v3697_v53, %v3689_v34  ;;  %2444 = vpow2.f32 %v1285_v63  ;;  %v1297_v45 = vmul.f32 1.442695, %v1182_v11  ;;  %v4332_v53 = vld [vmem:[#allocation73_spill] sm:$0xff]  ;;  %v1050_v62 = vpop.xlane.xlu0 %1049 }
 0x259   : > { %4327 = vst [vmem:[#allocation43_spill] sm:$0xff] %v3700_v33  ;;  %v3705_v19 = vpop.eup %2420  ;;  %2446 = vpow2.f32 %v1287_v47  ;;  %v1186_v63 = vsub.f32 %v4332_v53, %v1044_v1  ;;  %v1299_v17 = vmul.f32 1.442695, %v1183_v58  ;;  %v1187_v47 = vsub.f32 %v4334_v10, %v1047_v7  ;;  %v4337_v53 = vld [vmem:[#allocation76_spill] sm:$0xff] }
 0x25a   : > { %4329 = vst [vmem:[#allocation44_spill] sm:$0xff] %v3705_v19  ;;  %v3708_v6 = vpop.eup %2422  ;;  %1561 = vadd.xlane.f32.xlu0 %v1560_v24  ;;  %v1563_v18 = vadd.f32 %v3705_v19, %v3700_v33  ;;  %2448 = vpow2.f32 %v1289_v3  ;;  %v1301_v46 = vmul.f32 1.442695, %v1184_v20  ;;  %v4335_v19 = vld [vmem:[#allocation75_spill] sm:$0xff]  ;;  %v1303_v1 = vmul.f32 1.442695, %v1185_v35 }
 0x25b   : > { %4331 = vst [vmem:[#allocation46_spill] sm:$0xff] %v3708_v6  ;;  %v3713_v34 = vpop.eup %2424  ;;  %2450 = vpow2.f32 %v1291_v48  ;;  %v1188_v3 = vsub.f32 %v4335_v19, %v1047_v7  ;;  %v1189_v33 = vsub.f32 %v4337_v53, %v1050_v62  ;;  %v1053_v48 = vpop.xlane.xlu1 %1052  ;;  %v1305_v10 = vmul.f32 1.442695, %v1186_v63  ;;  %v4340_v19 = vld [vmem:[#allocation77_spill] sm:$0xff]  ;;  %v4341_v53 = vld [vmem:[#allocation78_spill] sm:$0xff]  ;;  %v4342_v63 = vld [vmem:[#allocation79_spill] sm:$0xff] }
 0x25c   : > { %4333 = vst [vmem:[#allocation47_spill] sm:$0xff] %v3713_v34  ;;  %v3716_v31 = vpop.eup %2426  ;;  %1564 = vadd.xlane.f32.xlu1 %v1563_v18  ;;  %v1566_v24 = vadd.f32 %v3713_v34, %v3708_v6  ;;  %2452 = vpow2.f32 %v1293_v61  ;;  %v1307_v20 = vmul.f32 1.442695, %v1187_v47  ;;  %v1190_v61 = vsub.f32 %v4340_v19, %v1050_v62 }
 0x25d   : > { %v3721_v11 = vpop.eup %2428  ;;  %2454 = vpow2.f32 %v1295_v32  ;;  %v1191_v6 = vsub.f32 %v4341_v53, %v1053_v48 }
 0x25e   : > { %4336 = vst [vmem:[#allocation48_spill] sm:$0xff] %v3721_v11  ;;  %v3724_v58 = vpop.eup %2430  ;;  %1567 = vadd.xlane.f32.xlu0 %v1566_v24  ;;  %v1569_v18 = vadd.f32 %v3721_v11, %v3716_v31  ;;  %2456 = vpow2.f32 %v1297_v45  ;;  %v1309_v24 = vmul.f32 1.442695, %v1188_v3  ;;  %v1311_v45 = vmul.f32 1.442695, %v1189_v33  ;;  %v4344_v3 = vld [vmem:[#allocation81_spill] sm:$0xff] }
 0x25f   : > { %4338 = vst [vmem:[#allocation49_spill] sm:$0xff] %v3724_v58  ;;  %v3728_v34 = vpop.eup %2432  ;;  %2458 = vpow2.f32 %v1299_v17  ;;  %v1056_v7 = vpop.xlane.xlu0 %1055  ;;  %v1192_v17 = vsub.f32 %v4342_v63, %v1053_v48 }
 0x260   : > { %4339 = vst [vmem:[#allocation51_spill] sm:$0xff] %v3728_v34  ;;  %v3731_v32 = vpop.eup %2434  ;;  %1570 = vadd.xlane.f32.xlu1 %v1569_v18  ;;  %v1572_v35 = vadd.f32 %v3728_v34, %v3724_v58  ;;  %2460 = vpow2.f32 %v1301_v46  ;;  %v4343_v18 = vld [vmem:[#allocation80_spill] sm:$0xff]  ;;  %v1313_v46 = vmul.f32 1.442695, %v1190_v61  ;;  %v1194_v53 = vsub.f32 %v4344_v3, %v1056_v7 }
 0x261   : > { %v3736_v11 = vpop.eup %2436  ;;  %2462 = vpow2.f32 %v1303_v1  ;;  %v1193_v19 = vsub.f32 %v4343_v18, %v1056_v7  ;;  %v1315_v1 = vmul.f32 1.442695, %v1191_v6 }
 0x262   : > { %v3739_v47 = vpop.eup %2438  ;;  %1573 = vadd.xlane.f32.xlu0 %v1572_v35  ;;  %v1575_v62 = vadd.f32 %v3736_v11, %v3731_v32  ;;  %2464 = vpow2.f32 %v1305_v10  ;;  %v1317_v10 = vmul.f32 1.442695, %v1192_v17  ;;  %v1321_v63 = vmul.f32 1.442695, %v1194_v53 }
 0x263   : > { %v3744_v34 = vpop.eup %2440  ;;  %2466 = vpow2.f32 %v1307_v20  ;;  %v1319_v61 = vmul.f32 1.442695, %v1193_v19 }
 0x264   : > { %v3747_v58 = vpop.eup %2442  ;;  %1576 = vadd.xlane.f32.xlu1 %v1575_v62  ;;  %v1578_v33 = vadd.f32 %v3744_v34, %v3739_v47  ;;  %2468 = vpow2.f32 %v1309_v24 }
 0x265   : > { %v3751_v48 = vpop.eup %2444  ;;  %2470 = vpow2.f32 %v1311_v45 }
 0x266   : > { %v3753_v35 = vpop.eup %2446  ;;  %1579 = vadd.xlane.f32.xlu0 %v1578_v33  ;;  %v1581_v20 = vadd.f32 %v3751_v48, %v3747_v58  ;;  %2472 = vpow2.f32 %v1313_v46 }
 0x267   : > { %v3757_v7 = vpop.eup %2448  ;;  %2474 = vpow2.f32 %v1315_v1 }
 0x268   : > { %v3759_v62 = vpop.eup %2450  ;;  %1582 = vadd.xlane.f32.xlu1 %v1581_v20  ;;  %v1584_v6 = vadd.f32 %v3757_v7, %v3753_v35  ;;  %2476 = vpow2.f32 %v1317_v10 }
 0x269   : > { %4345 = vst [vmem:[#allocation53_spill] sm:$0xff] %v3759_v62  ;;  %v3763_v24 = vpop.eup %2452  ;;  %2478 = vpow2.f32 %v1319_v61 }
 0x26a   : > { %4346 = vst [vmem:[#allocation54_spill] sm:$0xff] %v3763_v24  ;;  %v3765_v45 = vpop.eup %2454  ;;  %1585 = vadd.xlane.f32.xlu0 %v1584_v6  ;;  %v1587_v17 = vadd.f32 %v3763_v24, %v3759_v62  ;;  %2480 = vpow2.f32 %v1321_v63 }
 0x26b   : > { %4347 = vst [vmem:[#allocation55_spill] sm:$0xff] %v3765_v45  ;;  %v3769_v18 = vpop.eup %2456 }
 0x26c   : > { %4348 = vst [vmem:[#allocation56_spill] sm:$0xff] %v3769_v18  ;;  %v3771_v19 = vpop.eup %2458  ;;  %1588 = vadd.xlane.f32.xlu1 %v1587_v17  ;;  %v1590_v46 = vadd.f32 %v3769_v18, %v3765_v45 }
 0x26d   : > { %4349 = vst [vmem:[#allocation57_spill] sm:$0xff] %v3771_v19  ;;  %v3775_v3 = vpop.eup %2460 }
 0x26e   : > { %4350 = vst [vmem:[#allocation58_spill] sm:$0xff] %v3775_v3  ;;  %v3777_v53 = vpop.eup %2462  ;;  %1591 = vadd.xlane.f32.xlu0 %v1590_v46  ;;  %v1593_v33 = vadd.f32 %v3775_v3, %v3771_v19 }
 0x26f   : > { %4351 = vst [vmem:[#allocation59_spill] sm:$0xff] %v3777_v53  ;;  %v3781_v1 = vpop.eup %2464 }
 0x270   : > { %4352 = vst [vmem:[#allocation60_spill] sm:$0xff] %v3781_v1  ;;  %v3783_v10 = vpop.eup %2466  ;;  %1594 = vadd.xlane.f32.xlu1 %v1593_v33  ;;  %v1596_v20 = vadd.f32 %v3781_v1, %v3777_v53 }
 0x271   : > { %4353 = vst [vmem:[#allocation61_spill] sm:$0xff] %v3783_v10  ;;  %v3787_v61 = vpop.eup %2468 }
 0x272   : > { %4354 = vst [vmem:[#allocation62_spill] sm:$0xff] %v3787_v61  ;;  %v3789_v63 = vpop.eup %2470  ;;  %1597 = vadd.xlane.f32.xlu0 %v1596_v20  ;;  %v1599_v6 = vadd.f32 %v3787_v61, %v3783_v10 }
 0x273   : > { %4355 = vst [vmem:[#allocation63_spill] sm:$0xff] %v3789_v63  ;;  %v3793_v17 = vpop.eup %2472 }
 0x274   : > { %4356 = vst [vmem:[#allocation64_spill] sm:$0xff] %v3793_v17  ;;  %1600 = vadd.xlane.f32.xlu1 %v1599_v6  ;;  %v3795_v46 = vpop.eup %2474  ;;  %v1602_v3 = vadd.f32 %v3793_v17, %v3789_v63 }
 0x275   : > { %4357 = vst [vmem:[#allocation65_spill] sm:$0xff] %v3795_v46  ;;  %v3799_v33 = vpop.eup %2476 }
 0x276   : > { %4358 = vst [vmem:[#allocation66_spill] sm:$0xff] %v3799_v33  ;;  %v3801_v19 = vpop.eup %2478  ;;  %1603 = vadd.xlane.f32.xlu0 %v1602_v3  ;;  %v1605_v1 = vadd.f32 %v3799_v33, %v3795_v46 }
 0x277   : > { %4359 = vst [vmem:[#allocation67_spill] sm:$0xff] %v3801_v19  ;;  %v3805_v20 = vpop.eup %2480 }
 0x278   : > { %4360 = vst [vmem:[#allocation68_spill] sm:$0xff] %v3805_v20  ;;  %1606 = vadd.xlane.f32.xlu1 %v1605_v1  ;;  %v1608_v61 = vadd.f32 %v3805_v20, %v3801_v19 }
 0x27a   : > { %1609 = vadd.xlane.f32.xlu0 %v1608_v61 }
 0x2c4   : > { %v1517_v6 = vpop.xlane.xlu1 %1516 }
 0x2c5   : > { %v1611_v10 = vadd.f32 0.0001, %v1517_v6 }
 0x2c6   : > { %v1520_v53 = vpop.xlane.xlu0 %1519 }
 0x2c7   : > { %2482 = vrcp.f32 %v1611_v10  ;;  %v1612_v17 = vadd.f32 0.0001, %v1520_v53 }
 0x2c8   : > { %v1523_v63 = vpop.xlane.xlu1 %1522 }
 0x2c9   : > { %2484 = vrcp.f32 %v1612_v17  ;;  %v1613_v18 = vadd.f32 0.0001, %v1523_v63 }
 0x2ca   : > { %v1526_v45 = vpop.xlane.xlu0 %1525 }
 0x2cb   : > { %2486 = vrcp.f32 %v1613_v18  ;;  %v1614_v3 = vadd.f32 0.0001, %v1526_v45 }
 0x2cc   : > { %v1529_v24 = vpop.xlane.xlu1 %1528 }
 0x2cd   : > { %2488 = vrcp.f32 %v1614_v3  ;;  %v1615_v33 = vadd.f32 0.0001, %v1529_v24 }
 0x2ce   : > { %v1532_v46 = vpop.xlane.xlu0 %1531 }
 0x2cf   : > { %2490 = vrcp.f32 %v1615_v33  ;;  %v1616_v1 = vadd.f32 0.0001, %v1532_v46 }
 0x2d0   : > { %v1535_v62 = vpop.xlane.xlu1 %1534 }
 0x2d1   : > { %2492 = vrcp.f32 %v1616_v1  ;;  %v1617_v61 = vadd.f32 0.0001, %v1535_v62 }
 0x2d2   : > { %v1538_v20 = vpop.xlane.xlu0 %1537 }
 0x2d3   : > { %2494 = vrcp.f32 %v1617_v61  ;;  %v1618_v6 = vadd.f32 0.0001, %v1538_v20 }
 0x2d4   : > { %v2483_v10 = vpop.eup %2482  ;;  %v1541_v53 = vpop.xlane.xlu1 %1540 }
 0x2d5   : > { %v1753_v17 = vmul.f32 %v2483_v10, %v3216_v40  ;;  %v1754_v63 = vmul.f32 %v2483_v10, %v3539_v25  ;;  %2496 = vrcp.f32 %v1618_v6  ;;  %v1619_v45 = vadd.f32 0.0001, %v1541_v53 }
 0x2d6   : > { %v2485_v18 = vpop.eup %2484  ;;  %v1544_v3 = vpop.xlane.xlu0 %1543 }
 0x2d7   : > { %v1755_v24 = vmul.f32 %v2485_v18, %v3544_v36  ;;  %v1756_v46 = vmul.f32 %v2485_v18, %v3550_v16  ;;  %v1817_v62 = vmul.f32 %v3208_v54, %v1753_v17  ;;  %v1818_v1 = vmul.f32 %v3366_v42, %v1754_v63 }
 0x2d8   : > { %v2487_v33 = vpop.eup %2486  ;;  %2498 = vrcp.f32 %v1619_v45  ;;  %v1620_v20 = vadd.f32 0.0001, %v1544_v3  ;;  %v1547_v61 = vpop.xlane.xlu1 %1546 }
 0x2d9   : > { %v1819_v40 = vmul.f32 %v3212_v52, %v1755_v24  ;;  %v1820_v25 = vmul.f32 %v3371_v39, %v1756_v46  ;;  %v1757_v6 = vmul.f32 %v2487_v33, %v3557_v4  ;;  %v1758_v10 = vmul.f32 %v2487_v33, %v3563_v8  ;;  %v4361_v33 = vld [vmem:[#allocation40_spill] sm:$0xff] }
 0x2da   : > { %v2489_v53 = vpop.eup %2488  ;;  %2500 = vrcp.f32 %v1620_v20  ;;  %v1621_v36 = vadd.f32 0.0001, %v1547_v61  ;;  %v1550_v16 = vpop.xlane.xlu0 %1549 }
 0x2db   : > { %v1881_v18 = vadd.f32 %v1819_v40, %v1817_v62  ;;  %v1918_v19 = vadd.f32 %v1820_v25, %v1818_v1  ;;  %v1821_v54 = vmul.f32 %v3222_v2, %v1757_v6  ;;  %v1822_v42 = vmul.f32 %v3384_v29, %v1758_v10  ;;  %v4363_v6 = vld [vmem:[#allocation82_spill] sm:$0xff] }
 0x2dc   : > { %v2491_v17 = vpop.eup %2490  ;;  %v1759_v63 = vmul.f32 %v2489_v53, %v3568_v27  ;;  %v1760_v52 = vmul.f32 %v2489_v53, %v3576_v50  ;;  %2502 = vrcp.f32 %v1621_v36  ;;  %v1622_v39 = vadd.f32 0.0001, %v1550_v16  ;;  %v1553_v4 = vpop.xlane.xlu1 %1552  ;;  %v4362_v27 = vld [vmem:[#allocation52_spill] sm:$0xff] }
 0x2dd   : > { %v1882_v45 = vadd.f32 %v1881_v18, %v1821_v54  ;;  %v1919_v8 = vadd.f32 %v1918_v19, %v1822_v42  ;;  %v1761_v3 = vmul.f32 %v2491_v17, %v3579_v15  ;;  %v1762_v24 = vmul.f32 %v2491_v17, %v3585_v28 }
 0x2de   : > { %v2493_v46 = vpop.eup %2492  ;;  %v1823_v62 = vmul.f32 %v4361_v33, %v1759_v63  ;;  %v1824_v2 = vmul.f32 %v3390_v56, %v1760_v52  ;;  %2504 = vrcp.f32 %v1622_v39  ;;  %v1623_v29 = vadd.f32 0.0001, %v1553_v4  ;;  %v1556_v1 = vpop.xlane.xlu0 %1555 }
 0x2df   : > { %v1825_v20 = vmul.f32 %v4362_v27, %v1761_v3  ;;  %v1826_v50 = vmul.f32 %v3394_v55, %v1762_v24  ;;  %v1763_v61 = vmul.f32 %v2493_v46, %v3590_v43  ;;  %v1764_v19 = vmul.f32 %v2493_v46, %v3598_v23  ;;  %v4364_v23 = vld [vmem:[#allocation83_spill] sm:$0xff]  ;;  %v4366_v27 = vld [vmem:[#allocation85_spill] sm:$0xff] }
 0x2e0   : > { %v2495_v40 = vpop.eup %2494  ;;  %v1883_v15 = vadd.f32 %v1882_v45, %v1823_v62  ;;  %v1920_v25 = vadd.f32 %v1919_v8, %v1824_v2  ;;  %2506 = vrcp.f32 %v1623_v29  ;;  %v1624_v28 = vadd.f32 0.0001, %v1556_v1  ;;  %v4365_v45 = vld [vmem:[#allocation84_spill] sm:$0xff] }
 0x2e1   : > { %v1827_v10 = vmul.f32 %v4363_v6, %v1763_v61  ;;  %v1828_v56 = vmul.f32 %v3400_v12, %v1764_v19  ;;  %v1765_v53 = vmul.f32 %v2495_v40, %v3603_v13  ;;  %v1766_v36 = vmul.f32 %v2495_v40, %v3609_v60  ;;  %v1559_v16 = vpop.xlane.xlu1 %1558 }
 0x2e2   : > { %v2497_v18 = vpop.eup %2496  ;;  %v1884_v55 = vadd.f32 %v1883_v15, %v1825_v20  ;;  %v1921_v54 = vadd.f32 %v1920_v25, %v1826_v50  ;;  %2508 = vrcp.f32 %v1624_v28  ;;  %v1625_v43 = vadd.f32 0.0001, %v1559_v16 }
 0x2e3   : > { %v1829_v42 = vmul.f32 %v4364_v23, %v1765_v53  ;;  %v1830_v17 = vmul.f32 %v3404_v22, %v1766_v36  ;;  %v1767_v63 = vmul.f32 %v2497_v18, %v3614_v59  ;;  %v1768_v52 = vmul.f32 %v2497_v18, %v3618_v5  ;;  %v1562_v39 = vpop.xlane.xlu0 %1561  ;;  %v4368_v53 = vld [vmem:[#allocation93_spill] sm:$0xff] }
 0x2e4   : > { %v1885_v12 = vadd.f32 %v1884_v55, %v1827_v10  ;;  %v1922_v4 = vadd.f32 %v1921_v54, %v1828_v56  ;;  %2510 = vrcp.f32 %v1625_v43  ;;  %v1626_v13 = vadd.f32 0.0001, %v1562_v39  ;;  %v4367_v10 = vld [vmem:[#allocation86_spill] sm:$0xff]  ;;  %v4371_v43 = vld [vmem:[#allocation31_spill] sm:$0xff] }
 0x2e5   : > { %v2499_v60 = vpop.eup %2498  ;;  %v1831_v8 = vmul.f32 %v4365_v45, %v1767_v63  ;;  %v1832_v3 = vmul.f32 %v3412_v38, %v1768_v52  ;;  %v1565_v24 = vpop.xlane.xlu1 %1564  ;;  %v4372_v52 = vld [vmem:[#allocation5_spill] sm:$0xff] }
 0x2e6   : > { %v1886_v46 = vadd.f32 %v1885_v12, %v1829_v42  ;;  %v1923_v33 = vadd.f32 %v1922_v4, %v1830_v17  ;;  %v1769_v62 = vmul.f32 %v2499_v60, %v3623_v14  ;;  %v1770_v22 = vmul.f32 %v2499_v60, %v3628_v57  ;;  %v4373_v12 = vld [vmem:[#allocation3_spill] sm:$0xff]  ;;  %v4374_v60 = vld [vmem:[#allocation33_spill] sm:$0xff] }
 0x2e7   : > { %v2501_v59 = vpop.eup %2500  ;;  %2512 = vrcp.f32 %v1626_v13  ;;  %v1627_v5 = vadd.f32 0.0001, %v1565_v24  ;;  %v1568_v2 = vpop.xlane.xlu0 %1567 }
 0x2e8   : > { %v1887_v29 = vadd.f32 %v1886_v46, %v1831_v8  ;;  %v1924_v1 = vadd.f32 %v1923_v33, %v1832_v3  ;;  %v1833_v20 = vmul.f32 %v4366_v27, %v1769_v62  ;;  %v1834_v50 = vmul.f32 %v3416_v26, %v1770_v22  ;;  %v4375_v33 = vld [vmem:[#allocation8_spill] sm:$0xff] }
 0x2e9   : > { %v2503_v61 = vpop.eup %2502  ;;  %v1771_v38 = vmul.f32 %v2501_v59, %v3632_v9  ;;  %v1772_v19 = vmul.f32 %v2501_v59, %v3638_v0  ;;  %2514 = vrcp.f32 %v1627_v5  ;;  %v1628_v40 = vadd.f32 0.0001, %v1568_v2  ;;  %v1571_v14 = vpop.xlane.xlu1 %1570  ;;  %v4369_v9 = vld [vmem:[#allocation87_spill] sm:$0xff]  ;;  %v4370_v0 = vld [vmem:[#allocation94_spill] sm:$0xff]  ;;  %v4376_v22 = vld [vmem:[#allocation4_spill] sm:$0xff] }
 0x2ea   : > { %v1888_v15 = vadd.f32 %v1887_v29, %v1833_v20  ;;  %v1925_v57 = vadd.f32 %v1924_v1, %v1834_v50  ;;  %v1773_v25 = vmul.f32 %v2503_v61, %v3642_v30  ;;  %v1774_v28 = vmul.f32 %v2503_v61, %v3647_v51  ;;  %v4377_v2 = vld [vmem:[#allocation34_spill] sm:$0xff]  ;;  %v4378_v61 = vld [vmem:[#allocation88_spill] sm:$0xff] }
 0x2eb   : > { %v2505_v6 = vpop.eup %2504  ;;  %v1835_v56 = vmul.f32 %v4367_v10, %v1771_v38  ;;  %v1836_v36 = vmul.f32 %v4368_v53, %v1772_v19  ;;  %2516 = vrcp.f32 %v1628_v40  ;;  %v1629_v26 = vadd.f32 0.0001, %v1571_v14  ;;  %v1574_v16 = vpop.xlane.xlu0 %1573  ;;  %v4379_v19 = vld [vmem:[#allocation6_spill] sm:$0xff]  ;;  %v4380_v10 = vld [vmem:[#allocation11_spill] sm:$0xff] }
 0x2ec   : > { %v1837_v18 = vmul.f32 %v4369_v9, %v1773_v25  ;;  %v1838_v55 = vmul.f32 %v4370_v0, %v1774_v28  ;;  %v1775_v54 = vmul.f32 %v2505_v6, %v3651_v41  ;;  %v1776_v23 = vmul.f32 %v2505_v6, %v4371_v43  ;;  %v4381_v53 = vld [vmem:[#allocation7_spill] sm:$0xff] }
 0x2ed   : > { %v2507_v42 = vpop.eup %2506  ;;  %v1889_v30 = vadd.f32 %v1888_v15, %v1835_v56  ;;  %v1926_v17 = vadd.f32 %v1925_v57, %v1836_v36  ;;  %2518 = vrcp.f32 %v1629_v26  ;;  %v1630_v51 = vadd.f32 0.0001, %v1574_v16  ;;  %v1577_v63 = vpop.xlane.xlu1 %1576 }
 0x2ee   : > { %v1839_v39 = vmul.f32 %v4372_v52, %v1775_v54  ;;  %v1840_v4 = vmul.f32 %v4373_v12, %v1776_v23  ;;  %v1777_v13 = vmul.f32 %v2507_v42, %v3659_v44  ;;  %v1778_v45 = vmul.f32 %v2507_v42, %v4374_v60  ;;  %v4385_v42 = vld [vmem:[#allocation39_spill] sm:$0xff]  ;;  %v4386_v52 = vld [vmem:[#allocation14_spill] sm:$0xff]  ;;  %v4387_v12 = vld [vmem:[#allocation9_spill] sm:$0xff] }
 0x2ef   : > { %v2509_v8 = vpop.eup %2508  ;;  %v1890_v3 = vadd.f32 %v1889_v30, %v1837_v18  ;;  %v1927_v24 = vadd.f32 %v1926_v17, %v1838_v55  ;;  %2520 = vrcp.f32 %v1630_v51  ;;  %v1631_v41 = vadd.f32 0.0001, %v1577_v63  ;;  %v1580_v46 = vpop.xlane.xlu0 %1579  ;;  %v4382_v18 = vld [vmem:[#allocation37_spill] sm:$0xff] }
 0x2f0   : > { %v1841_v62 = vmul.f32 %v4375_v33, %v1777_v13  ;;  %v1842_v59 = vmul.f32 %v4376_v22, %v1778_v45  ;;  %v1779_v5 = vmul.f32 %v2509_v8, %v3668_v49  ;;  %v1780_v29 = vmul.f32 %v2509_v8, %v4377_v2  ;;  %v4383_v55 = vld [vmem:[#allocation41_spill] sm:$0xff]  ;;  %v4388_v45 = vld [vmem:[#allocation43_spill] sm:$0xff] }
 0x2f1   : > { %v2511_v1 = vpop.eup %2510  ;;  %v1891_v27 = vadd.f32 %v1890_v3, %v1839_v39  ;;  %v1928_v20 = vadd.f32 %v1927_v24, %v1840_v4  ;;  %2522 = vrcp.f32 %v1631_v41  ;;  %v1632_v44 = vadd.f32 0.0001, %v1580_v46  ;;  %v1583_v50 = vpop.xlane.xlu1 %1582  ;;  %v4389_v3 = vld [vmem:[#allocation44_spill] sm:$0xff] }
 0x2f2   : > { %v1843_v38 = vmul.f32 %v4378_v61, %v1779_v5  ;;  %v1844_v40 = vmul.f32 %v4379_v19, %v1780_v29  ;;  %v1781_v14 = vmul.f32 %v2511_v1, %v3682_v37  ;;  %v1782_v15 = vmul.f32 %v2511_v1, %v3686_v21  ;;  %v4384_v21 = vld [vmem:[#allocation30_spill] sm:$0xff]  ;;  %v4392_v1 = vld [vmem:[#allocation17_spill] sm:$0xff]  ;;  %v4394_v61 = vld [vmem:[#allocation20_spill] sm:$0xff] }
 0x2f3   : > { %v1892_v57 = vadd.f32 %v1891_v27, %v1841_v62  ;;  %v1929_v25 = vadd.f32 %v1928_v20, %v1842_v59  ;;  %2524 = vrcp.f32 %v1632_v44  ;;  %v1633_v49 = vadd.f32 0.0001, %v1583_v50  ;;  %v1586_v28 = vpop.xlane.xlu0 %1585  ;;  %v4390_v62 = vld [vmem:[#allocation46_spill] sm:$0xff]  ;;  %v4391_v59 = vld [vmem:[#allocation47_spill] sm:$0xff] }
 0x2f4   : > { %v2513_v6 = vpop.eup %2512  ;;  %v1845_v56 = vmul.f32 %v4380_v10, %v1781_v14  ;;  %v1846_v36 = vmul.f32 %v4381_v53, %v1782_v15  ;;  %v1634_v26 = vadd.f32 0.0001, %v1586_v28  ;;  %v1706_v23 = vrot.slane %v4384_v21, 4  ;;  %v4393_v20 = vld [vmem:[#allocation95_spill] sm:$0xff]  ;;  %v4395_v19 = vld [vmem:[#allocation10_spill] sm:$0xff]  ;;  %v4396_v15 = vld [vmem:[#allocation48_spill] sm:$0xff] }
 0x2f5   : > { %v1893_v16 = vadd.f32 %v1892_v57, %v1843_v38  ;;  %v1930_v9 = vadd.f32 %v1929_v25, %v1844_v40  ;;  %v1783_v0 = vmul.f32 %v2513_v6, %v4382_v18  ;;  %v1784_v54 = vmul.f32 %v2513_v6, %v4383_v55  ;;  %v1589_v37 = vpop.xlane.xlu1 %1588  ;;  %v4400_v18 = vld [vmem:[#allocation51_spill] sm:$0xff] }
 0x2f6   : > { %v2515_v43 = vpop.eup %2514  ;;  %v1743_v30 = vrot.slane %v4385_v42, 4  ;;  %2526 = vrcp.f32 %v1633_v49  ;;  %v1635_v17 = vadd.f32 0.0001, %v1589_v37 }
 0x2f7   : > { %v1894_v51 = vadd.f32 %v1893_v16, %v1845_v56  ;;  %v1931_v63 = vadd.f32 %v1930_v9, %v1846_v36  ;;  %v1847_v39 = vmul.f32 %v4386_v52, %v1783_v0  ;;  %v1848_v4 = vmul.f32 %v4387_v12, %v1784_v54  ;;  %v1592_v13 = vpop.xlane.xlu0 %1591  ;;  %v4397_v56 = vld [vmem:[#allocation23_spill] sm:$0xff]  ;;  %v4398_v36 = vld [vmem:[#allocation12_spill] sm:$0xff]  ;;  %v4399_v16 = vld [vmem:[#allocation49_spill] sm:$0xff] }
 0x2f8   : > { %v2517_v60 = vpop.eup %2516  ;;  %v1785_v8 = vmul.f32 %v2515_v43, %v4388_v45  ;;  %v1786_v24 = vmul.f32 %v2515_v43, %v4389_v3  ;;  %2528 = vrcp.f32 %v1634_v26  ;;  %v1636_v41 = vadd.f32 0.0001, %v1592_v13  ;;  %v4403_v3 = vld [vmem:[#allocation29_spill] sm:$0xff] }
 0x2f9   : > { %v1895_v46 = vadd.f32 %v1894_v51, %v1847_v39  ;;  %v1932_v33 = vadd.f32 %v1931_v63, %v1848_v4  ;;  %v1787_v22 = vmul.f32 %v2517_v60, %v4390_v62  ;;  %v1788_v5 = vmul.f32 %v2517_v60, %v4391_v59  ;;  %v1595_v2 = vpop.xlane.xlu1 %1594  ;;  %v4402_v63 = vld [vmem:[#allocation13_spill] sm:$0xff] }
 0x2fa   : > { %v2519_v29 = vpop.eup %2518  ;;  %v1849_v27 = vmul.f32 %v4392_v1, %v1785_v8  ;;  %v1850_v44 = vmul.f32 %v4393_v20, %v1786_v24  ;;  %2530 = vrcp.f32 %v1635_v17  ;;  %v1637_v50 = vadd.f32 0.0001, %v1595_v2  ;;  %v4401_v17 = vld [vmem:[#allocation26_spill] sm:$0xff] }
 0x2fb   : > { %v1851_v38 = vmul.f32 %v4394_v61, %v1787_v22  ;;  %v1852_v40 = vmul.f32 %v4395_v19, %v1788_v5  ;;  %v1789_v14 = vmul.f32 %v2519_v29, %v3716_v31  ;;  %v1790_v57 = vmul.f32 %v2519_v29, %v4396_v15  ;;  %v1598_v25 = vpop.xlane.xlu0 %1597  ;;  %v4406_v29 = vld [vmem:[#allocation16_spill] sm:$0xff]  ;;  %v4408_v15 = vld [vmem:[#allocation18_spill] sm:$0xff] }
 0x2fc   : > { %v2521_v49 = vpop.eup %2520  ;;  %v1896_v28 = vadd.f32 %v1895_v46, %v1849_v27  ;;  %v1933_v6 = vadd.f32 %v1932_v33, %v1850_v44  ;;  %2532 = vrcp.f32 %v1636_v41  ;;  %v1638_v10 = vadd.f32 0.0001, %v1598_v25  ;;  %v4404_v41 = vld [vmem:[#allocation15_spill] sm:$0xff] }
 0x2fd   : > { %v1853_v53 = vmul.f32 %v4397_v56, %v1789_v14  ;;  %v1854_v26 = vmul.f32 %v4398_v36, %v1790_v57  ;;  %v1791_v9 = vmul.f32 %v2521_v49, %v4399_v16  ;;  %v1792_v0 = vmul.f32 %v2521_v49, %v4400_v18  ;;  %v1601_v55 = vpop.xlane.xlu1 %1600 }
 0x2fe   : > { %v2523_v54 = vpop.eup %2522  ;;  %v1897_v37 = vadd.f32 %v1896_v28, %v1851_v38  ;;  %v1934_v31 = vadd.f32 %v1933_v6, %v1852_v40  ;;  %2534 = vrcp.f32 %v1637_v50  ;;  %v1639_v43 = vadd.f32 0.0001, %v1601_v55  ;;  %v4407_v40 = vld [vmem:[#allocation35_spill] sm:$0xff] }
 0x2ff   : > { %v1855_v51 = vmul.f32 %v4401_v17, %v1791_v9  ;;  %v1856_v52 = vmul.f32 %v4402_v63, %v1792_v0  ;;  %v1793_v39 = vmul.f32 %v2523_v54, %v3731_v32  ;;  %v1794_v12 = vmul.f32 %v2523_v54, %v3736_v11  ;;  %v1604_v8 = vpop.xlane.xlu0 %1603  ;;  %v4411_v9 = vld [vmem:[#allocation38_spill] sm:$0xff]  ;;  %v4412_v0 = vld [vmem:[#allocation19_spill] sm:$0xff]  ;;  %v4416_v17 = vld [vmem:[#allocation56_spill] sm:$0xff] }
 0x300   : > { %v2525_v4 = vpop.eup %2524  ;;  %v1707_v13 = vadd.f32 %v1706_v23, %v4384_v21  ;;  %v1898_v60 = vadd.f32 %v1897_v37, %v1853_v53  ;;  %v1935_v45 = vadd.f32 %v1934_v31, %v1854_v26  ;;  %2536 = vrcp.f32 %v1638_v10  ;;  %v4405_v23 = vld [vmem:[#allocation32_spill] sm:$0xff]  ;;  %v4409_v10 = vld [vmem:[#allocation53_spill] sm:$0xff]  ;;  %v4410_v53 = vld [vmem:[#allocation54_spill] sm:$0xff] }
 0x301   : > { %v1857_v24 = vmul.f32 %v4403_v3, %v1793_v39  ;;  %v1858_v46 = vmul.f32 %v4404_v41, %v1794_v12  ;;  %v1795_v33 = vmul.f32 %v2525_v4, %v3739_v47  ;;  %v1796_v62 = vmul.f32 %v2525_v4, %v3744_v34  ;;  %v1607_v59 = vpop.xlane.xlu1 %1606  ;;  %v4413_v54 = vld [vmem:[#allocation42_spill] sm:$0xff]  ;;  %v4414_v31 = vld [vmem:[#allocation21_spill] sm:$0xff] }
 0x302   : > { %v1744_v22 = vadd.f32 %v1743_v30, %v4385_v42  ;;  %v1899_v32 = vadd.f32 %v1898_v60, %v1855_v51  ;;  %2538 = vrcp.f32 %v1639_v43  ;;  %v1640_v11 = vadd.f32 0.0001, %v1604_v8  ;;  %v4415_v43 = vld [vmem:[#allocation55_spill] sm:$0xff]  ;;  %v4417_v4 = vld [vmem:[#allocation45_spill] sm:$0xff]  ;;  %v4418_v60 = vld [vmem:[#allocation22_spill] sm:$0xff] }
 0x303   : > { %v2527_v5 = vpop.eup %2526  ;;  %v1936_v21 = vadd.f32 %v1935_v45, %v1856_v52  ;;  %v1859_v2 = vmul.f32 %v4405_v23, %v1795_v33  ;;  %v1860_v1 = vmul.f32 %v4406_v29, %v1796_v62  ;;  %v1641_v27 = vadd.f32 0.0001, %v1607_v59  ;;  %v1610_v34 = vpop.xlane.xlu0 %1609  ;;  %v4419_v8 = vld [vmem:[#allocation57_spill] sm:$0xff]  ;;  %v4423_v23 = vld [vmem:[#allocation59_spill] sm:$0xff] }
 0x304   : > { %v1708_v20 = vrot.slane %v1707_v13, 2  ;;  %v1900_v44 = vadd.f32 %v1899_v32, %v1857_v24  ;;  %v1797_v50 = vmul.f32 %v2527_v5, %v3747_v58  ;;  %v1798_v47 = vmul.f32 %v2527_v5, %v3751_v48  ;;  %v4420_v24 = vld [vmem:[#allocation58_spill] sm:$0xff]  ;;  %v4422_v5 = vld [vmem:[#allocation24_spill] sm:$0xff] }
 0x305   : > { %v2529_v61 = vpop.eup %2528  ;;  %v1937_v42 = vadd.f32 %v1936_v21, %v1858_v46  ;;  %2540 = vrcp.f32 %v1640_v11  ;;  %v1642_v30 = vadd.f32 0.0001, %v1610_v34  ;;  %v1745_v38 = vrot.slane %v1744_v22, 2  ;;  %v4421_v11 = vld [vmem:[#allocation89_spill] sm:$0xff] }
 0x306   : > { %v1901_v19 = vadd.f32 %v1900_v44, %v1859_v2  ;;  %v1861_v14 = vmul.f32 %v4407_v40, %v1797_v50  ;;  %v1862_v57 = vmul.f32 %v4408_v15, %v1798_v47  ;;  %v1799_v28 = vmul.f32 %v2529_v61, %v3753_v35  ;;  %v4424_v2 = vld [vmem:[#allocation60_spill] sm:$0xff]  ;;  %v4425_v50 = vld [vmem:[#allocation50_spill] sm:$0xff]  ;;  %v4426_v34 = vld [vmem:[#allocation25_spill] sm:$0xff] }
 0x307   : > { %v2531_v25 = vpop.eup %2530  ;;  %v1938_v49 = vadd.f32 %v1937_v42, %v1860_v1  ;;  %v1800_v6 = vmul.f32 %v2529_v61, %v3757_v7  ;;  %2542 = vrcp.f32 %v1641_v27  ;;  %v1709_v58 = vadd.f32 %v1708_v20, %v1707_v13  ;;  %v4427_v42 = vld [vmem:[#allocation61_spill] sm:$0xff] }
 0x308   : > { %v1902_v48 = vadd.f32 %v1901_v19, %v1861_v14  ;;  %v1801_v56 = vmul.f32 %v2531_v25, %v4409_v10  ;;  %v1802_v36 = vmul.f32 %v2531_v25, %v4410_v53  ;;  %v1863_v18 = vmul.f32 %v4411_v9, %v1799_v28  ;;  %v4429_v25 = vld [vmem:[#allocation90_spill] sm:$0xff]  ;;  %v4430_v28 = vld [vmem:[#allocation27_spill] sm:$0xff] }
 0x309   : > { %v2533_v26 = vpop.eup %2532  ;;  %v1939_v16 = vadd.f32 %v1938_v49, %v1862_v57  ;;  %v1864_v55 = vmul.f32 %v4412_v0, %v1800_v6  ;;  %2544 = vrcp.f32 %v1642_v30  ;;  %v1746_v52 = vadd.f32 %v1745_v38, %v1744_v22  ;;  %v4428_v38 = vld [vmem:[#allocation62_spill] sm:$0xff] }
 0x30a   : > { %v1865_v37 = vmul.f32 %v4413_v54, %v1801_v56  ;;  %v1866_v35 = vmul.f32 %v4414_v31, %v1802_v36  ;;  %v1803_v7 = vmul.f32 %v2533_v26, %v4415_v43  ;;  %v1804_v51 = vmul.f32 %v2533_v26, %v4416_v17  ;;  %v4431_v56 = vld [vmem:[#allocation63_spill] sm:$0xff]  ;;  %v4432_v36 = vld [vmem:[#allocation64_spill] sm:$0xff]  ;;  %v4435_v43 = vld [vmem:[#allocation65_spill] sm:$0xff] }
 0x30b   : > { %v2535_v63 = vpop.eup %2534  ;;  %v1903_v39 = vadd.f32 %v1902_v48, %v1863_v18  ;;  %v1940_v12 = vadd.f32 %v1939_v16, %v1864_v55  ;;  %v1710_v33 = vrot.slane %v1709_v58, 1  ;;  %v1747_v27 = vrot.slane %v1746_v52, 1  ;;  %v4433_v55 = vld [vmem:[#allocation91_spill] sm:$0xff]  ;;  %v4436_v17 = vld [vmem:[#allocation66_spill] sm:$0xff] }
 0x30c   : > { %v1867_v13 = vmul.f32 %v4417_v4, %v1803_v7  ;;  %v1868_v45 = vmul.f32 %v4418_v60, %v1804_v51  ;;  %v1805_v3 = vmul.f32 %v2535_v63, %v4419_v8  ;;  %v1806_v41 = vmul.f32 %v2535_v63, %v4420_v24 }
 0x30d   : > { %v2537_v46 = vpop.eup %2536  ;;  %v1904_v62 = vadd.f32 %v1903_v39, %v1865_v37  ;;  %v1941_v32 = vadd.f32 %v1940_v12, %v1866_v35  ;;  %v1711_v57 = vadd.f32 %v1710_v33, %v1709_v58  ;;  %v1748_v9 = vadd.f32 %v1747_v27, %v1746_v52  ;;  %v4434_v37 = vld [vmem:[#allocation28_spill] sm:$0xff]  ;;  %v4437_v12 = vld [vmem:[#allocation67_spill] sm:$0xff] }
 0x30e   : > { %v1869_v59 = vmul.f32 %v4421_v11, %v1805_v3  ;;  %v1870_v21 = vmul.f32 %v4422_v5, %v1806_v41  ;;  %v1807_v22 = vmul.f32 %v2537_v46, %v4423_v23  ;;  %v1808_v29 = vmul.f32 %v2537_v46, %v4424_v2  ;;  %v4439_v52 = vld [vmem:[#allocation92_spill] sm:$0xff]  ;;  %v4441_v41 = vld [vmem:[#allocation2_spill] sm:$0xff] }
 0x30f   : > { %v2539_v1 = vpop.eup %2538  ;;  %v1905_v20 = vadd.f32 %v1904_v62, %v1867_v13  ;;  %v1942_v44 = vadd.f32 %v1941_v32, %v1868_v45  ;;  %v1749_v58 = vadd.f32 0.0001, %v1711_v57  ;;  %v4438_v13 = vld [vmem:[#allocation68_spill] sm:$0xff]  ;;  %v1750_v45 = vadd.f32 0.0001, %v1748_v9 }
 0x310   : > { %v1871_v47 = vmul.f32 %v4425_v50, %v1807_v22  ;;  %v1872_v61 = vmul.f32 %v4426_v34, %v1808_v29  ;;  %v1809_v30 = vmul.f32 %v2539_v1, %v4427_v42  ;;  %v1810_v19 = vmul.f32 %v2539_v1, %v4428_v38  ;;  %v4440_v3 = vld [vmem:[#allocation96_spill] sm:$0xff] }
 0x311   : > { %v1906_v40 = vadd.f32 %v1905_v20, %v1869_v59  ;;  %v1943_v14 = vadd.f32 %v1942_v44, %v1870_v21  ;;  %v4442_v33 = vld [vmem:[#allocation36_spill] sm:$0xff]  ;;  %2546 = vrcp.f32 %v1749_v58  ;;  %v1969_v57 = vlaneseq }
 0x312   : > { %v2541_v15 = vpop.eup %2540  ;;  %v1873_v49 = vmul.f32 %v4429_v25, %v1809_v30  ;;  %v1874_v6 = vmul.f32 %v4430_v28, %v1810_v19  ;;  %2548 = vrcp.f32 %v1750_v45 }
 0x313   : > { %v1907_v48 = vadd.f32 %v1906_v40, %v1871_v47  ;;  %v1944_v10 = vadd.f32 %v1943_v14, %v1872_v61  ;;  %v1811_v53 = vmul.f32 %v2541_v15, %v4431_v56  ;;  %v1812_v26 = vmul.f32 %v2541_v15, %v4432_v36 }
 0x314   : > { %v2543_v16 = vpop.eup %2542  ;;  %v2563_v14 = vmov 1966171168   ;;  %vm1983_vm1 = vcmp.lt.s32.totalorder %v1969_v57, 256 }
 0x315   : > { %v1908_v18 = vadd.f32 %v1907_v48, %v1873_v49  ;;  %v1945_v0 = vadd.f32 %v1944_v10, %v1874_v6  ;;  %v1875_v54 = vmul.f32 %v4433_v55, %v1811_v53  ;;  %v1876_v31 = vmul.f32 %v4434_v37, %v1812_v26 }
 0x316   : > { %v2545_v35 = vpop.eup %2544  ;;  %v1813_v7 = vmul.f32 %v2543_v16, %v4435_v43  ;;  %v1814_v51 = vmul.f32 %v2543_v16, %v4436_v17  ;;  %v1967_v15 = vunpack.c.l.s4 %v2563_v14  ;;  %v1970_v49 = vshrl.u32 %v1969_v57, 7 }
 0x317   : > { %v1909_v63 = vadd.f32 %v1908_v18, %v1875_v54  ;;  %v1946_v39 = vadd.f32 %v1945_v0, %v1876_v31  ;;  %v1815_v4 = vmul.f32 %v2545_v35, %v4437_v12  ;;  %v1816_v60 = vmul.f32 %v2545_v35, %v4438_v13 }
 0x318   : > { %v1877_v8 = vmul.f32 %v4439_v52, %v1813_v7  ;;  %v1878_v24 = vmul.f32 %v4440_v3, %v1814_v51  ;;  %v1968_v25 = vunpack.c.0.s8 %v1967_v15 }
 0x319   : > { %v1879_v46 = vmul.f32 %v4441_v41, %v1815_v4  ;;  %v1880_v62 = vmul.f32 %v4442_v33, %v1816_v60 }
 0x31a   : > { %v1910_v32 = vadd.f32 %v1909_v63, %v1877_v8  ;;  %v1947_v11 = vadd.f32 %v1946_v39, %v1878_v24  ;;  %v1971_v10 = vsub.s32 %v1968_v25, %v1970_v49 }
 0x31c   : > { %v1911_v59 = vadd.f32 %v1910_v32, %v1879_v46  ;;  %v1948_v5 = vadd.f32 %v1947_v11, %v1880_v62 }
 0x31e   : > { %v1912_v21 = vrot.slane %v1911_v59, 4  ;;  %v1949_v23 = vrot.slane %v1948_v5, 4  ;;  %v2547_v47 = vpop.eup %2546 }
 0x31f   : > { %v2549_v42 = vpop.eup %2548 }
 0x320   : > { %v1913_v22 = vadd.f32 %v1912_v21, %v1911_v59  ;;  %v1950_v2 = vadd.f32 %v1949_v23, %v1948_v5 }
 0x322   : > { %v1914_v29 = vrot.slane %v1913_v22, 2  ;;  %v1951_v1 = vrot.slane %v1950_v2, 2 }
 0x324   : > { %v1915_v27 = vadd.f32 %v1914_v29, %v1913_v22  ;;  %v1952_v20 = vadd.f32 %v1951_v1, %v1950_v2 }
 0x326   : > { %v1916_v44 = vrot.slane %v1915_v27, 1  ;;  %v1953_v50 = vrot.slane %v1952_v20, 1 }
 0x328   : > { %v1917_v34 = vadd.f32 %v1916_v44, %v1915_v27  ;;  %v1954_v61 = vadd.f32 %v1953_v50, %v1952_v20 }
 0x32a   : > { %v1955_v30 = vmul.f32 %v2547_v47, %v1917_v34  ;;  %v1956_v38 = vmul.f32 %v2549_v42, %v1954_v61 }
 0x32c   : > { %v1957_v19 = vadd.f32 0.0001, %v1955_v30  ;;  %v1958_v40 = vadd.f32 0.0001, %v1956_v38 }
 0x32e   : > { %2550 = vlog2.f32 %v1957_v19 }
 0x32f   : > { %2552 = vlog2.f32 %v1958_v40 }
 0x33b   : > { %v2551_v28 = vpop.eup %2550 }
 0x33c   : > { %v2553_v6 = vpop.eup %2552  ;;  %v1960_v48 = vmul.f32 0.6931472, %v2551_v28 }
 0x33d   : > { %v1962_v56 = vmul.f32 0.6931472, %v2553_v6 }
 0x33f   : > { %v1965_v53 = vcombine.low %v1960_v48, %v1962_v56 }
 0x341   : > { %v1972_v36 = vrot.slane %v1965_v53, %v1971_v10 }
 0x343   : > { %v1979_v26 = vrot.slane %v1972_v36, %v1971_v10 }
 0x345   : > { %1985 = vst.msk [vmem:[%s276_s17] sm:$0x3] %vm1983_vm1, %v1979_v26 }
 0x346 PF: > { %s14_s15 = sadd.s32 1, %s2560_s15  }
 0x347   : > { %p11_p8 = scmp.ge.s32.totalorder %s14_s15, 4  }
 0x349   :  { %13 = sbr.rel (!%p11_p8) target bundleno = 1 (0x1), region = 75 }

</bundles_post_ra>
